<compile_context>
chip_gen: v7x
topology: tpu7x:2x2x1
jax: 0.10.0
libtpu: 0.0.40
codegen_flags: <defaults>
</compile_context>

<pallas_src>
import jax
import jax.numpy as jnp
import numpy as np
from jax import lax
from jax.experimental import pallas as pl
from jax.experimental.pallas import tpu as pltpu


def _round_up(x, m):
    return (x + m - 1) // m * m


# ---------------------------------------------------------------------------
# Pallas kernel: one grid step = (one batch block) x (one block of TB steps),
# both GRU layers fused; carries persist in VMEM scratch across time blocks.
# ---------------------------------------------------------------------------
def gru_seq_kernel(x_ref, lens_ref,
                   wih0_ref, bih0_ref,
                   whh0_ref, bhh0n_ref,
                   wih1_ref, bih1_ref,
                   whh1_ref, bhh1n_ref,
                   out_ref,
                   h0_ref, h1_ref, gi0_ref):
    tb = pl.program_id(1)                     # time-block index (inner axis)
    TB, BB, _ = x_ref.shape
    Hp = h0_ref.shape[1]

    @pl.when(tb == 0)
    def _():                                  # new batch block -> reset carries
        h0_ref[...] = jnp.zeros_like(h0_ref)
        h1_ref[...] = jnp.zeros_like(h1_ref)

    # Grid-resident (constant-index) weights / biases: load once per block.
    wih0 = wih0_ref[...]
    bih0 = bih0_ref[...]
    whh0 = whh0_ref[...]
    bhh0n = bhh0n_ref[...]
    wih1 = wih1_ref[...]
    bih1 = bih1_ref[...]
    whh1 = whh1_ref[...]
    bhh1n = bhh1n_ref[...]
    lens = lens_ref[...]                      # (BB, 1) int32
    t_base = tb * TB

    # ---- hoisted layer-0 input projection for the whole time block ---------
    # Independent of the recurrence carries -> off the serial chain.  bf16
    # operands, f32 accumulation, parked in VMEM scratch.
    def prep(tt, carry):
        gi0_ref[tt] = (jnp.dot(x_ref[tt], wih0,
                               preferred_element_type=jnp.float32) + bih0)
        return carry

    lax.fori_loop(0, TB, prep, 0, unroll=min(TB, 8))

    # ---- recurrence: TB timesteps, both layers fused ------------------------
    def step(tt, carry):
        h0, h1 = carry                                        # f32 (BB, Hp)
        # Both carry-dependent matmuls issued back-to-back (overlap in MXU).
        gh0 = jnp.dot(h0.astype(jnp.bfloat16), whh0,
                      preferred_element_type=jnp.float32)
        gh1 = jnp.dot(h1.astype(jnp.bfloat16), whh1,
                      preferred_element_type=jnp.float32)
        gi0 = gi0_ref[tt]                                     # (BB, 3Hp) f32
        valid = (t_base + tt) < lens                          # (BB, 1) bool

        # layer 0 (r/z hidden biases pre-folded into gi0's bias)
        r0 = jax.nn.sigmoid(gi0[:, :Hp] + gh0[:, :Hp])
        z0 = jax.nn.sigmoid(gi0[:, Hp:2 * Hp] + gh0[:, Hp:2 * Hp])
        n0 = jnp.tanh(gi0[:, 2 * Hp:] + r0 * (gh0[:, 2 * Hp:] + bhh0n))
        h0 = jnp.where(valid, n0 + z0 * (h0 - n0), h0)        # freeze finished rows

        # layer 1 (gi1 depends on the fresh h0 -> stays on the serial chain)
        gi1 = jnp.dot(h0.astype(jnp.bfloat16), wih1,
                      preferred_element_type=jnp.float32) + bih1
        r1 = jax.nn.sigmoid(gi1[:, :Hp] + gh1[:, :Hp])
        z1 = jax.nn.sigmoid(gi1[:, Hp:2 * Hp] + gh1[:, Hp:2 * Hp])
        n1 = jnp.tanh(gi1[:, 2 * Hp:] + r1 * (gh1[:, 2 * Hp:] + bhh1n))
        h1 = jnp.where(valid, n1 + z1 * (h1 - n1), h1)
        return (h0, h1)

    h0, h1 = lax.fori_loop(0, TB, step, (h0_ref[...], h1_ref[...]),
                           unroll=min(TB, 8))
    h0_ref[...] = h0
    h1_ref[...] = h1
    out_ref[...] = h1                          # lane-dense (BB, Hp) store


# ---------------------------------------------------------------------------
# Wrapper: padding, gate-aligned bf16 weight layout, bias folding, grid setup.
# ---------------------------------------------------------------------------
def _pad_gate_weight(w, H, Hp, in_dim, in_pad):
    """w: (3H, in_dim) torch layout -> (in_pad, 3*Hp); gate g -> cols [g*Hp, g*Hp+H)."""
    out = jnp.zeros((in_pad, 3 * Hp), jnp.float32)
    for g in range(3):
        out = out.at[:in_dim, g * Hp:g * Hp + H].set(w[g * H:(g + 1) * H, :].T)
    return out


def _pad_gate_bias(b, H, Hp):
    out = jnp.zeros((1, 3 * Hp), jnp.float32)
    for g in range(3):
        out = out.at[0, g * Hp:g * Hp + H].set(b[g * H:(g + 1) * H])
    return out


def sequence_model_forward(x, len_original_x, params, *,
                           time_block=32, batch_block=None):
    """x: (B, T, D) f32 batch_first (torch convention); len_original_x: (B,) int.
    Returns final_hidden_state: (B, H) f32 (hidden of the last GRU layer at each
    sequence's last valid timestep) == torch Sequence_Model.forward output."""
    B, T, D = x.shape
    H = params["whh0"].shape[1]

    Hp = _round_up(H, 128)                    # 128-lane-aligned per-gate slabs
    Bp0 = _round_up(B, 8)                     # full sublanes
    if batch_block is None:
        # Split the batch into two blocks only when it is big enough for the
        # two v7x TensorCores; one block otherwise (no-op on v5e/v6e).
        batch_block = Bp0 if Bp0 <= 8 else _round_up((Bp0 + 1) // 2, 8)
    BB = min(_round_up(batch_block, 8), Bp0)
    Bp = _round_up(Bp0, BB)
    nb = Bp // BB

    TB = max(1, min(time_block, T))
    T_pad = _round_up(T, TB)
    n_tb = T_pad // TB

    # ---- streamed input: time-major, bf16; padded rows get length 0 ---------
    x_tm = jnp.zeros((T_pad, Bp, D), jnp.bfloat16)
    x_tm = x_tm.at[:T, :B, :].set(
        jnp.transpose(x, (1, 0, 2)).astype(jnp.bfloat16))
    lens = jnp.zeros((Bp, 1), jnp.int32).at[:B, 0].set(
        len_original_x.astype(jnp.int32))

    # ---- gate-block-padded bf16 weights / f32 biases -------------------------
    wih0 = _pad_gate_weight(params["wih0"], H, Hp, D, D).astype(jnp.bfloat16)
    whh0 = _pad_gate_weight(params["whh0"], H, Hp, H, Hp).astype(jnp.bfloat16)
    wih1 = _pad_gate_weight(params["wih1"], H, Hp, H, Hp).astype(jnp.bfloat16)
    whh1 = _pad_gate_weight(params["whh1"], H, Hp, H, Hp).astype(jnp.bfloat16)

    bih0 = _pad_gate_bias(params["bih0"], H, Hp)
    bhh0 = _pad_gate_bias(params["bhh0"], H, Hp)
    bih1 = _pad_gate_bias(params["bih1"], H, Hp)
    bhh1 = _pad_gate_bias(params["bhh1"], H, Hp)
    # Fold r/z hidden biases into the input biases (they add outside the r*()
    # term); the n-gate hidden bias must stay inside r*(...) -> kept separate.
    bih0f = bih0.at[:, :2 * Hp].add(bhh0[:, :2 * Hp])
    bih1f = bih1.at[:, :2 * Hp].add(bhh1[:, :2 * Hp])
    bhh0n = bhh0[:, 2 * Hp:]
    bhh1n = bhh1[:, 2 * Hp:]

    def const(shape):
        # Constant-index (grid-resident) operand.
        return pl.BlockSpec(shape, lambda b, t: (0,) * len(shape))

    grid_spec = pltpu.PrefetchScalarGridSpec(
        num_scalar_prefetch=0,
        grid=(nb, n_tb),                       # (batch blocks, time blocks)
        in_specs=[
            pl.BlockSpec((TB, BB, D), lambda b, t: (t, b, 0)),   # raw x block
            pl.BlockSpec((BB, 1), lambda b, t: (b, 0)),          # lengths
            const((D, 3 * Hp)), const((1, 3 * Hp)),              # wih0, bih0f
            const((Hp, 3 * Hp)), const((1, Hp)),                 # whh0, bhh0n
            const((Hp, 3 * Hp)), const((1, 3 * Hp)),             # wih1, bih1f
            const((Hp, 3 * Hp)), const((1, Hp)),                 # whh1, bhh1n
        ],
        out_specs=pl.BlockSpec((BB, Hp), lambda b, t: (b, 0)),
        scratch_shapes=[
            pltpu.VMEM((BB, Hp), jnp.float32),          # h carry, layer 0
            pltpu.VMEM((BB, Hp), jnp.float32),          # h carry, layer 1
            pltpu.VMEM((TB, BB, 3 * Hp), jnp.float32),  # per-block gi0
        ],
    )

    # Scoped-VMEM budget: streamed x / lens / out (x2 double buffers) +
    # weights/biases (x2, default double-buffer) + scratch, with 2x headroom.
    weight_bytes = 2 * ((D + 3 * Hp) * 3 * Hp * 2 + (2 * 3 * Hp + 2 * Hp) * 4)
    stream_bytes = 2 * (TB * BB * D * 2 + BB * 4 + BB * Hp * 4)
    scratch_bytes = (2 * BB * Hp + TB * BB * 3 * Hp) * 4
    vmem_limit = int(min(max(2 * (weight_bytes + stream_bytes + scratch_bytes),
                             32 * 1024 * 1024), 64 * 1024 * 1024))

    out_p = pl.pallas_call(
        gru_seq_kernel,
        out_shape=jax.ShapeDtypeStruct((Bp, Hp), jnp.float32),
        grid_spec=grid_spec,
        compiler_params=pltpu.CompilerParams(
            dimension_semantics=("parallel", "arbitrary"),
            vmem_limit_bytes=vmem_limit),
    )(x_tm, lens, wih0, bih0f, whh0, bhh0n, wih1, bih1f, whh1, bhh1n)

    return out_p[:B, :H]


# ---------------------------------------------------------------------------
# Pure-JAX f32 reference (same packed-sequence masked-carry semantics)
# ---------------------------------------------------------------------------
def sequence_model_ref(x, lengths, params):
    B, T, D = x.shape
    H = params["whh0"].shape[1]

    def cell(x_t, h, wih, whh, bih, bhh):
        gi = x_t @ wih.T + bih
        gh = h @ whh.T + bhh
        i_r, i_z, i_n = jnp.split(gi, 3, axis=-1)
        h_r, h_z, h_n = jnp.split(gh, 3, axis=-1)
        r = jax.nn.sigmoid(i_r + h_r)
        z = jax.nn.sigmoid(i_z + h_z)
        n = jnp.tanh(i_n + r * h_n)
        return (1.0 - z) * n + z * h

    def step(carry, t):
        h0, h1 = carry
        x_t = x[:, t, :]
        m = (t < lengths)[:, None]
        h0n = cell(x_t, h0, params["wih0"], params["whh0"],
                   params["bih0"], params["bhh0"])
        h0 = jnp.where(m, h0n, h0)
        h1n = cell(h0, h1, params["wih1"], params["whh1"],
                   params["bih1"], params["bhh1"])
        h1 = jnp.where(m, h1n, h1)
        return (h0, h1), None

    init = (jnp.zeros((B, H), jnp.float32), jnp.zeros((B, H), jnp.float32))
    (_, h1), _ = jax.lax.scan(step, init, jnp.arange(T))
    return h1


# ---------------------------------------------------------------------------
# Deterministic parameter init (PyTorch GRU default: U(-1/sqrt(H), 1/sqrt(H)))
# ---------------------------------------------------------------------------
def init_params(key, input_dim, hidden_dim):
    k = 1.0 / np.sqrt(hidden_dim)
    keys = jax.random.split(key, 8)
    u = lambda kk, shape: jax.random.uniform(kk, shape, jnp.float32, -k, k)
    return {
        "wih0": u(keys[0], (3 * hidden_dim, input_dim)),
        "whh0": u(keys[1], (3 * hidden_dim, hidden_dim)),
        "bih0": u(keys[2], (3 * hidden_dim,)),
        "bhh0": u(keys[3], (3 * hidden_dim,)),
        "wih1": u(keys[4], (3 * hidden_dim, hidden_dim)),
        "whh1": u(keys[5], (3 * hidden_dim, hidden_dim)),
        "bih1": u(keys[6], (3 * hidden_dim,)),
        "bhh1": u(keys[7], (3 * hidden_dim,)),
    }


if __name__ == "__main__":
    B, T, D, H = 4, 16, 32, 32

    key = jax.random.PRNGKey(0)
    kx, kp = jax.random.split(key)
    x = jax.random.normal(kx, (B, T, D), dtype=jnp.float32)
    lengths = jnp.array([16, 11, 5, 9], dtype=jnp.int32)   # un-padded lengths
    params = init_params(kp, D, H)

    # time_block=8 -> 2 time blocks: exercises the carry across grid steps.
    out = sequence_model_forward(x, lengths, params, time_block=8)
    out = jax.block_until_ready(out)
    ref = jax.block_until_ready(sequence_model_ref(x, lengths, params))
    assert out.shape == (B, H)
    # bf16 MXU operands (f32 accumulation) -> loosened tolerance vs f32 ref.
    np.testing.assert_allclose(np.asarray(out), np.asarray(ref),
                               rtol=2e-2, atol=4e-2)

    # Second config: exercises the batch-parallel grid axis (2 batch blocks).
    B2 = 12
    x2 = jax.random.normal(jax.random.PRNGKey(1), (B2, T, D), dtype=jnp.float32)
    lengths2 = jnp.array([16, 3, 7, 12, 1, 9, 16, 5, 8, 2, 14, 6],
                         dtype=jnp.int32)
    out2 = jax.block_until_ready(
        sequence_model_forward(x2, lengths2, params,
                               time_block=8, batch_block=8))
    ref2 = jax.block_until_ready(sequence_model_ref(x2, lengths2, params))
    np.testing.assert_allclose(np.asarray(out2), np.asarray(ref2),
                               rtol=2e-2, atol=4e-2)

    print("KERNEL_OK")
</pallas_src>

<mosaic_0001>
module attributes {stable_mosaic.version = 11 : i64} {
  func.func @gru_seq_kernel(%arg0: i32, %arg1: i32, %arg2: memref<8x8x32xbf16, #tpu.memory_space<vmem>>, %arg3: memref<8x1xi32, #tpu.memory_space<vmem>>, %arg4: memref<32x384xbf16, #tpu.memory_space<vmem>>, %arg5: memref<1x384xf32, #tpu.memory_space<vmem>>, %arg6: memref<128x384xbf16, #tpu.memory_space<vmem>>, %arg7: memref<1x128xf32, #tpu.memory_space<vmem>>, %arg8: memref<128x384xbf16, #tpu.memory_space<vmem>>, %arg9: memref<1x384xf32, #tpu.memory_space<vmem>>, %arg10: memref<128x384xbf16, #tpu.memory_space<vmem>>, %arg11: memref<1x128xf32, #tpu.memory_space<vmem>>, %arg12: memref<8x128xf32, #tpu.memory_space<vmem>>, %arg13: memref<8x128xf32, #tpu.memory_space<vmem>>, %arg14: memref<8x128xf32, #tpu.memory_space<vmem>>, %arg15: memref<8x8x384xf32, #tpu.memory_space<vmem>>) attributes {dimension_semantics = [#tpu.dimension_semantics<parallel>, #tpu.dimension_semantics<arbitrary>], iteration_bounds = array<i64: 1, 2>, scalar_prefetch = 0 : i64, scratch_operands = 3 : i64, tpu.core_type = #tpu.core_type<tc>, window_params = [{transform_indices = @transform_0, window_bounds = array<i64: 8, 8, 32>}, {transform_indices = @transform_1, window_bounds = array<i64: 8, 1>}, {pipeline_mode = #tpu.pipeline_mode<synchronous>, transform_indices = @transform_2, window_bounds = array<i64: 32, 384>}, {pipeline_mode = #tpu.pipeline_mode<synchronous>, transform_indices = @transform_3, window_bounds = array<i64: 1, 384>}, {pipeline_mode = #tpu.pipeline_mode<synchronous>, transform_indices = @transform_4, window_bounds = array<i64: 128, 384>}, {pipeline_mode = #tpu.pipeline_mode<synchronous>, transform_indices = @transform_5, window_bounds = array<i64: 1, 128>}, {pipeline_mode = #tpu.pipeline_mode<synchronous>, transform_indices = @transform_6, window_bounds = array<i64: 128, 384>}, {pipeline_mode = #tpu.pipeline_mode<synchronous>, transform_indices = @transform_7, window_bounds = array<i64: 1, 384>}, {pipeline_mode = #tpu.pipeline_mode<synchronous>, transform_indices = @transform_8, window_bounds = array<i64: 128, 384>}, {pipeline_mode = #tpu.pipeline_mode<synchronous>, transform_indices = @transform_9, window_bounds = array<i64: 1, 128>}, {transform_indices = @transform_10, window_bounds = array<i64: 8, 128>}]} {
    %c0_i32 = arith.constant 0 : i32
    %0 = arith.cmpi eq, %arg1, %c0_i32 : i32
    %1 = arith.extui %0 : i1 to i32
    %c0_i32_0 = arith.constant 0 : i32
    %2 = arith.cmpi ne, %1, %c0_i32_0 : i32
    scf.if %2 {
      %cst_150 = arith.constant 0.000000e+00 : f32
      %674 = vector.broadcast %cst_150 : f32 to vector<8x128xf32>
      %c0_151 = arith.constant 0 : index
      %c0_152 = arith.constant 0 : index
      %675 = vector.load %arg13[%c0_151, %c0_152] : memref<8x128xf32, #tpu.memory_space<vmem>>, vector<8x128xf32>
      tpu.vector_store %arg13[%c0_151, %c0_152], %674 {strides = array<i32>} : memref<8x128xf32, #tpu.memory_space<vmem>>, vector<8x128xf32>,
      %cst_153 = arith.constant 0.000000e+00 : f32
      %676 = vector.broadcast %cst_153 : f32 to vector<8x128xf32>
      %c0_154 = arith.constant 0 : index
      %c0_155 = arith.constant 0 : index
      %677 = vector.load %arg14[%c0_154, %c0_155] : memref<8x128xf32, #tpu.memory_space<vmem>>, vector<8x128xf32>
      tpu.vector_store %arg14[%c0_154, %c0_155], %676 {strides = array<i32>} : memref<8x128xf32, #tpu.memory_space<vmem>>, vector<8x128xf32>,
    } else {
    }
    %c0 = arith.constant 0 : index
    %c0_1 = arith.constant 0 : index
    %3 = vector.load %arg4[%c0, %c0_1] : memref<32x384xbf16, #tpu.memory_space<vmem>>, vector<32x384xbf16>
    %c0_2 = arith.constant 0 : index
    %c0_3 = arith.constant 0 : index
    %4 = vector.load %arg5[%c0_2, %c0_3] : memref<1x384xf32, #tpu.memory_space<vmem>>, vector<1x384xf32>
    %c0_4 = arith.constant 0 : index
    %c0_5 = arith.constant 0 : index
    %5 = vector.load %arg6[%c0_4, %c0_5] : memref<128x384xbf16, #tpu.memory_space<vmem>>, vector<128x384xbf16>
    %c0_6 = arith.constant 0 : index
    %c0_7 = arith.constant 0 : index
    %6 = vector.load %arg7[%c0_6, %c0_7] : memref<1x128xf32, #tpu.memory_space<vmem>>, vector<1x128xf32>
    %c0_8 = arith.constant 0 : index
    %c0_9 = arith.constant 0 : index
    %7 = vector.load %arg8[%c0_8, %c0_9] : memref<128x384xbf16, #tpu.memory_space<vmem>>, vector<128x384xbf16>
    %c0_10 = arith.constant 0 : index
    %c0_11 = arith.constant 0 : index
    %8 = vector.load %arg9[%c0_10, %c0_11] : memref<1x384xf32, #tpu.memory_space<vmem>>, vector<1x384xf32>
    %c0_12 = arith.constant 0 : index
    %c0_13 = arith.constant 0 : index
    %9 = vector.load %arg10[%c0_12, %c0_13] : memref<128x384xbf16, #tpu.memory_space<vmem>>, vector<128x384xbf16>
    %c0_14 = arith.constant 0 : index
    %c0_15 = arith.constant 0 : index
    %10 = vector.load %arg11[%c0_14, %c0_15] : memref<1x128xf32, #tpu.memory_space<vmem>>, vector<1x128xf32>
    %c0_16 = arith.constant 0 : index
    %c0_17 = arith.constant 0 : index
    %11 = vector.load %arg3[%c0_16, %c0_17] : memref<8x1xi32, #tpu.memory_space<vmem>>, vector<8x1xi32>
    %c8_i32 = arith.constant 8 : i32
    %12 = arith.muli %arg1, %c8_i32 : i32
    %c0_i32_18 = arith.constant 0 : i32
    %13 = arith.index_cast %c0_i32_18 : i32 to index
    %c0_19 = arith.constant 0 : index
    %c0_20 = arith.constant 0 : index
    %14 = vector.load %arg2[%13, %c0_19, %c0_20] : memref<8x8x32xbf16, #tpu.memory_space<vmem>>, vector<1x8x32xbf16>
    %15 = vector.shape_cast %14 : vector<1x8x32xbf16> to vector<8x32xbf16>
    %cst = arith.constant dense<0.000000e+00> : vector<8x384xf32>
    %16 = tpu.matmul %15, %3, %cst {dimension_numbers = #tpu.dot_dimension_numbers<[1], [0], [0], [1], [0, 0, 1, 1], [], []>} : vector<8x32xbf16>, vector<32x384xbf16>, vector<8x384xf32> -> vector<8x384xf32>
    %17 = vector.broadcast %4 : vector<1x384xf32> to vector<8x384xf32>
    %18 = arith.addf %16, %17 : vector<8x384xf32>
    %19 = arith.index_cast %c0_i32_18 : i32 to index
    %c0_21 = arith.constant 0 : index
    %c0_22 = arith.constant 0 : index
    %20 = vector.load %arg15[%19, %c0_21, %c0_22] : memref<8x8x384xf32, #tpu.memory_space<vmem>>, vector<1x8x384xf32>
    %21 = vector.shape_cast %20 : vector<1x8x384xf32> to vector<8x384xf32>
    %22 = vector.shape_cast %18 : vector<8x384xf32> to vector<1x8x384xf32>
    tpu.vector_store %arg15[%19, %c0_21, %c0_22], %22 {strides = array<i32>} : memref<8x8x384xf32, #tpu.memory_space<vmem>>, vector<1x8x384xf32>,
    %c1_i32 = arith.constant 1 : i32
    %23 = arith.index_cast %c1_i32 : i32 to index
    %c0_23 = arith.constant 0 : index
    %c0_24 = arith.constant 0 : index
    %24 = vector.load %arg2[%23, %c0_23, %c0_24] : memref<8x8x32xbf16, #tpu.memory_space<vmem>>, vector<1x8x32xbf16>
    %25 = vector.shape_cast %24 : vector<1x8x32xbf16> to vector<8x32xbf16>
    %cst_25 = arith.constant dense<0.000000e+00> : vector<8x384xf32>
    %26 = tpu.matmul %25, %3, %cst_25 {dimension_numbers = #tpu.dot_dimension_numbers<[1], [0], [0], [1], [0, 0, 1, 1], [], []>} : vector<8x32xbf16>, vector<32x384xbf16>, vector<8x384xf32> -> vector<8x384xf32>
    %27 = vector.broadcast %4 : vector<1x384xf32> to vector<8x384xf32>
    %28 = arith.addf %26, %27 : vector<8x384xf32>
    %29 = arith.index_cast %c1_i32 : i32 to index
    %c0_26 = arith.constant 0 : index
    %c0_27 = arith.constant 0 : index
    %30 = vector.load %arg15[%29, %c0_26, %c0_27] : memref<8x8x384xf32, #tpu.memory_space<vmem>>, vector<1x8x384xf32>
    %31 = vector.shape_cast %30 : vector<1x8x384xf32> to vector<8x384xf32>
    %32 = vector.shape_cast %28 : vector<8x384xf32> to vector<1x8x384xf32>
    tpu.vector_store %arg15[%29, %c0_26, %c0_27], %32 {strides = array<i32>} : memref<8x8x384xf32, #tpu.memory_space<vmem>>, vector<1x8x384xf32>,
    %c2_i32 = arith.constant 2 : i32
    %33 = arith.index_cast %c2_i32 : i32 to index
    %c0_28 = arith.constant 0 : index
    %c0_29 = arith.constant 0 : index
    %34 = vector.load %arg2[%33, %c0_28, %c0_29] : memref<8x8x32xbf16, #tpu.memory_space<vmem>>, vector<1x8x32xbf16>
    %35 = vector.shape_cast %34 : vector<1x8x32xbf16> to vector<8x32xbf16>
    %cst_30 = arith.constant dense<0.000000e+00> : vector<8x384xf32>
    %36 = tpu.matmul %35, %3, %cst_30 {dimension_numbers = #tpu.dot_dimension_numbers<[1], [0], [0], [1], [0, 0, 1, 1], [], []>} : vector<8x32xbf16>, vector<32x384xbf16>, vector<8x384xf32> -> vector<8x384xf32>
    %37 = vector.broadcast %4 : vector<1x384xf32> to vector<8x384xf32>
    %38 = arith.addf %36, %37 : vector<8x384xf32>
    %39 = arith.index_cast %c2_i32 : i32 to index
    %c0_31 = arith.constant 0 : index
    %c0_32 = arith.constant 0 : index
    %40 = vector.load %arg15[%39, %c0_31, %c0_32] : memref<8x8x384xf32, #tpu.memory_space<vmem>>, vector<1x8x384xf32>
    %41 = vector.shape_cast %40 : vector<1x8x384xf32> to vector<8x384xf32>
    %42 = vector.shape_cast %38 : vector<8x384xf32> to vector<1x8x384xf32>
    tpu.vector_store %arg15[%39, %c0_31, %c0_32], %42 {strides = array<i32>} : memref<8x8x384xf32, #tpu.memory_space<vmem>>, vector<1x8x384xf32>,
    %c3_i32 = arith.constant 3 : i32
    %43 = arith.index_cast %c3_i32 : i32 to index
    %c0_33 = arith.constant 0 : index
    %c0_34 = arith.constant 0 : index
    %44 = vector.load %arg2[%43, %c0_33, %c0_34] : memref<8x8x32xbf16, #tpu.memory_space<vmem>>, vector<1x8x32xbf16>
    %45 = vector.shape_cast %44 : vector<1x8x32xbf16> to vector<8x32xbf16>
    %cst_35 = arith.constant dense<0.000000e+00> : vector<8x384xf32>
    %46 = tpu.matmul %45, %3, %cst_35 {dimension_numbers = #tpu.dot_dimension_numbers<[1], [0], [0], [1], [0, 0, 1, 1], [], []>} : vector<8x32xbf16>, vector<32x384xbf16>, vector<8x384xf32> -> vector<8x384xf32>
    %47 = vector.broadcast %4 : vector<1x384xf32> to vector<8x384xf32>
    %48 = arith.addf %46, %47 : vector<8x384xf32>
    %49 = arith.index_cast %c3_i32 : i32 to index
    %c0_36 = arith.constant 0 : index
    %c0_37 = arith.constant 0 : index
    %50 = vector.load %arg15[%49, %c0_36, %c0_37] : memref<8x8x384xf32, #tpu.memory_space<vmem>>, vector<1x8x384xf32>
    %51 = vector.shape_cast %50 : vector<1x8x384xf32> to vector<8x384xf32>
    %52 = vector.shape_cast %48 : vector<8x384xf32> to vector<1x8x384xf32>
    tpu.vector_store %arg15[%49, %c0_36, %c0_37], %52 {strides = array<i32>} : memref<8x8x384xf32, #tpu.memory_space<vmem>>, vector<1x8x384xf32>,
    %c4_i32 = arith.constant 4 : i32
    %53 = arith.index_cast %c4_i32 : i32 to index
    %c0_38 = arith.constant 0 : index
    %c0_39 = arith.constant 0 : index
    %54 = vector.load %arg2[%53, %c0_38, %c0_39] : memref<8x8x32xbf16, #tpu.memory_space<vmem>>, vector<1x8x32xbf16>
    %55 = vector.shape_cast %54 : vector<1x8x32xbf16> to vector<8x32xbf16>
    %cst_40 = arith.constant dense<0.000000e+00> : vector<8x384xf32>
    %56 = tpu.matmul %55, %3, %cst_40 {dimension_numbers = #tpu.dot_dimension_numbers<[1], [0], [0], [1], [0, 0, 1, 1], [], []>} : vector<8x32xbf16>, vector<32x384xbf16>, vector<8x384xf32> -> vector<8x384xf32>
    %57 = vector.broadcast %4 : vector<1x384xf32> to vector<8x384xf32>
    %58 = arith.addf %56, %57 : vector<8x384xf32>
    %59 = arith.index_cast %c4_i32 : i32 to index
    %c0_41 = arith.constant 0 : index
    %c0_42 = arith.constant 0 : index
    %60 = vector.load %arg15[%59, %c0_41, %c0_42] : memref<8x8x384xf32, #tpu.memory_space<vmem>>, vector<1x8x384xf32>
    %61 = vector.shape_cast %60 : vector<1x8x384xf32> to vector<8x384xf32>
    %62 = vector.shape_cast %58 : vector<8x384xf32> to vector<1x8x384xf32>
    tpu.vector_store %arg15[%59, %c0_41, %c0_42], %62 {strides = array<i32>} : memref<8x8x384xf32, #tpu.memory_space<vmem>>, vector<1x8x384xf32>,
    %c5_i32 = arith.constant 5 : i32
    %63 = arith.index_cast %c5_i32 : i32 to index
    %c0_43 = arith.constant 0 : index
    %c0_44 = arith.constant 0 : index
    %64 = vector.load %arg2[%63, %c0_43, %c0_44] : memref<8x8x32xbf16, #tpu.memory_space<vmem>>, vector<1x8x32xbf16>
    %65 = vector.shape_cast %64 : vector<1x8x32xbf16> to vector<8x32xbf16>
    %cst_45 = arith.constant dense<0.000000e+00> : vector<8x384xf32>
    %66 = tpu.matmul %65, %3, %cst_45 {dimension_numbers = #tpu.dot_dimension_numbers<[1], [0], [0], [1], [0, 0, 1, 1], [], []>} : vector<8x32xbf16>, vector<32x384xbf16>, vector<8x384xf32> -> vector<8x384xf32>
    %67 = vector.broadcast %4 : vector<1x384xf32> to vector<8x384xf32>
    %68 = arith.addf %66, %67 : vector<8x384xf32>
    %69 = arith.index_cast %c5_i32 : i32 to index
    %c0_46 = arith.constant 0 : index
    %c0_47 = arith.constant 0 : index
    %70 = vector.load %arg15[%69, %c0_46, %c0_47] : memref<8x8x384xf32, #tpu.memory_space<vmem>>, vector<1x8x384xf32>
    %71 = vector.shape_cast %70 : vector<1x8x384xf32> to vector<8x384xf32>
    %72 = vector.shape_cast %68 : vector<8x384xf32> to vector<1x8x384xf32>
    tpu.vector_store %arg15[%69, %c0_46, %c0_47], %72 {strides = array<i32>} : memref<8x8x384xf32, #tpu.memory_space<vmem>>, vector<1x8x384xf32>,
    %c6_i32 = arith.constant 6 : i32
    %73 = arith.index_cast %c6_i32 : i32 to index
    %c0_48 = arith.constant 0 : index
    %c0_49 = arith.constant 0 : index
    %74 = vector.load %arg2[%73, %c0_48, %c0_49] : memref<8x8x32xbf16, #tpu.memory_space<vmem>>, vector<1x8x32xbf16>
    %75 = vector.shape_cast %74 : vector<1x8x32xbf16> to vector<8x32xbf16>
    %cst_50 = arith.constant dense<0.000000e+00> : vector<8x384xf32>
    %76 = tpu.matmul %75, %3, %cst_50 {dimension_numbers = #tpu.dot_dimension_numbers<[1], [0], [0], [1], [0, 0, 1, 1], [], []>} : vector<8x32xbf16>, vector<32x384xbf16>, vector<8x384xf32> -> vector<8x384xf32>
    %77 = vector.broadcast %4 : vector<1x384xf32> to vector<8x384xf32>
    %78 = arith.addf %76, %77 : vector<8x384xf32>
    %79 = arith.index_cast %c6_i32 : i32 to index
    %c0_51 = arith.constant 0 : index
    %c0_52 = arith.constant 0 : index
    %80 = vector.load %arg15[%79, %c0_51, %c0_52] : memref<8x8x384xf32, #tpu.memory_space<vmem>>, vector<1x8x384xf32>
    %81 = vector.shape_cast %80 : vector<1x8x384xf32> to vector<8x384xf32>
    %82 = vector.shape_cast %78 : vector<8x384xf32> to vector<1x8x384xf32>
    tpu.vector_store %arg15[%79, %c0_51, %c0_52], %82 {strides = array<i32>} : memref<8x8x384xf32, #tpu.memory_space<vmem>>, vector<1x8x384xf32>,
    %c7_i32 = arith.constant 7 : i32
    %83 = arith.index_cast %c7_i32 : i32 to index
    %c0_53 = arith.constant 0 : index
    %c0_54 = arith.constant 0 : index
    %84 = vector.load %arg2[%83, %c0_53, %c0_54] : memref<8x8x32xbf16, #tpu.memory_space<vmem>>, vector<1x8x32xbf16>
    %85 = vector.shape_cast %84 : vector<1x8x32xbf16> to vector<8x32xbf16>
    %cst_55 = arith.constant dense<0.000000e+00> : vector<8x384xf32>
    %86 = tpu.matmul %85, %3, %cst_55 {dimension_numbers = #tpu.dot_dimension_numbers<[1], [0], [0], [1], [0, 0, 1, 1], [], []>} : vector<8x32xbf16>, vector<32x384xbf16>, vector<8x384xf32> -> vector<8x384xf32>
    %87 = vector.broadcast %4 : vector<1x384xf32> to vector<8x384xf32>
    %88 = arith.addf %86, %87 : vector<8x384xf32>
    %89 = arith.index_cast %c7_i32 : i32 to index
    %c0_56 = arith.constant 0 : index
    %c0_57 = arith.constant 0 : index
    %90 = vector.load %arg15[%89, %c0_56, %c0_57] : memref<8x8x384xf32, #tpu.memory_space<vmem>>, vector<1x8x384xf32>
    %91 = vector.shape_cast %90 : vector<1x8x384xf32> to vector<8x384xf32>
    %92 = vector.shape_cast %88 : vector<8x384xf32> to vector<1x8x384xf32>
    tpu.vector_store %arg15[%89, %c0_56, %c0_57], %92 {strides = array<i32>} : memref<8x8x384xf32, #tpu.memory_space<vmem>>, vector<1x8x384xf32>,
    %c8_i32_58 = arith.constant 8 : i32
    %c0_59 = arith.constant 0 : index
    %c0_60 = arith.constant 0 : index
    %93 = vector.load %arg13[%c0_59, %c0_60] : memref<8x128xf32, #tpu.memory_space<vmem>>, vector<8x128xf32>
    %c0_61 = arith.constant 0 : index
    %c0_62 = arith.constant 0 : index
    %94 = vector.load %arg14[%c0_61, %c0_62] : memref<8x128xf32, #tpu.memory_space<vmem>>, vector<8x128xf32>
    %c0_i32_63 = arith.constant 0 : i32
    %95 = arith.truncf %93 : vector<8x128xf32> to vector<8x128xbf16>
    %cst_64 = arith.constant dense<0.000000e+00> : vector<8x384xf32>
    %96 = tpu.matmul %95, %5, %cst_64 {dimension_numbers = #tpu.dot_dimension_numbers<[1], [0], [0], [1], [0, 0, 1, 1], [], []>} : vector<8x128xbf16>, vector<128x384xbf16>, vector<8x384xf32> -> vector<8x384xf32>
    %97 = arith.truncf %94 : vector<8x128xf32> to vector<8x128xbf16>
    %cst_65 = arith.constant dense<0.000000e+00> : vector<8x384xf32>
    %98 = tpu.matmul %97, %9, %cst_65 {dimension_numbers = #tpu.dot_dimension_numbers<[1], [0], [0], [1], [0, 0, 1, 1], [], []>} : vector<8x128xbf16>, vector<128x384xbf16>, vector<8x384xf32> -> vector<8x384xf32>
    %99 = arith.index_cast %c0_i32_63 : i32 to index
    %c0_66 = arith.constant 0 : index
    %c0_67 = arith.constant 0 : index
    %100 = vector.load %arg15[%99, %c0_66, %c0_67] : memref<8x8x384xf32, #tpu.memory_space<vmem>>, vector<1x8x384xf32>
    %101 = vector.shape_cast %100 : vector<1x8x384xf32> to vector<8x384xf32>
    %102 = arith.addi %12, %c0_i32_63 : i32
    %103 = vector.broadcast %102 : i32 to vector<8x1xi32>
    %104 = arith.cmpi slt, %103, %11 : vector<8x1xi32>
    %105 = vector.extract_strided_slice %101 {offsets = [0, 0], sizes = [8, 128], strides = [1, 1]} : vector<8x384xf32> to vector<8x128xf32>
    %106 = vector.extract_strided_slice %96 {offsets = [0, 0], sizes = [8, 128], strides = [1, 1]} : vector<8x384xf32> to vector<8x128xf32>
    %107 = arith.addf %105, %106 : vector<8x128xf32>
    %108 = arith.negf %107 : vector<8x128xf32>
    %109 = math.exp %108 : vector<8x128xf32>
    %cst_68 = arith.constant 1.000000e+00 : f32
    %110 = vector.broadcast %cst_68 : f32 to vector<8x128xf32>
    %111 = arith.addf %110, %109 : vector<8x128xf32>
    %112 = arith.divf %110, %111 : vector<8x128xf32>
    %113 = vector.extract_strided_slice %101 {offsets = [0, 128], sizes = [8, 128], strides = [1, 1]} : vector<8x384xf32> to vector<8x128xf32>
    %114 = vector.extract_strided_slice %96 {offsets = [0, 128], sizes = [8, 128], strides = [1, 1]} : vector<8x384xf32> to vector<8x128xf32>
    %115 = arith.addf %113, %114 : vector<8x128xf32>
    %116 = arith.negf %115 : vector<8x128xf32>
    %117 = math.exp %116 : vector<8x128xf32>
    %cst_69 = arith.constant 1.000000e+00 : f32
    %118 = vector.broadcast %cst_69 : f32 to vector<8x128xf32>
    %119 = arith.addf %118, %117 : vector<8x128xf32>
    %120 = arith.divf %118, %119 : vector<8x128xf32>
    %121 = vector.extract_strided_slice %101 {offsets = [0, 256], sizes = [8, 128], strides = [1, 1]} : vector<8x384xf32> to vector<8x128xf32>
    %122 = vector.extract_strided_slice %96 {offsets = [0, 256], sizes = [8, 128], strides = [1, 1]} : vector<8x384xf32> to vector<8x128xf32>
    %123 = vector.broadcast %6 : vector<1x128xf32> to vector<8x128xf32>
    %124 = arith.addf %122, %123 : vector<8x128xf32>
    %125 = arith.mulf %112, %124 : vector<8x128xf32>
    %126 = arith.addf %121, %125 : vector<8x128xf32>
    %127 = math.tanh %126 : vector<8x128xf32>
    %128 = arith.subf %93, %127 : vector<8x128xf32>
    %129 = arith.mulf %120, %128 : vector<8x128xf32>
    %130 = arith.addf %127, %129 : vector<8x128xf32>
    %131 = vector.shape_cast %104 : vector<8x1xi1> to vector<8x1xi1>
    %132 = vector.broadcast %131 : vector<8x1xi1> to vector<8x128xi1>
    %133 = arith.select %132, %130, %93 : vector<8x128xi1>, vector<8x128xf32>
    %134 = arith.truncf %133 : vector<8x128xf32> to vector<8x128xbf16>
    %cst_70 = arith.constant dense<0.000000e+00> : vector<8x384xf32>
    %135 = tpu.matmul %134, %7, %cst_70 {dimension_numbers = #tpu.dot_dimension_numbers<[1], [0], [0], [1], [0, 0, 1, 1], [], []>} : vector<8x128xbf16>, vector<128x384xbf16>, vector<8x384xf32> -> vector<8x384xf32>
    %136 = vector.broadcast %8 : vector<1x384xf32> to vector<8x384xf32>
    %137 = arith.addf %135, %136 : vector<8x384xf32>
    %138 = vector.extract_strided_slice %137 {offsets = [0, 0], sizes = [8, 128], strides = [1, 1]} : vector<8x384xf32> to vector<8x128xf32>
    %139 = vector.extract_strided_slice %98 {offsets = [0, 0], sizes = [8, 128], strides = [1, 1]} : vector<8x384xf32> to vector<8x128xf32>
    %140 = arith.addf %138, %139 : vector<8x128xf32>
    %141 = arith.negf %140 : vector<8x128xf32>
    %142 = math.exp %141 : vector<8x128xf32>
    %cst_71 = arith.constant 1.000000e+00 : f32
    %143 = vector.broadcast %cst_71 : f32 to vector<8x128xf32>
    %144 = arith.addf %143, %142 : vector<8x128xf32>
    %145 = arith.divf %143, %144 : vector<8x128xf32>
    %146 = vector.extract_strided_slice %137 {offsets = [0, 128], sizes = [8, 128], strides = [1, 1]} : vector<8x384xf32> to vector<8x128xf32>
    %147 = vector.extract_strided_slice %98 {offsets = [0, 128], sizes = [8, 128], strides = [1, 1]} : vector<8x384xf32> to vector<8x128xf32>
    %148 = arith.addf %146, %147 : vector<8x128xf32>
    %149 = arith.negf %148 : vector<8x128xf32>
    %150 = math.exp %149 : vector<8x128xf32>
    %cst_72 = arith.constant 1.000000e+00 : f32
    %151 = vector.broadcast %cst_72 : f32 to vector<8x128xf32>
    %152 = arith.addf %151, %150 : vector<8x128xf32>
    %153 = arith.divf %151, %152 : vector<8x128xf32>
    %154 = vector.extract_strided_slice %137 {offsets = [0, 256], sizes = [8, 128], strides = [1, 1]} : vector<8x384xf32> to vector<8x128xf32>
    %155 = vector.extract_strided_slice %98 {offsets = [0, 256], sizes = [8, 128], strides = [1, 1]} : vector<8x384xf32> to vector<8x128xf32>
    %156 = vector.broadcast %10 : vector<1x128xf32> to vector<8x128xf32>
    %157 = arith.addf %155, %156 : vector<8x128xf32>
    %158 = arith.mulf %145, %157 : vector<8x128xf32>
    %159 = arith.addf %154, %158 : vector<8x128xf32>
    %160 = math.tanh %159 : vector<8x128xf32>
    %161 = arith.subf %94, %160 : vector<8x128xf32>
    %162 = arith.mulf %153, %161 : vector<8x128xf32>
    %163 = arith.addf %160, %162 : vector<8x128xf32>
    %164 = vector.shape_cast %104 : vector<8x1xi1> to vector<8x1xi1>
    %165 = vector.broadcast %164 : vector<8x1xi1> to vector<8x128xi1>
    %166 = arith.select %165, %163, %94 : vector<8x128xi1>, vector<8x128xf32>
    %c1_i32_73 = arith.constant 1 : i32
    %167 = arith.truncf %133 : vector<8x128xf32> to vector<8x128xbf16>
    %cst_74 = arith.constant dense<0.000000e+00> : vector<8x384xf32>
    %168 = tpu.matmul %167, %5, %cst_74 {dimension_numbers = #tpu.dot_dimension_numbers<[1], [0], [0], [1], [0, 0, 1, 1], [], []>} : vector<8x128xbf16>, vector<128x384xbf16>, vector<8x384xf32> -> vector<8x384xf32>
    %169 = arith.truncf %166 : vector<8x128xf32> to vector<8x128xbf16>
    %cst_75 = arith.constant dense<0.000000e+00> : vector<8x384xf32>
    %170 = tpu.matmul %169, %9, %cst_75 {dimension_numbers = #tpu.dot_dimension_numbers<[1], [0], [0], [1], [0, 0, 1, 1], [], []>} : vector<8x128xbf16>, vector<128x384xbf16>, vector<8x384xf32> -> vector<8x384xf32>
    %171 = arith.index_cast %c1_i32_73 : i32 to index
    %c0_76 = arith.constant 0 : index
    %c0_77 = arith.constant 0 : index
    %172 = vector.load %arg15[%171, %c0_76, %c0_77] : memref<8x8x384xf32, #tpu.memory_space<vmem>>, vector<1x8x384xf32>
    %173 = vector.shape_cast %172 : vector<1x8x384xf32> to vector<8x384xf32>
    %174 = arith.addi %12, %c1_i32_73 : i32
    %175 = vector.broadcast %174 : i32 to vector<8x1xi32>
    %176 = arith.cmpi slt, %175, %11 : vector<8x1xi32>
    %177 = vector.extract_strided_slice %173 {offsets = [0, 0], sizes = [8, 128], strides = [1, 1]} : vector<8x384xf32> to vector<8x128xf32>
    %178 = vector.extract_strided_slice %168 {offsets = [0, 0], sizes = [8, 128], strides = [1, 1]} : vector<8x384xf32> to vector<8x128xf32>
    %179 = arith.addf %177, %178 : vector<8x128xf32>
    %180 = arith.negf %179 : vector<8x128xf32>
    %181 = math.exp %180 : vector<8x128xf32>
    %cst_78 = arith.constant 1.000000e+00 : f32
    %182 = vector.broadcast %cst_78 : f32 to vector<8x128xf32>
    %183 = arith.addf %182, %181 : vector<8x128xf32>
    %184 = arith.divf %182, %183 : vector<8x128xf32>
    %185 = vector.extract_strided_slice %173 {offsets = [0, 128], sizes = [8, 128], strides = [1, 1]} : vector<8x384xf32> to vector<8x128xf32>
    %186 = vector.extract_strided_slice %168 {offsets = [0, 128], sizes = [8, 128], strides = [1, 1]} : vector<8x384xf32> to vector<8x128xf32>
    %187 = arith.addf %185, %186 : vector<8x128xf32>
    %188 = arith.negf %187 : vector<8x128xf32>
    %189 = math.exp %188 : vector<8x128xf32>
    %cst_79 = arith.constant 1.000000e+00 : f32
    %190 = vector.broadcast %cst_79 : f32 to vector<8x128xf32>
    %191 = arith.addf %190, %189 : vector<8x128xf32>
    %192 = arith.divf %190, %191 : vector<8x128xf32>
    %193 = vector.extract_strided_slice %173 {offsets = [0, 256], sizes = [8, 128], strides = [1, 1]} : vector<8x384xf32> to vector<8x128xf32>
    %194 = vector.extract_strided_slice %168 {offsets = [0, 256], sizes = [8, 128], strides = [1, 1]} : vector<8x384xf32> to vector<8x128xf32>
    %195 = vector.broadcast %6 : vector<1x128xf32> to vector<8x128xf32>
    %196 = arith.addf %194, %195 : vector<8x128xf32>
    %197 = arith.mulf %184, %196 : vector<8x128xf32>
    %198 = arith.addf %193, %197 : vector<8x128xf32>
    %199 = math.tanh %198 : vector<8x128xf32>
    %200 = arith.subf %133, %199 : vector<8x128xf32>
    %201 = arith.mulf %192, %200 : vector<8x128xf32>
    %202 = arith.addf %199, %201 : vector<8x128xf32>
    %203 = vector.shape_cast %176 : vector<8x1xi1> to vector<8x1xi1>
    %204 = vector.broadcast %203 : vector<8x1xi1> to vector<8x128xi1>
    %205 = arith.select %204, %202, %133 : vector<8x128xi1>, vector<8x128xf32>
    %206 = arith.truncf %205 : vector<8x128xf32> to vector<8x128xbf16>
    %cst_80 = arith.constant dense<0.000000e+00> : vector<8x384xf32>
    %207 = tpu.matmul %206, %7, %cst_80 {dimension_numbers = #tpu.dot_dimension_numbers<[1], [0], [0], [1], [0, 0, 1, 1], [], []>} : vector<8x128xbf16>, vector<128x384xbf16>, vector<8x384xf32> -> vector<8x384xf32>
    %208 = vector.broadcast %8 : vector<1x384xf32> to vector<8x384xf32>
    %209 = arith.addf %207, %208 : vector<8x384xf32>
    %210 = vector.extract_strided_slice %209 {offsets = [0, 0], sizes = [8, 128], strides = [1, 1]} : vector<8x384xf32> to vector<8x128xf32>
    %211 = vector.extract_strided_slice %170 {offsets = [0, 0], sizes = [8, 128], strides = [1, 1]} : vector<8x384xf32> to vector<8x128xf32>
    %212 = arith.addf %210, %211 : vector<8x128xf32>
    %213 = arith.negf %212 : vector<8x128xf32>
    %214 = math.exp %213 : vector<8x128xf32>
    %cst_81 = arith.constant 1.000000e+00 : f32
    %215 = vector.broadcast %cst_81 : f32 to vector<8x128xf32>
    %216 = arith.addf %215, %214 : vector<8x128xf32>
    %217 = arith.divf %215, %216 : vector<8x128xf32>
    %218 = vector.extract_strided_slice %209 {offsets = [0, 128], sizes = [8, 128], strides = [1, 1]} : vector<8x384xf32> to vector<8x128xf32>
    %219 = vector.extract_strided_slice %170 {offsets = [0, 128], sizes = [8, 128], strides = [1, 1]} : vector<8x384xf32> to vector<8x128xf32>
    %220 = arith.addf %218, %219 : vector<8x128xf32>
    %221 = arith.negf %220 : vector<8x128xf32>
    %222 = math.exp %221 : vector<8x128xf32>
    %cst_82 = arith.constant 1.000000e+00 : f32
    %223 = vector.broadcast %cst_82 : f32 to vector<8x128xf32>
    %224 = arith.addf %223, %222 : vector<8x128xf32>
    %225 = arith.divf %223, %224 : vector<8x128xf32>
    %226 = vector.extract_strided_slice %209 {offsets = [0, 256], sizes = [8, 128], strides = [1, 1]} : vector<8x384xf32> to vector<8x128xf32>
    %227 = vector.extract_strided_slice %170 {offsets = [0, 256], sizes = [8, 128], strides = [1, 1]} : vector<8x384xf32> to vector<8x128xf32>
    %228 = vector.broadcast %10 : vector<1x128xf32> to vector<8x128xf32>
    %229 = arith.addf %227, %228 : vector<8x128xf32>
    %230 = arith.mulf %217, %229 : vector<8x128xf32>
    %231 = arith.addf %226, %230 : vector<8x128xf32>
    %232 = math.tanh %231 : vector<8x128xf32>
    %233 = arith.subf %166, %232 : vector<8x128xf32>
    %234 = arith.mulf %225, %233 : vector<8x128xf32>
    %235 = arith.addf %232, %234 : vector<8x128xf32>
    %236 = vector.shape_cast %176 : vector<8x1xi1> to vector<8x1xi1>
    %237 = vector.broadcast %236 : vector<8x1xi1> to vector<8x128xi1>
    %238 = arith.select %237, %235, %166 : vector<8x128xi1>, vector<8x128xf32>
    %c2_i32_83 = arith.constant 2 : i32
    %239 = arith.truncf %205 : vector<8x128xf32> to vector<8x128xbf16>
    %cst_84 = arith.constant dense<0.000000e+00> : vector<8x384xf32>
    %240 = tpu.matmul %239, %5, %cst_84 {dimension_numbers = #tpu.dot_dimension_numbers<[1], [0], [0], [1], [0, 0, 1, 1], [], []>} : vector<8x128xbf16>, vector<128x384xbf16>, vector<8x384xf32> -> vector<8x384xf32>
    %241 = arith.truncf %238 : vector<8x128xf32> to vector<8x128xbf16>
    %cst_85 = arith.constant dense<0.000000e+00> : vector<8x384xf32>
    %242 = tpu.matmul %241, %9, %cst_85 {dimension_numbers = #tpu.dot_dimension_numbers<[1], [0], [0], [1], [0, 0, 1, 1], [], []>} : vector<8x128xbf16>, vector<128x384xbf16>, vector<8x384xf32> -> vector<8x384xf32>
    %243 = arith.index_cast %c2_i32_83 : i32 to index
    %c0_86 = arith.constant 0 : index
    %c0_87 = arith.constant 0 : index
    %244 = vector.load %arg15[%243, %c0_86, %c0_87] : memref<8x8x384xf32, #tpu.memory_space<vmem>>, vector<1x8x384xf32>
    %245 = vector.shape_cast %244 : vector<1x8x384xf32> to vector<8x384xf32>
    %246 = arith.addi %12, %c2_i32_83 : i32
    %247 = vector.broadcast %246 : i32 to vector<8x1xi32>
    %248 = arith.cmpi slt, %247, %11 : vector<8x1xi32>
    %249 = vector.extract_strided_slice %245 {offsets = [0, 0], sizes = [8, 128], strides = [1, 1]} : vector<8x384xf32> to vector<8x128xf32>
    %250 = vector.extract_strided_slice %240 {offsets = [0, 0], sizes = [8, 128], strides = [1, 1]} : vector<8x384xf32> to vector<8x128xf32>
    %251 = arith.addf %249, %250 : vector<8x128xf32>
    %252 = arith.negf %251 : vector<8x128xf32>
    %253 = math.exp %252 : vector<8x128xf32>
    %cst_88 = arith.constant 1.000000e+00 : f32
    %254 = vector.broadcast %cst_88 : f32 to vector<8x128xf32>
    %255 = arith.addf %254, %253 : vector<8x128xf32>
    %256 = arith.divf %254, %255 : vector<8x128xf32>
    %257 = vector.extract_strided_slice %245 {offsets = [0, 128], sizes = [8, 128], strides = [1, 1]} : vector<8x384xf32> to vector<8x128xf32>
    %258 = vector.extract_strided_slice %240 {offsets = [0, 128], sizes = [8, 128], strides = [1, 1]} : vector<8x384xf32> to vector<8x128xf32>
    %259 = arith.addf %257, %258 : vector<8x128xf32>
    %260 = arith.negf %259 : vector<8x128xf32>
    %261 = math.exp %260 : vector<8x128xf32>
    %cst_89 = arith.constant 1.000000e+00 : f32
    %262 = vector.broadcast %cst_89 : f32 to vector<8x128xf32>
    %263 = arith.addf %262, %261 : vector<8x128xf32>
    %264 = arith.divf %262, %263 : vector<8x128xf32>
    %265 = vector.extract_strided_slice %245 {offsets = [0, 256], sizes = [8, 128], strides = [1, 1]} : vector<8x384xf32> to vector<8x128xf32>
    %266 = vector.extract_strided_slice %240 {offsets = [0, 256], sizes = [8, 128], strides = [1, 1]} : vector<8x384xf32> to vector<8x128xf32>
    %267 = vector.broadcast %6 : vector<1x128xf32> to vector<8x128xf32>
    %268 = arith.addf %266, %267 : vector<8x128xf32>
    %269 = arith.mulf %256, %268 : vector<8x128xf32>
    %270 = arith.addf %265, %269 : vector<8x128xf32>
    %271 = math.tanh %270 : vector<8x128xf32>
    %272 = arith.subf %205, %271 : vector<8x128xf32>
    %273 = arith.mulf %264, %272 : vector<8x128xf32>
    %274 = arith.addf %271, %273 : vector<8x128xf32>
    %275 = vector.shape_cast %248 : vector<8x1xi1> to vector<8x1xi1>
    %276 = vector.broadcast %275 : vector<8x1xi1> to vector<8x128xi1>
    %277 = arith.select %276, %274, %205 : vector<8x128xi1>, vector<8x128xf32>
    %278 = arith.truncf %277 : vector<8x128xf32> to vector<8x128xbf16>
    %cst_90 = arith.constant dense<0.000000e+00> : vector<8x384xf32>
    %279 = tpu.matmul %278, %7, %cst_90 {dimension_numbers = #tpu.dot_dimension_numbers<[1], [0], [0], [1], [0, 0, 1, 1], [], []>} : vector<8x128xbf16>, vector<128x384xbf16>, vector<8x384xf32> -> vector<8x384xf32>
    %280 = vector.broadcast %8 : vector<1x384xf32> to vector<8x384xf32>
    %281 = arith.addf %279, %280 : vector<8x384xf32>
    %282 = vector.extract_strided_slice %281 {offsets = [0, 0], sizes = [8, 128], strides = [1, 1]} : vector<8x384xf32> to vector<8x128xf32>
    %283 = vector.extract_strided_slice %242 {offsets = [0, 0], sizes = [8, 128], strides = [1, 1]} : vector<8x384xf32> to vector<8x128xf32>
    %284 = arith.addf %282, %283 : vector<8x128xf32>
    %285 = arith.negf %284 : vector<8x128xf32>
    %286 = math.exp %285 : vector<8x128xf32>
    %cst_91 = arith.constant 1.000000e+00 : f32
    %287 = vector.broadcast %cst_91 : f32 to vector<8x128xf32>
    %288 = arith.addf %287, %286 : vector<8x128xf32>
    %289 = arith.divf %287, %288 : vector<8x128xf32>
    %290 = vector.extract_strided_slice %281 {offsets = [0, 128], sizes = [8, 128], strides = [1, 1]} : vector<8x384xf32> to vector<8x128xf32>
    %291 = vector.extract_strided_slice %242 {offsets = [0, 128], sizes = [8, 128], strides = [1, 1]} : vector<8x384xf32> to vector<8x128xf32>
    %292 = arith.addf %290, %291 : vector<8x128xf32>
    %293 = arith.negf %292 : vector<8x128xf32>
    %294 = math.exp %293 : vector<8x128xf32>
    %cst_92 = arith.constant 1.000000e+00 : f32
    %295 = vector.broadcast %cst_92 : f32 to vector<8x128xf32>
    %296 = arith.addf %295, %294 : vector<8x128xf32>
    %297 = arith.divf %295, %296 : vector<8x128xf32>
    %298 = vector.extract_strided_slice %281 {offsets = [0, 256], sizes = [8, 128], strides = [1, 1]} : vector<8x384xf32> to vector<8x128xf32>
    %299 = vector.extract_strided_slice %242 {offsets = [0, 256], sizes = [8, 128], strides = [1, 1]} : vector<8x384xf32> to vector<8x128xf32>
    %300 = vector.broadcast %10 : vector<1x128xf32> to vector<8x128xf32>
    %301 = arith.addf %299, %300 : vector<8x128xf32>
    %302 = arith.mulf %289, %301 : vector<8x128xf32>
    %303 = arith.addf %298, %302 : vector<8x128xf32>
    %304 = math.tanh %303 : vector<8x128xf32>
    %305 = arith.subf %238, %304 : vector<8x128xf32>
    %306 = arith.mulf %297, %305 : vector<8x128xf32>
    %307 = arith.addf %304, %306 : vector<8x128xf32>
    %308 = vector.shape_cast %248 : vector<8x1xi1> to vector<8x1xi1>
    %309 = vector.broadcast %308 : vector<8x1xi1> to vector<8x128xi1>
    %310 = arith.select %309, %307, %238 : vector<8x128xi1>, vector<8x128xf32>
    %c3_i32_93 = arith.constant 3 : i32
    %311 = arith.truncf %277 : vector<8x128xf32> to vector<8x128xbf16>
    %cst_94 = arith.constant dense<0.000000e+00> : vector<8x384xf32>
    %312 = tpu.matmul %311, %5, %cst_94 {dimension_numbers = #tpu.dot_dimension_numbers<[1], [0], [0], [1], [0, 0, 1, 1], [], []>} : vector<8x128xbf16>, vector<128x384xbf16>, vector<8x384xf32> -> vector<8x384xf32>
    %313 = arith.truncf %310 : vector<8x128xf32> to vector<8x128xbf16>
    %cst_95 = arith.constant dense<0.000000e+00> : vector<8x384xf32>
    %314 = tpu.matmul %313, %9, %cst_95 {dimension_numbers = #tpu.dot_dimension_numbers<[1], [0], [0], [1], [0, 0, 1, 1], [], []>} : vector<8x128xbf16>, vector<128x384xbf16>, vector<8x384xf32> -> vector<8x384xf32>
    %315 = arith.index_cast %c3_i32_93 : i32 to index
    %c0_96 = arith.constant 0 : index
    %c0_97 = arith.constant 0 : index
    %316 = vector.load %arg15[%315, %c0_96, %c0_97] : memref<8x8x384xf32, #tpu.memory_space<vmem>>, vector<1x8x384xf32>
    %317 = vector.shape_cast %316 : vector<1x8x384xf32> to vector<8x384xf32>
    %318 = arith.addi %12, %c3_i32_93 : i32
    %319 = vector.broadcast %318 : i32 to vector<8x1xi32>
    %320 = arith.cmpi slt, %319, %11 : vector<8x1xi32>
    %321 = vector.extract_strided_slice %317 {offsets = [0, 0], sizes = [8, 128], strides = [1, 1]} : vector<8x384xf32> to vector<8x128xf32>
    %322 = vector.extract_strided_slice %312 {offsets = [0, 0], sizes = [8, 128], strides = [1, 1]} : vector<8x384xf32> to vector<8x128xf32>
    %323 = arith.addf %321, %322 : vector<8x128xf32>
    %324 = arith.negf %323 : vector<8x128xf32>
    %325 = math.exp %324 : vector<8x128xf32>
    %cst_98 = arith.constant 1.000000e+00 : f32
    %326 = vector.broadcast %cst_98 : f32 to vector<8x128xf32>
    %327 = arith.addf %326, %325 : vector<8x128xf32>
    %328 = arith.divf %326, %327 : vector<8x128xf32>
    %329 = vector.extract_strided_slice %317 {offsets = [0, 128], sizes = [8, 128], strides = [1, 1]} : vector<8x384xf32> to vector<8x128xf32>
    %330 = vector.extract_strided_slice %312 {offsets = [0, 128], sizes = [8, 128], strides = [1, 1]} : vector<8x384xf32> to vector<8x128xf32>
    %331 = arith.addf %329, %330 : vector<8x128xf32>
    %332 = arith.negf %331 : vector<8x128xf32>
    %333 = math.exp %332 : vector<8x128xf32>
    %cst_99 = arith.constant 1.000000e+00 : f32
    %334 = vector.broadcast %cst_99 : f32 to vector<8x128xf32>
    %335 = arith.addf %334, %333 : vector<8x128xf32>
    %336 = arith.divf %334, %335 : vector<8x128xf32>
    %337 = vector.extract_strided_slice %317 {offsets = [0, 256], sizes = [8, 128], strides = [1, 1]} : vector<8x384xf32> to vector<8x128xf32>
    %338 = vector.extract_strided_slice %312 {offsets = [0, 256], sizes = [8, 128], strides = [1, 1]} : vector<8x384xf32> to vector<8x128xf32>
    %339 = vector.broadcast %6 : vector<1x128xf32> to vector<8x128xf32>
    %340 = arith.addf %338, %339 : vector<8x128xf32>
    %341 = arith.mulf %328, %340 : vector<8x128xf32>
    %342 = arith.addf %337, %341 : vector<8x128xf32>
    %343 = math.tanh %342 : vector<8x128xf32>
    %344 = arith.subf %277, %343 : vector<8x128xf32>
    %345 = arith.mulf %336, %344 : vector<8x128xf32>
    %346 = arith.addf %343, %345 : vector<8x128xf32>
    %347 = vector.shape_cast %320 : vector<8x1xi1> to vector<8x1xi1>
    %348 = vector.broadcast %347 : vector<8x1xi1> to vector<8x128xi1>
    %349 = arith.select %348, %346, %277 : vector<8x128xi1>, vector<8x128xf32>
    %350 = arith.truncf %349 : vector<8x128xf32> to vector<8x128xbf16>
    %cst_100 = arith.constant dense<0.000000e+00> : vector<8x384xf32>
    %351 = tpu.matmul %350, %7, %cst_100 {dimension_numbers = #tpu.dot_dimension_numbers<[1], [0], [0], [1], [0, 0, 1, 1], [], []>} : vector<8x128xbf16>, vector<128x384xbf16>, vector<8x384xf32> -> vector<8x384xf32>
    %352 = vector.broadcast %8 : vector<1x384xf32> to vector<8x384xf32>
    %353 = arith.addf %351, %352 : vector<8x384xf32>
    %354 = vector.extract_strided_slice %353 {offsets = [0, 0], sizes = [8, 128], strides = [1, 1]} : vector<8x384xf32> to vector<8x128xf32>
    %355 = vector.extract_strided_slice %314 {offsets = [0, 0], sizes = [8, 128], strides = [1, 1]} : vector<8x384xf32> to vector<8x128xf32>
    %356 = arith.addf %354, %355 : vector<8x128xf32>
    %357 = arith.negf %356 : vector<8x128xf32>
    %358 = math.exp %357 : vector<8x128xf32>
    %cst_101 = arith.constant 1.000000e+00 : f32
    %359 = vector.broadcast %cst_101 : f32 to vector<8x128xf32>
    %360 = arith.addf %359, %358 : vector<8x128xf32>
    %361 = arith.divf %359, %360 : vector<8x128xf32>
    %362 = vector.extract_strided_slice %353 {offsets = [0, 128], sizes = [8, 128], strides = [1, 1]} : vector<8x384xf32> to vector<8x128xf32>
    %363 = vector.extract_strided_slice %314 {offsets = [0, 128], sizes = [8, 128], strides = [1, 1]} : vector<8x384xf32> to vector<8x128xf32>
    %364 = arith.addf %362, %363 : vector<8x128xf32>
    %365 = arith.negf %364 : vector<8x128xf32>
    %366 = math.exp %365 : vector<8x128xf32>
    %cst_102 = arith.constant 1.000000e+00 : f32
    %367 = vector.broadcast %cst_102 : f32 to vector<8x128xf32>
    %368 = arith.addf %367, %366 : vector<8x128xf32>
    %369 = arith.divf %367, %368 : vector<8x128xf32>
    %370 = vector.extract_strided_slice %353 {offsets = [0, 256], sizes = [8, 128], strides = [1, 1]} : vector<8x384xf32> to vector<8x128xf32>
    %371 = vector.extract_strided_slice %314 {offsets = [0, 256], sizes = [8, 128], strides = [1, 1]} : vector<8x384xf32> to vector<8x128xf32>
    %372 = vector.broadcast %10 : vector<1x128xf32> to vector<8x128xf32>
    %373 = arith.addf %371, %372 : vector<8x128xf32>
    %374 = arith.mulf %361, %373 : vector<8x128xf32>
    %375 = arith.addf %370, %374 : vector<8x128xf32>
    %376 = math.tanh %375 : vector<8x128xf32>
    %377 = arith.subf %310, %376 : vector<8x128xf32>
    %378 = arith.mulf %369, %377 : vector<8x128xf32>
    %379 = arith.addf %376, %378 : vector<8x128xf32>
    %380 = vector.shape_cast %320 : vector<8x1xi1> to vector<8x1xi1>
    %381 = vector.broadcast %380 : vector<8x1xi1> to vector<8x128xi1>
    %382 = arith.select %381, %379, %310 : vector<8x128xi1>, vector<8x128xf32>
    %c4_i32_103 = arith.constant 4 : i32
    %383 = arith.truncf %349 : vector<8x128xf32> to vector<8x128xbf16>
    %cst_104 = arith.constant dense<0.000000e+00> : vector<8x384xf32>
    %384 = tpu.matmul %383, %5, %cst_104 {dimension_numbers = #tpu.dot_dimension_numbers<[1], [0], [0], [1], [0, 0, 1, 1], [], []>} : vector<8x128xbf16>, vector<128x384xbf16>, vector<8x384xf32> -> vector<8x384xf32>
    %385 = arith.truncf %382 : vector<8x128xf32> to vector<8x128xbf16>
    %cst_105 = arith.constant dense<0.000000e+00> : vector<8x384xf32>
    %386 = tpu.matmul %385, %9, %cst_105 {dimension_numbers = #tpu.dot_dimension_numbers<[1], [0], [0], [1], [0, 0, 1, 1], [], []>} : vector<8x128xbf16>, vector<128x384xbf16>, vector<8x384xf32> -> vector<8x384xf32>
    %387 = arith.index_cast %c4_i32_103 : i32 to index
    %c0_106 = arith.constant 0 : index
    %c0_107 = arith.constant 0 : index
    %388 = vector.load %arg15[%387, %c0_106, %c0_107] : memref<8x8x384xf32, #tpu.memory_space<vmem>>, vector<1x8x384xf32>
    %389 = vector.shape_cast %388 : vector<1x8x384xf32> to vector<8x384xf32>
    %390 = arith.addi %12, %c4_i32_103 : i32
    %391 = vector.broadcast %390 : i32 to vector<8x1xi32>
    %392 = arith.cmpi slt, %391, %11 : vector<8x1xi32>
    %393 = vector.extract_strided_slice %389 {offsets = [0, 0], sizes = [8, 128], strides = [1, 1]} : vector<8x384xf32> to vector<8x128xf32>
    %394 = vector.extract_strided_slice %384 {offsets = [0, 0], sizes = [8, 128], strides = [1, 1]} : vector<8x384xf32> to vector<8x128xf32>
    %395 = arith.addf %393, %394 : vector<8x128xf32>
    %396 = arith.negf %395 : vector<8x128xf32>
    %397 = math.exp %396 : vector<8x128xf32>
    %cst_108 = arith.constant 1.000000e+00 : f32
    %398 = vector.broadcast %cst_108 : f32 to vector<8x128xf32>
    %399 = arith.addf %398, %397 : vector<8x128xf32>
    %400 = arith.divf %398, %399 : vector<8x128xf32>
    %401 = vector.extract_strided_slice %389 {offsets = [0, 128], sizes = [8, 128], strides = [1, 1]} : vector<8x384xf32> to vector<8x128xf32>
    %402 = vector.extract_strided_slice %384 {offsets = [0, 128], sizes = [8, 128], strides = [1, 1]} : vector<8x384xf32> to vector<8x128xf32>
    %403 = arith.addf %401, %402 : vector<8x128xf32>
    %404 = arith.negf %403 : vector<8x128xf32>
    %405 = math.exp %404 : vector<8x128xf32>
    %cst_109 = arith.constant 1.000000e+00 : f32
    %406 = vector.broadcast %cst_109 : f32 to vector<8x128xf32>
    %407 = arith.addf %406, %405 : vector<8x128xf32>
    %408 = arith.divf %406, %407 : vector<8x128xf32>
    %409 = vector.extract_strided_slice %389 {offsets = [0, 256], sizes = [8, 128], strides = [1, 1]} : vector<8x384xf32> to vector<8x128xf32>
    %410 = vector.extract_strided_slice %384 {offsets = [0, 256], sizes = [8, 128], strides = [1, 1]} : vector<8x384xf32> to vector<8x128xf32>
    %411 = vector.broadcast %6 : vector<1x128xf32> to vector<8x128xf32>
    %412 = arith.addf %410, %411 : vector<8x128xf32>
    %413 = arith.mulf %400, %412 : vector<8x128xf32>
    %414 = arith.addf %409, %413 : vector<8x128xf32>
    %415 = math.tanh %414 : vector<8x128xf32>
    %416 = arith.subf %349, %415 : vector<8x128xf32>
    %417 = arith.mulf %408, %416 : vector<8x128xf32>
    %418 = arith.addf %415, %417 : vector<8x128xf32>
    %419 = vector.shape_cast %392 : vector<8x1xi1> to vector<8x1xi1>
    %420 = vector.broadcast %419 : vector<8x1xi1> to vector<8x128xi1>
    %421 = arith.select %420, %418, %349 : vector<8x128xi1>, vector<8x128xf32>
    %422 = arith.truncf %421 : vector<8x128xf32> to vector<8x128xbf16>
    %cst_110 = arith.constant dense<0.000000e+00> : vector<8x384xf32>
    %423 = tpu.matmul %422, %7, %cst_110 {dimension_numbers = #tpu.dot_dimension_numbers<[1], [0], [0], [1], [0, 0, 1, 1], [], []>} : vector<8x128xbf16>, vector<128x384xbf16>, vector<8x384xf32> -> vector<8x384xf32>
    %424 = vector.broadcast %8 : vector<1x384xf32> to vector<8x384xf32>
    %425 = arith.addf %423, %424 : vector<8x384xf32>
    %426 = vector.extract_strided_slice %425 {offsets = [0, 0], sizes = [8, 128], strides = [1, 1]} : vector<8x384xf32> to vector<8x128xf32>
    %427 = vector.extract_strided_slice %386 {offsets = [0, 0], sizes = [8, 128], strides = [1, 1]} : vector<8x384xf32> to vector<8x128xf32>
    %428 = arith.addf %426, %427 : vector<8x128xf32>
    %429 = arith.negf %428 : vector<8x128xf32>
    %430 = math.exp %429 : vector<8x128xf32>
    %cst_111 = arith.constant 1.000000e+00 : f32
    %431 = vector.broadcast %cst_111 : f32 to vector<8x128xf32>
    %432 = arith.addf %431, %430 : vector<8x128xf32>
    %433 = arith.divf %431, %432 : vector<8x128xf32>
    %434 = vector.extract_strided_slice %425 {offsets = [0, 128], sizes = [8, 128], strides = [1, 1]} : vector<8x384xf32> to vector<8x128xf32>
    %435 = vector.extract_strided_slice %386 {offsets = [0, 128], sizes = [8, 128], strides = [1, 1]} : vector<8x384xf32> to vector<8x128xf32>
    %436 = arith.addf %434, %435 : vector<8x128xf32>
    %437 = arith.negf %436 : vector<8x128xf32>
    %438 = math.exp %437 : vector<8x128xf32>
    %cst_112 = arith.constant 1.000000e+00 : f32
    %439 = vector.broadcast %cst_112 : f32 to vector<8x128xf32>
    %440 = arith.addf %439, %438 : vector<8x128xf32>
    %441 = arith.divf %439, %440 : vector<8x128xf32>
    %442 = vector.extract_strided_slice %425 {offsets = [0, 256], sizes = [8, 128], strides = [1, 1]} : vector<8x384xf32> to vector<8x128xf32>
    %443 = vector.extract_strided_slice %386 {offsets = [0, 256], sizes = [8, 128], strides = [1, 1]} : vector<8x384xf32> to vector<8x128xf32>
    %444 = vector.broadcast %10 : vector<1x128xf32> to vector<8x128xf32>
    %445 = arith.addf %443, %444 : vector<8x128xf32>
    %446 = arith.mulf %433, %445 : vector<8x128xf32>
    %447 = arith.addf %442, %446 : vector<8x128xf32>
    %448 = math.tanh %447 : vector<8x128xf32>
    %449 = arith.subf %382, %448 : vector<8x128xf32>
    %450 = arith.mulf %441, %449 : vector<8x128xf32>
    %451 = arith.addf %448, %450 : vector<8x128xf32>
    %452 = vector.shape_cast %392 : vector<8x1xi1> to vector<8x1xi1>
    %453 = vector.broadcast %452 : vector<8x1xi1> to vector<8x128xi1>
    %454 = arith.select %453, %451, %382 : vector<8x128xi1>, vector<8x128xf32>
    %c5_i32_113 = arith.constant 5 : i32
    %455 = arith.truncf %421 : vector<8x128xf32> to vector<8x128xbf16>
    %cst_114 = arith.constant dense<0.000000e+00> : vector<8x384xf32>
    %456 = tpu.matmul %455, %5, %cst_114 {dimension_numbers = #tpu.dot_dimension_numbers<[1], [0], [0], [1], [0, 0, 1, 1], [], []>} : vector<8x128xbf16>, vector<128x384xbf16>, vector<8x384xf32> -> vector<8x384xf32>
    %457 = arith.truncf %454 : vector<8x128xf32> to vector<8x128xbf16>
    %cst_115 = arith.constant dense<0.000000e+00> : vector<8x384xf32>
    %458 = tpu.matmul %457, %9, %cst_115 {dimension_numbers = #tpu.dot_dimension_numbers<[1], [0], [0], [1], [0, 0, 1, 1], [], []>} : vector<8x128xbf16>, vector<128x384xbf16>, vector<8x384xf32> -> vector<8x384xf32>
    %459 = arith.index_cast %c5_i32_113 : i32 to index
    %c0_116 = arith.constant 0 : index
    %c0_117 = arith.constant 0 : index
    %460 = vector.load %arg15[%459, %c0_116, %c0_117] : memref<8x8x384xf32, #tpu.memory_space<vmem>>, vector<1x8x384xf32>
    %461 = vector.shape_cast %460 : vector<1x8x384xf32> to vector<8x384xf32>
    %462 = arith.addi %12, %c5_i32_113 : i32
    %463 = vector.broadcast %462 : i32 to vector<8x1xi32>
    %464 = arith.cmpi slt, %463, %11 : vector<8x1xi32>
    %465 = vector.extract_strided_slice %461 {offsets = [0, 0], sizes = [8, 128], strides = [1, 1]} : vector<8x384xf32> to vector<8x128xf32>
    %466 = vector.extract_strided_slice %456 {offsets = [0, 0], sizes = [8, 128], strides = [1, 1]} : vector<8x384xf32> to vector<8x128xf32>
    %467 = arith.addf %465, %466 : vector<8x128xf32>
    %468 = arith.negf %467 : vector<8x128xf32>
    %469 = math.exp %468 : vector<8x128xf32>
    %cst_118 = arith.constant 1.000000e+00 : f32
    %470 = vector.broadcast %cst_118 : f32 to vector<8x128xf32>
    %471 = arith.addf %470, %469 : vector<8x128xf32>
    %472 = arith.divf %470, %471 : vector<8x128xf32>
    %473 = vector.extract_strided_slice %461 {offsets = [0, 128], sizes = [8, 128], strides = [1, 1]} : vector<8x384xf32> to vector<8x128xf32>
    %474 = vector.extract_strided_slice %456 {offsets = [0, 128], sizes = [8, 128], strides = [1, 1]} : vector<8x384xf32> to vector<8x128xf32>
    %475 = arith.addf %473, %474 : vector<8x128xf32>
    %476 = arith.negf %475 : vector<8x128xf32>
    %477 = math.exp %476 : vector<8x128xf32>
    %cst_119 = arith.constant 1.000000e+00 : f32
    %478 = vector.broadcast %cst_119 : f32 to vector<8x128xf32>
    %479 = arith.addf %478, %477 : vector<8x128xf32>
    %480 = arith.divf %478, %479 : vector<8x128xf32>
    %481 = vector.extract_strided_slice %461 {offsets = [0, 256], sizes = [8, 128], strides = [1, 1]} : vector<8x384xf32> to vector<8x128xf32>
    %482 = vector.extract_strided_slice %456 {offsets = [0, 256], sizes = [8, 128], strides = [1, 1]} : vector<8x384xf32> to vector<8x128xf32>
    %483 = vector.broadcast %6 : vector<1x128xf32> to vector<8x128xf32>
    %484 = arith.addf %482, %483 : vector<8x128xf32>
    %485 = arith.mulf %472, %484 : vector<8x128xf32>
    %486 = arith.addf %481, %485 : vector<8x128xf32>
    %487 = math.tanh %486 : vector<8x128xf32>
    %488 = arith.subf %421, %487 : vector<8x128xf32>
    %489 = arith.mulf %480, %488 : vector<8x128xf32>
    %490 = arith.addf %487, %489 : vector<8x128xf32>
    %491 = vector.shape_cast %464 : vector<8x1xi1> to vector<8x1xi1>
    %492 = vector.broadcast %491 : vector<8x1xi1> to vector<8x128xi1>
    %493 = arith.select %492, %490, %421 : vector<8x128xi1>, vector<8x128xf32>
    %494 = arith.truncf %493 : vector<8x128xf32> to vector<8x128xbf16>
    %cst_120 = arith.constant dense<0.000000e+00> : vector<8x384xf32>
    %495 = tpu.matmul %494, %7, %cst_120 {dimension_numbers = #tpu.dot_dimension_numbers<[1], [0], [0], [1], [0, 0, 1, 1], [], []>} : vector<8x128xbf16>, vector<128x384xbf16>, vector<8x384xf32> -> vector<8x384xf32>
    %496 = vector.broadcast %8 : vector<1x384xf32> to vector<8x384xf32>
    %497 = arith.addf %495, %496 : vector<8x384xf32>
    %498 = vector.extract_strided_slice %497 {offsets = [0, 0], sizes = [8, 128], strides = [1, 1]} : vector<8x384xf32> to vector<8x128xf32>
    %499 = vector.extract_strided_slice %458 {offsets = [0, 0], sizes = [8, 128], strides = [1, 1]} : vector<8x384xf32> to vector<8x128xf32>
    %500 = arith.addf %498, %499 : vector<8x128xf32>
    %501 = arith.negf %500 : vector<8x128xf32>
    %502 = math.exp %501 : vector<8x128xf32>
    %cst_121 = arith.constant 1.000000e+00 : f32
    %503 = vector.broadcast %cst_121 : f32 to vector<8x128xf32>
    %504 = arith.addf %503, %502 : vector<8x128xf32>
    %505 = arith.divf %503, %504 : vector<8x128xf32>
    %506 = vector.extract_strided_slice %497 {offsets = [0, 128], sizes = [8, 128], strides = [1, 1]} : vector<8x384xf32> to vector<8x128xf32>
    %507 = vector.extract_strided_slice %458 {offsets = [0, 128], sizes = [8, 128], strides = [1, 1]} : vector<8x384xf32> to vector<8x128xf32>
    %508 = arith.addf %506, %507 : vector<8x128xf32>
    %509 = arith.negf %508 : vector<8x128xf32>
    %510 = math.exp %509 : vector<8x128xf32>
    %cst_122 = arith.constant 1.000000e+00 : f32
    %511 = vector.broadcast %cst_122 : f32 to vector<8x128xf32>
    %512 = arith.addf %511, %510 : vector<8x128xf32>
    %513 = arith.divf %511, %512 : vector<8x128xf32>
    %514 = vector.extract_strided_slice %497 {offsets = [0, 256], sizes = [8, 128], strides = [1, 1]} : vector<8x384xf32> to vector<8x128xf32>
    %515 = vector.extract_strided_slice %458 {offsets = [0, 256], sizes = [8, 128], strides = [1, 1]} : vector<8x384xf32> to vector<8x128xf32>
    %516 = vector.broadcast %10 : vector<1x128xf32> to vector<8x128xf32>
    %517 = arith.addf %515, %516 : vector<8x128xf32>
    %518 = arith.mulf %505, %517 : vector<8x128xf32>
    %519 = arith.addf %514, %518 : vector<8x128xf32>
    %520 = math.tanh %519 : vector<8x128xf32>
    %521 = arith.subf %454, %520 : vector<8x128xf32>
    %522 = arith.mulf %513, %521 : vector<8x128xf32>
    %523 = arith.addf %520, %522 : vector<8x128xf32>
    %524 = vector.shape_cast %464 : vector<8x1xi1> to vector<8x1xi1>
    %525 = vector.broadcast %524 : vector<8x1xi1> to vector<8x128xi1>
    %526 = arith.select %525, %523, %454 : vector<8x128xi1>, vector<8x128xf32>
    %c6_i32_123 = arith.constant 6 : i32
    %527 = arith.truncf %493 : vector<8x128xf32> to vector<8x128xbf16>
    %cst_124 = arith.constant dense<0.000000e+00> : vector<8x384xf32>
    %528 = tpu.matmul %527, %5, %cst_124 {dimension_numbers = #tpu.dot_dimension_numbers<[1], [0], [0], [1], [0, 0, 1, 1], [], []>} : vector<8x128xbf16>, vector<128x384xbf16>, vector<8x384xf32> -> vector<8x384xf32>
    %529 = arith.truncf %526 : vector<8x128xf32> to vector<8x128xbf16>
    %cst_125 = arith.constant dense<0.000000e+00> : vector<8x384xf32>
    %530 = tpu.matmul %529, %9, %cst_125 {dimension_numbers = #tpu.dot_dimension_numbers<[1], [0], [0], [1], [0, 0, 1, 1], [], []>} : vector<8x128xbf16>, vector<128x384xbf16>, vector<8x384xf32> -> vector<8x384xf32>
    %531 = arith.index_cast %c6_i32_123 : i32 to index
    %c0_126 = arith.constant 0 : index
    %c0_127 = arith.constant 0 : index
    %532 = vector.load %arg15[%531, %c0_126, %c0_127] : memref<8x8x384xf32, #tpu.memory_space<vmem>>, vector<1x8x384xf32>
    %533 = vector.shape_cast %532 : vector<1x8x384xf32> to vector<8x384xf32>
    %534 = arith.addi %12, %c6_i32_123 : i32
    %535 = vector.broadcast %534 : i32 to vector<8x1xi32>
    %536 = arith.cmpi slt, %535, %11 : vector<8x1xi32>
    %537 = vector.extract_strided_slice %533 {offsets = [0, 0], sizes = [8, 128], strides = [1, 1]} : vector<8x384xf32> to vector<8x128xf32>
    %538 = vector.extract_strided_slice %528 {offsets = [0, 0], sizes = [8, 128], strides = [1, 1]} : vector<8x384xf32> to vector<8x128xf32>
    %539 = arith.addf %537, %538 : vector<8x128xf32>
    %540 = arith.negf %539 : vector<8x128xf32>
    %541 = math.exp %540 : vector<8x128xf32>
    %cst_128 = arith.constant 1.000000e+00 : f32
    %542 = vector.broadcast %cst_128 : f32 to vector<8x128xf32>
    %543 = arith.addf %542, %541 : vector<8x128xf32>
    %544 = arith.divf %542, %543 : vector<8x128xf32>
    %545 = vector.extract_strided_slice %533 {offsets = [0, 128], sizes = [8, 128], strides = [1, 1]} : vector<8x384xf32> to vector<8x128xf32>
    %546 = vector.extract_strided_slice %528 {offsets = [0, 128], sizes = [8, 128], strides = [1, 1]} : vector<8x384xf32> to vector<8x128xf32>
    %547 = arith.addf %545, %546 : vector<8x128xf32>
    %548 = arith.negf %547 : vector<8x128xf32>
    %549 = math.exp %548 : vector<8x128xf32>
    %cst_129 = arith.constant 1.000000e+00 : f32
    %550 = vector.broadcast %cst_129 : f32 to vector<8x128xf32>
    %551 = arith.addf %550, %549 : vector<8x128xf32>
    %552 = arith.divf %550, %551 : vector<8x128xf32>
    %553 = vector.extract_strided_slice %533 {offsets = [0, 256], sizes = [8, 128], strides = [1, 1]} : vector<8x384xf32> to vector<8x128xf32>
    %554 = vector.extract_strided_slice %528 {offsets = [0, 256], sizes = [8, 128], strides = [1, 1]} : vector<8x384xf32> to vector<8x128xf32>
    %555 = vector.broadcast %6 : vector<1x128xf32> to vector<8x128xf32>
    %556 = arith.addf %554, %555 : vector<8x128xf32>
    %557 = arith.mulf %544, %556 : vector<8x128xf32>
    %558 = arith.addf %553, %557 : vector<8x128xf32>
    %559 = math.tanh %558 : vector<8x128xf32>
    %560 = arith.subf %493, %559 : vector<8x128xf32>
    %561 = arith.mulf %552, %560 : vector<8x128xf32>
    %562 = arith.addf %559, %561 : vector<8x128xf32>
    %563 = vector.shape_cast %536 : vector<8x1xi1> to vector<8x1xi1>
    %564 = vector.broadcast %563 : vector<8x1xi1> to vector<8x128xi1>
    %565 = arith.select %564, %562, %493 : vector<8x128xi1>, vector<8x128xf32>
    %566 = arith.truncf %565 : vector<8x128xf32> to vector<8x128xbf16>
    %cst_130 = arith.constant dense<0.000000e+00> : vector<8x384xf32>
    %567 = tpu.matmul %566, %7, %cst_130 {dimension_numbers = #tpu.dot_dimension_numbers<[1], [0], [0], [1], [0, 0, 1, 1], [], []>} : vector<8x128xbf16>, vector<128x384xbf16>, vector<8x384xf32> -> vector<8x384xf32>
    %568 = vector.broadcast %8 : vector<1x384xf32> to vector<8x384xf32>
    %569 = arith.addf %567, %568 : vector<8x384xf32>
    %570 = vector.extract_strided_slice %569 {offsets = [0, 0], sizes = [8, 128], strides = [1, 1]} : vector<8x384xf32> to vector<8x128xf32>
    %571 = vector.extract_strided_slice %530 {offsets = [0, 0], sizes = [8, 128], strides = [1, 1]} : vector<8x384xf32> to vector<8x128xf32>
    %572 = arith.addf %570, %571 : vector<8x128xf32>
    %573 = arith.negf %572 : vector<8x128xf32>
    %574 = math.exp %573 : vector<8x128xf32>
    %cst_131 = arith.constant 1.000000e+00 : f32
    %575 = vector.broadcast %cst_131 : f32 to vector<8x128xf32>
    %576 = arith.addf %575, %574 : vector<8x128xf32>
    %577 = arith.divf %575, %576 : vector<8x128xf32>
    %578 = vector.extract_strided_slice %569 {offsets = [0, 128], sizes = [8, 128], strides = [1, 1]} : vector<8x384xf32> to vector<8x128xf32>
    %579 = vector.extract_strided_slice %530 {offsets = [0, 128], sizes = [8, 128], strides = [1, 1]} : vector<8x384xf32> to vector<8x128xf32>
    %580 = arith.addf %578, %579 : vector<8x128xf32>
    %581 = arith.negf %580 : vector<8x128xf32>
    %582 = math.exp %581 : vector<8x128xf32>
    %cst_132 = arith.constant 1.000000e+00 : f32
    %583 = vector.broadcast %cst_132 : f32 to vector<8x128xf32>
    %584 = arith.addf %583, %582 : vector<8x128xf32>
    %585 = arith.divf %583, %584 : vector<8x128xf32>
    %586 = vector.extract_strided_slice %569 {offsets = [0, 256], sizes = [8, 128], strides = [1, 1]} : vector<8x384xf32> to vector<8x128xf32>
    %587 = vector.extract_strided_slice %530 {offsets = [0, 256], sizes = [8, 128], strides = [1, 1]} : vector<8x384xf32> to vector<8x128xf32>
    %588 = vector.broadcast %10 : vector<1x128xf32> to vector<8x128xf32>
    %589 = arith.addf %587, %588 : vector<8x128xf32>
    %590 = arith.mulf %577, %589 : vector<8x128xf32>
    %591 = arith.addf %586, %590 : vector<8x128xf32>
    %592 = math.tanh %591 : vector<8x128xf32>
    %593 = arith.subf %526, %592 : vector<8x128xf32>
    %594 = arith.mulf %585, %593 : vector<8x128xf32>
    %595 = arith.addf %592, %594 : vector<8x128xf32>
    %596 = vector.shape_cast %536 : vector<8x1xi1> to vector<8x1xi1>
    %597 = vector.broadcast %596 : vector<8x1xi1> to vector<8x128xi1>
    %598 = arith.select %597, %595, %526 : vector<8x128xi1>, vector<8x128xf32>
    %c7_i32_133 = arith.constant 7 : i32
    %599 = arith.truncf %565 : vector<8x128xf32> to vector<8x128xbf16>
    %cst_134 = arith.constant dense<0.000000e+00> : vector<8x384xf32>
    %600 = tpu.matmul %599, %5, %cst_134 {dimension_numbers = #tpu.dot_dimension_numbers<[1], [0], [0], [1], [0, 0, 1, 1], [], []>} : vector<8x128xbf16>, vector<128x384xbf16>, vector<8x384xf32> -> vector<8x384xf32>
    %601 = arith.truncf %598 : vector<8x128xf32> to vector<8x128xbf16>
    %cst_135 = arith.constant dense<0.000000e+00> : vector<8x384xf32>
    %602 = tpu.matmul %601, %9, %cst_135 {dimension_numbers = #tpu.dot_dimension_numbers<[1], [0], [0], [1], [0, 0, 1, 1], [], []>} : vector<8x128xbf16>, vector<128x384xbf16>, vector<8x384xf32> -> vector<8x384xf32>
    %603 = arith.index_cast %c7_i32_133 : i32 to index
    %c0_136 = arith.constant 0 : index
    %c0_137 = arith.constant 0 : index
    %604 = vector.load %arg15[%603, %c0_136, %c0_137] : memref<8x8x384xf32, #tpu.memory_space<vmem>>, vector<1x8x384xf32>
    %605 = vector.shape_cast %604 : vector<1x8x384xf32> to vector<8x384xf32>
    %606 = arith.addi %12, %c7_i32_133 : i32
    %607 = vector.broadcast %606 : i32 to vector<8x1xi32>
    %608 = arith.cmpi slt, %607, %11 : vector<8x1xi32>
    %609 = vector.extract_strided_slice %605 {offsets = [0, 0], sizes = [8, 128], strides = [1, 1]} : vector<8x384xf32> to vector<8x128xf32>
    %610 = vector.extract_strided_slice %600 {offsets = [0, 0], sizes = [8, 128], strides = [1, 1]} : vector<8x384xf32> to vector<8x128xf32>
    %611 = arith.addf %609, %610 : vector<8x128xf32>
    %612 = arith.negf %611 : vector<8x128xf32>
    %613 = math.exp %612 : vector<8x128xf32>
    %cst_138 = arith.constant 1.000000e+00 : f32
    %614 = vector.broadcast %cst_138 : f32 to vector<8x128xf32>
    %615 = arith.addf %614, %613 : vector<8x128xf32>
    %616 = arith.divf %614, %615 : vector<8x128xf32>
    %617 = vector.extract_strided_slice %605 {offsets = [0, 128], sizes = [8, 128], strides = [1, 1]} : vector<8x384xf32> to vector<8x128xf32>
    %618 = vector.extract_strided_slice %600 {offsets = [0, 128], sizes = [8, 128], strides = [1, 1]} : vector<8x384xf32> to vector<8x128xf32>
    %619 = arith.addf %617, %618 : vector<8x128xf32>
    %620 = arith.negf %619 : vector<8x128xf32>
    %621 = math.exp %620 : vector<8x128xf32>
    %cst_139 = arith.constant 1.000000e+00 : f32
    %622 = vector.broadcast %cst_139 : f32 to vector<8x128xf32>
    %623 = arith.addf %622, %621 : vector<8x128xf32>
    %624 = arith.divf %622, %623 : vector<8x128xf32>
    %625 = vector.extract_strided_slice %605 {offsets = [0, 256], sizes = [8, 128], strides = [1, 1]} : vector<8x384xf32> to vector<8x128xf32>
    %626 = vector.extract_strided_slice %600 {offsets = [0, 256], sizes = [8, 128], strides = [1, 1]} : vector<8x384xf32> to vector<8x128xf32>
    %627 = vector.broadcast %6 : vector<1x128xf32> to vector<8x128xf32>
    %628 = arith.addf %626, %627 : vector<8x128xf32>
    %629 = arith.mulf %616, %628 : vector<8x128xf32>
    %630 = arith.addf %625, %629 : vector<8x128xf32>
    %631 = math.tanh %630 : vector<8x128xf32>
    %632 = arith.subf %565, %631 : vector<8x128xf32>
    %633 = arith.mulf %624, %632 : vector<8x128xf32>
    %634 = arith.addf %631, %633 : vector<8x128xf32>
    %635 = vector.shape_cast %608 : vector<8x1xi1> to vector<8x1xi1>
    %636 = vector.broadcast %635 : vector<8x1xi1> to vector<8x128xi1>
    %637 = arith.select %636, %634, %565 : vector<8x128xi1>, vector<8x128xf32>
    %638 = arith.truncf %637 : vector<8x128xf32> to vector<8x128xbf16>
    %cst_140 = arith.constant dense<0.000000e+00> : vector<8x384xf32>
    %639 = tpu.matmul %638, %7, %cst_140 {dimension_numbers = #tpu.dot_dimension_numbers<[1], [0], [0], [1], [0, 0, 1, 1], [], []>} : vector<8x128xbf16>, vector<128x384xbf16>, vector<8x384xf32> -> vector<8x384xf32>
    %640 = vector.broadcast %8 : vector<1x384xf32> to vector<8x384xf32>
    %641 = arith.addf %639, %640 : vector<8x384xf32>
    %642 = vector.extract_strided_slice %641 {offsets = [0, 0], sizes = [8, 128], strides = [1, 1]} : vector<8x384xf32> to vector<8x128xf32>
    %643 = vector.extract_strided_slice %602 {offsets = [0, 0], sizes = [8, 128], strides = [1, 1]} : vector<8x384xf32> to vector<8x128xf32>
    %644 = arith.addf %642, %643 : vector<8x128xf32>
    %645 = arith.negf %644 : vector<8x128xf32>
    %646 = math.exp %645 : vector<8x128xf32>
    %cst_141 = arith.constant 1.000000e+00 : f32
    %647 = vector.broadcast %cst_141 : f32 to vector<8x128xf32>
    %648 = arith.addf %647, %646 : vector<8x128xf32>
    %649 = arith.divf %647, %648 : vector<8x128xf32>
    %650 = vector.extract_strided_slice %641 {offsets = [0, 128], sizes = [8, 128], strides = [1, 1]} : vector<8x384xf32> to vector<8x128xf32>
    %651 = vector.extract_strided_slice %602 {offsets = [0, 128], sizes = [8, 128], strides = [1, 1]} : vector<8x384xf32> to vector<8x128xf32>
    %652 = arith.addf %650, %651 : vector<8x128xf32>
    %653 = arith.negf %652 : vector<8x128xf32>
    %654 = math.exp %653 : vector<8x128xf32>
    %cst_142 = arith.constant 1.000000e+00 : f32
    %655 = vector.broadcast %cst_142 : f32 to vector<8x128xf32>
    %656 = arith.addf %655, %654 : vector<8x128xf32>
    %657 = arith.divf %655, %656 : vector<8x128xf32>
    %658 = vector.extract_strided_slice %641 {offsets = [0, 256], sizes = [8, 128], strides = [1, 1]} : vector<8x384xf32> to vector<8x128xf32>
    %659 = vector.extract_strided_slice %602 {offsets = [0, 256], sizes = [8, 128], strides = [1, 1]} : vector<8x384xf32> to vector<8x128xf32>
    %660 = vector.broadcast %10 : vector<1x128xf32> to vector<8x128xf32>
    %661 = arith.addf %659, %660 : vector<8x128xf32>
    %662 = arith.mulf %649, %661 : vector<8x128xf32>
    %663 = arith.addf %658, %662 : vector<8x128xf32>
    %664 = math.tanh %663 : vector<8x128xf32>
    %665 = arith.subf %598, %664 : vector<8x128xf32>
    %666 = arith.mulf %657, %665 : vector<8x128xf32>
    %667 = arith.addf %664, %666 : vector<8x128xf32>
    %668 = vector.shape_cast %608 : vector<8x1xi1> to vector<8x1xi1>
    %669 = vector.broadcast %668 : vector<8x1xi1> to vector<8x128xi1>
    %670 = arith.select %669, %667, %598 : vector<8x128xi1>, vector<8x128xf32>
    %c8_i32_143 = arith.constant 8 : i32
    %c0_144 = arith.constant 0 : index
    %c0_145 = arith.constant 0 : index
    %671 = vector.load %arg13[%c0_144, %c0_145] : memref<8x128xf32, #tpu.memory_space<vmem>>, vector<8x128xf32>
    tpu.vector_store %arg13[%c0_144, %c0_145], %637 {strides = array<i32>} : memref<8x128xf32, #tpu.memory_space<vmem>>, vector<8x128xf32>,
    %c0_146 = arith.constant 0 : index
    %c0_147 = arith.constant 0 : index
    %672 = vector.load %arg14[%c0_146, %c0_147] : memref<8x128xf32, #tpu.memory_space<vmem>>, vector<8x128xf32>
    tpu.vector_store %arg14[%c0_146, %c0_147], %670 {strides = array<i32>} : memref<8x128xf32, #tpu.memory_space<vmem>>, vector<8x128xf32>,
    %c0_148 = arith.constant 0 : index
    %c0_149 = arith.constant 0 : index
    %673 = vector.load %arg12[%c0_148, %c0_149] : memref<8x128xf32, #tpu.memory_space<vmem>>, vector<8x128xf32>
    tpu.vector_store %arg12[%c0_148, %c0_149], %670 {strides = array<i32>} : memref<8x128xf32, #tpu.memory_space<vmem>>, vector<8x128xf32>,
    return
  }
  func.func @transform_0(%arg0: i32, %arg1: i32) -> (i32, i32, i32) {
    %c0_i32 = arith.constant 0 : i32
    %c0_i32_0 = arith.constant 0 : i32
    return %arg1, %arg0, %c0_i32 : i32, i32, i32
  }
  func.func @transform_1(%arg0: i32, %arg1: i32) -> (i32, i32) {
    %c0_i32 = arith.constant 0 : i32
    %c0_i32_0 = arith.constant 0 : i32
    return %arg0, %c0_i32 : i32, i32
  }
  func.func @transform_2(%arg0: i32, %arg1: i32) -> (i32, i32) {
    %c0_i32 = arith.constant 0 : i32
    %c0_i32_0 = arith.constant 0 : i32
    %c0_i32_1 = arith.constant 0 : i32
    return %c0_i32, %c0_i32_0 : i32, i32
  }
  func.func @transform_3(%arg0: i32, %arg1: i32) -> (i32, i32) {
    %c0_i32 = arith.constant 0 : i32
    %c0_i32_0 = arith.constant 0 : i32
    %c0_i32_1 = arith.constant 0 : i32
    return %c0_i32, %c0_i32_0 : i32, i32
  }
  func.func @transform_4(%arg0: i32, %arg1: i32) -> (i32, i32) {
    %c0_i32 = arith.constant 0 : i32
    %c0_i32_0 = arith.constant 0 : i32
    %c0_i32_1 = arith.constant 0 : i32
    return %c0_i32, %c0_i32_0 : i32, i32
  }
  func.func @transform_5(%arg0: i32, %arg1: i32) -> (i32, i32) {
    %c0_i32 = arith.constant 0 : i32
    %c0_i32_0 = arith.constant 0 : i32
    %c0_i32_1 = arith.constant 0 : i32
    return %c0_i32, %c0_i32_0 : i32, i32
  }
  func.func @transform_6(%arg0: i32, %arg1: i32) -> (i32, i32) {
    %c0_i32 = arith.constant 0 : i32
    %c0_i32_0 = arith.constant 0 : i32
    %c0_i32_1 = arith.constant 0 : i32
    return %c0_i32, %c0_i32_0 : i32, i32
  }
  func.func @transform_7(%arg0: i32, %arg1: i32) -> (i32, i32) {
    %c0_i32 = arith.constant 0 : i32
    %c0_i32_0 = arith.constant 0 : i32
    %c0_i32_1 = arith.constant 0 : i32
    return %c0_i32, %c0_i32_0 : i32, i32
  }
  func.func @transform_8(%arg0: i32, %arg1: i32) -> (i32, i32) {
    %c0_i32 = arith.constant 0 : i32
    %c0_i32_0 = arith.constant 0 : i32
    %c0_i32_1 = arith.constant 0 : i32
    return %c0_i32, %c0_i32_0 : i32, i32
  }
  func.func @transform_9(%arg0: i32, %arg1: i32) -> (i32, i32) {
    %c0_i32 = arith.constant 0 : i32
    %c0_i32_0 = arith.constant 0 : i32
    %c0_i32_1 = arith.constant 0 : i32
    return %c0_i32, %c0_i32_0 : i32, i32
  }
  func.func @transform_10(%arg0: i32, %arg1: i32) -> (i32, i32) {
    %c0_i32 = arith.constant 0 : i32
    %c0_i32_0 = arith.constant 0 : i32
    return %arg0, %c0_i32 : i32, i32
  }
}

</mosaic_0001>

<bundles_post_ra>
// kernel: tpu_custom_call.1
= control target key start
LH: loop header
LB: loop body
LE: loop exit
PB: predicated region body
PF: predicated region fallthrough
CT: control target
= control target key end

     0   :  { %s8178_s0 = inlined_call_operand.hbm [shape: bf16[16,8,32], index: 0, kind: input, shape index: {}]   ;;  %s8179_s1 = inlined_call_operand.vmem [shape: s32[8,1], index: 1, kind: input, shape index: {}]   ;;  %s8180_s2 = inlined_call_operand.hbm [shape: bf16[32,384], index: 2, kind: input, shape index: {}]   ;;  %s8181_s3 = inlined_call_operand.vmem [shape: f32[1,384], index: 3, kind: input, shape index: {}]   ;;  %s8182_s4 = inlined_call_operand.hbm [shape: bf16[128,384], index: 4, kind: input, shape index: {}]   ;;  %s8183_s5 = inlined_call_operand.vmem [shape: f32[1,128], index: 5, kind: input, shape index: {}]   ;;  %s8184_s6 = inlined_call_operand.hbm [shape: bf16[128,384], index: 6, kind: input, shape index: {}]   ;;  %s8185_s7 = inlined_call_operand.vmem [shape: f32[1,384], index: 7, kind: input, shape index: {}]   ;;  %s8186_s8 = inlined_call_operand.hbm [shape: bf16[128,384], index: 8, kind: input, shape index: {}]   ;;  %s8187_s9 = inlined_call_operand.vmem [shape: f32[1,128], index: 9, kind: input, shape index: {}]   ;;  %s8188_s10 = inlined_call_operand.hbm [shape: f32[8,128], index: 10, kind: output, shape index: {}]  }
   0x1   :  { %8364 = sst [smem:[#allocation66_spill]] %s8183_s5 }
   0x2   :  { %8365 = sst [smem:[#allocation67_spill]] %s8185_s7 }
   0x3   :  { %8366 = sst [smem:[#allocation68_spill]] %s8187_s9 }
   0x4   :  { %8367 = sst [smem:[#allocation69_spill]] %s8188_s10 }
   0x5   :  { %15 = vsyncpa [#allocation6], 0 }
   0x6   :  { %17 = vsyncpa [#allocation6 + $0x1], 0 }
   0x7   :  { %18 = vsyncpa [#allocation9], 0 }
   0x8   :  { %19 = vsyncpa [#allocation12], 0 }
   0x9   :  { %20 = vsyncpa [#allocation7], 0  ;;  %s6153_s13 = smov 0   ;;  %s6155_s14 = smov 0  }
   0xa   :  { %s6157_s15 = smov 0   ;;  %s6159_s16 = smov 0  }
   0xb   :  { %s6161_s17 = smov 0   ;;  %s6163_s18 = smov 0  }
   0xc LB: > { %s8189_s19 = sadd.s32 4294967295, %s6082_s18   ;;  %p60_p0 = scmp.ne.s32.totalorder %s6066_s14, %s6062_s13  ;;  %s6082_s18 = sphi %s6163_s18, %s26_s18   ;;  %s6078_s17 = sphi %s6161_s17, %s8642_s17   ;;  %s6074_s16 = sphi %s6159_s16, %s8641_s16   ;;  %s6070_s15 = sphi %s6157_s15, %s8640_s15   ;;  %s6066_s14 = sphi %s6155_s14, %s8639_s14   ;;  %s6062_s13 = sphi %s6153_s13, %s8638_s13  }
   0xd   : > { %p6185_p1 = scmp.eq.s32.totalorder %s8189_s19, 0  ;;  %p4289_p2 = scmp.ge.s32.totalorder %s6082_s18, 1 }
   0xe   : > { %p291_p3 = scmp.lt.s32.totalorder %s6082_s18, 3  ;;  %s6084_s23 = smov [#allocation8]  }
   0xf   : > { %s8368_s20 = scalar_select %p6185_p1, 1, 0 }
  0x10   : > { %p6193_p4 = por %p6185_p1, %p60_p0  ;;  %p6197_p5 = pnand %p4289_p2, %p291_p3 }
  0x11   : > { %s310_s24 = sshll.u32 %s6084_s23, 4  ;;  %s6085_s26 = smov [#allocation11]   ;;  %s6201_s24 = int_to_ptr.vmem [resolvable:$true] %s310_s24 }
  0x12   : > { %s8369_s21 = scalar_select %p6193_p4, 1, 0 }
  0x13   : > { %s8370_s22 = scalar_select %p6197_p5, 1, 0 }
  0x14   : > { %p5349_p6 = pneg %p6197_p5  ;;  %s342_s27 = sshll.u32 %s6085_s26, 4  ;;  %s6211_s27 = int_to_ptr.vmem [resolvable:$true] %s342_s27 }
  0x15   : > { %s6086_s28 = smov [#allocation10]   ;;  %s5852_s12 = scalar_lea.hbm %s8180_s2, 768 }
  0x16   : > { %p6207_p7 = pnand %p5349_p6, %p6185_p1  ;;  %s6213_s29 = sshll.u32 %s6086_s28, 4  ;;  %s327_s29 = int_to_ptr.vmem [resolvable:$true] %s6213_s29 }
  0x17   : > { %p5853_p8 = scmp.ne.s32.totalorder %s8180_s2, %s5852_s12  ;;  %p5859_p12 = scmp.lt.u32.totalorder %s5852_s12, %s8180_s2 }
  0x18   : > { %p6223_p9 = pneg %p6207_p7 }
  0x1a   : > { %p5855_p10 = pnand %p6223_p9, %p5853_p8 }
  0x1c   : > { %p5856_p11 = pneg %p5855_p10 }
  0x1e   : > { %p5861_p13 = pnand %p5859_p12, %p5856_p11 }
  0x20   : > { %5864 = shalt.err (!%p5861_p13)
}
  0x21   : > { %s5865_s30 = scalar_lea.vmem %s6201_s24, 768  ;;  %p5873_p6 = scmp.lt.s32.totalorder %s6201_s24, %s6201_s24 }
  0x22   : > { %p5866_p0 = scmp.ne.s32.totalorder %s6201_s24, %s5865_s30  ;;  %p5874_p1 = scmp.lt.s32.totalorder %s5865_s30, %s5865_s30 }
  0x24   : > { %p5868_p2 = pnand %p5866_p0, %p6223_p9  ;;  %p5875_p8 = por %p5874_p1, %p5873_p6 }
  0x26   : > { %p5869_p3 = pneg %p5868_p2 }
  0x28   : > { %p5876_p10 = pnand %p5875_p8, %p5869_p3 }
  0x2a   : > { %5879 = shalt.err (!%p5876_p10)
}
  0x2b   : > { %s6087_s11 = smov 192   ;;  %s6088_s12 = smov 12  }
  0x2c   : > { %5352 = dma.hbm_to_vmem [thread:$0]  (!%p6207_p7), %s8180_s2, 768, %s6201_s24, [#allocation9], %s6087_s11, %s6087_s11, %s6088_s12  }
  0x2d   : > { %s5880_s30 = scalar_lea.hbm %s8184_s6, 3072 }
  0x2e   : > { %p5881_p1 = scmp.ne.s32.totalorder %s8184_s6, %s5880_s30  ;;  %p5887_p13 = scmp.lt.u32.totalorder %s5880_s30, %s8184_s6 }
  0x30   : > { %p5883_p11 = pnand %p5881_p1, %p6223_p9 }
  0x32   : > { %p5884_p12 = pneg %p5883_p11 }
  0x34   : > { %p5889_p0 = pnand %p5887_p13, %p5884_p12 }
  0x36   : > { %5892 = shalt.err (!%p5889_p0)
}
  0x37   : > { %s5893_s24 = scalar_lea.vmem %s6211_s27, 3072  ;;  %p5901_p8 = scmp.lt.s32.totalorder %s6211_s27, %s6211_s27 }
  0x38   : > { %p5894_p2 = scmp.ne.s32.totalorder %s6211_s27, %s5893_s24  ;;  %p5902_p10 = scmp.lt.s32.totalorder %s5893_s24, %s5893_s24 }
  0x3a   : > { %p5896_p3 = pnand %p5894_p2, %p6223_p9  ;;  %p5903_p1 = por %p5902_p10, %p5901_p8 }
  0x3c   : > { %p5897_p6 = pneg %p5896_p3 }
  0x3e   : > { %p5904_p11 = pnand %p5903_p1, %p5897_p6 }
  0x40   : > { %5907 = shalt.err (!%p5904_p11)
}
  0x41   : > { %5358 = dma.hbm_to_vmem [thread:$0]  (!%p6207_p7), %s8184_s6, 3072, %s6211_s27, [#allocation12], %s6087_s11, %s6087_s11, %s6088_s12  }
  0x42   : > { %s5908_s13 = scalar_lea.hbm %s8182_s4, 3072 }
  0x43   : > { %p5909_p12 = scmp.ne.s32.totalorder %s8182_s4, %s5908_s13  ;;  %p5915_p2 = scmp.lt.u32.totalorder %s5908_s13, %s8182_s4 }
  0x45   : > { %p5911_p13 = pnand %p5909_p12, %p6223_p9 }
  0x47   : > { %p5912_p0 = pneg %p5911_p13 }
  0x49   : > { %p5917_p3 = pnand %p5915_p2, %p5912_p0 }
  0x4b   : > { %5920 = shalt.err (!%p5917_p3)
}
  0x4c   : > { %s5921_s24 = scalar_lea.vmem %s327_s29, 3072  ;;  %p5929_p1 = scmp.lt.s32.totalorder %s327_s29, %s327_s29 }
  0x4d   : > { %p5922_p6 = scmp.ne.s32.totalorder %s327_s29, %s5921_s24  ;;  %p5930_p11 = scmp.lt.s32.totalorder %s5921_s24, %s5921_s24 }
  0x4f   : > { %p5924_p8 = pnand %p5922_p6, %p6223_p9  ;;  %p5931_p4 = por %p5930_p11, %p5929_p1 }
  0x51   : > { %p5925_p10 = pneg %p5924_p8 }
  0x53   : > { %p5932_p5 = pnand %p5931_p4, %p5925_p10 }
  0x55   : > { %5935 = shalt.err (!%p5932_p5)
}
  0x56   : > { %5355 = dma.hbm_to_vmem [thread:$0]  (!%p6207_p7), %s8182_s4, 3072, %s327_s29, [#allocation9], %s6087_s11, %s6087_s11, %s6088_s12  }
  0x57   : > { %s6089_s7 = smov [#allocation13]   ;;  %s5936_s23 = scalar_lea.hbm %s8186_s8, 3072 }
  0x58   : > { %s358_s9 = sshll.u32 %s6089_s7, 4  ;;  %p5937_p4 = scmp.ne.s32.totalorder %s8186_s8, %s5936_s23  ;;  %s359_s9 = int_to_ptr.vmem [resolvable:$true] %s358_s9 }
  0x59   : > { %p5943_p13 = scmp.lt.u32.totalorder %s5936_s23, %s8186_s8 }
  0x5a   : > { %p5939_p5 = pnand %p5937_p4, %p6223_p9 }
  0x5c   : > { %p5940_p12 = pneg %p5939_p5 }
  0x5e   : > { %p5945_p0 = pnand %p5943_p13, %p5940_p12 }
  0x60   : > { %5948 = shalt.err (!%p5945_p0)
}
  0x61   : > { %s5949_s29 = scalar_lea.vmem %s359_s9, 3072  ;;  %p5957_p8 = scmp.lt.s32.totalorder %s359_s9, %s359_s9 }
  0x62   : > { %p5950_p2 = scmp.ne.s32.totalorder %s359_s9, %s5949_s29  ;;  %p5958_p10 = scmp.lt.s32.totalorder %s5949_s29, %s5949_s29 }
  0x64   : > { %p5952_p3 = pnand %p5950_p2, %p6223_p9  ;;  %p5959_p1 = por %p5958_p10, %p5957_p8 }
  0x66   : > { %p5953_p6 = pneg %p5952_p3 }
  0x68   : > { %p5960_p11 = pnand %p5959_p1, %p5953_p6 }
  0x6a   : > { %5963 = shalt.err (!%p5960_p11)
}
  0x6b   : > { %5361 = dma.hbm_to_vmem [thread:$0]  (!%p6207_p7), %s8186_s8, 3072, %s359_s9, [#allocation12], %s6087_s11, %s6087_s11, %s6088_s12  }
  0x6c   : > { %s35_s19 = sadd.s32 1, %s6078_s17  ;;  %s47_s7 = sadd.s32 1, %s6070_s15 }
  0x6d   : > { %p36_p9 = scmp.ge.s32.totalorder %s35_s19, 2  ;;  %p54_p4 = scmp.ne.s32.totalorder %s6070_s15, %s6066_s14 }
  0x6e   : > { %p55_p5 = scmp.eq.s32.totalorder %s6082_s18, 0  ;;  %p5370_p12 = scmp.lt.s32.totalorder %s6082_s18, 2 }
  0x6f   : > { %s8644_s19 = smov (%p36_p9, %s35_s19), 0  ;;  %s375_s25 = sand.u32 1, %s6070_s15  }
  0x70   : > { %p56_p13 = por %p55_p5, %p54_p4  ;;  %s42_s10 = ssub.s32 %s6078_s17, %s8644_s19 }
  0x71   : > { %p45_p0 = scmp.eq.s32.totalorder %s42_s10, 0  ;;  %s4296_s13 = sshll.u32 %s375_s25, 5 }
  0x72   : > { %s4446_s23 = sshll.u32 %s6078_s17, 9  ;;  %s379_s9 = scalar_lea.vmem [#allocation5], %s4296_s13 }
  0x73   : > { %s6329_s26 = scalar_select %p45_p0, %s6070_s15, %s47_s7  }
  0x74   : > { %s6334_s12 = scalar_lea.hbm %s8178_s0, %s4446_s23  ;;  %s387_s30 = sshll.u32 %s379_s9, 4  ;;  %s6336_s30 = int_to_ptr.vmem [resolvable:$true] %s387_s30 }
  0x75   : > { %p6340_p7 = pnand %p5370_p12, %p56_p13  ;;  %s6344_s29 = scalar_lea.sflag [#allocation6], %s375_s25 }
  0x76   : > { %s5964_s27 = scalar_lea.hbm %s6334_s12, 512  ;;  %s5969_s10 = scalar_lea.hbm %s8178_s0, 1024 }
  0x77   : > { %p5965_p2 = scmp.ne.s32.totalorder %s6334_s12, %s5964_s27  ;;  %p5966_p3 = pneg %p6340_p7 }
  0x78   : > { %p5970_p10 = scmp.lt.u32.totalorder %s6334_s12, %s8178_s0  ;;  %p5971_p1 = scmp.lt.u32.totalorder %s5969_s10, %s5964_s27 }
  0x79   : > { %p5967_p6 = pnand %p5966_p3, %p5965_p2  ;;  %p5973_p9 = scmp.lt.u32.totalorder %s5964_s27, %s6334_s12 }
  0x7a   : > { %p5972_p11 = por %p5971_p1, %p5970_p10 }
  0x7b   : > { %p5968_p8 = pneg %p5967_p6 }
  0x7c   : > { %p5974_p4 = por %p5973_p9, %p5972_p11 }
  0x7e   : > { %p5975_p5 = pnand %p5974_p4, %p5968_p8 }
  0x80   : > { %5978 = shalt.err (!%p5975_p5)
}
  0x81   : > { %s5979_s25 = scalar_lea.vmem %s6336_s30, 512  ;;  %s6090_s28 = smov [#allocation5]  }
  0x82   : > { %p5980_p12 = scmp.ne.s32.totalorder %s6336_s30, %s5979_s25  ;;  %s5984_s11 = sshll.u32 %s6090_s28, 4  ;;  %s5985_s11 = int_to_ptr.vmem [resolvable:$false] %s5984_s11 }
  0x83   : > { %s5986_s9 = scalar_lea.vmem %s5985_s11, 1024  ;;  %p5987_p2 = scmp.lt.s32.totalorder %s6336_s30, %s5985_s11 }
  0x84   : > { %p5982_p13 = pnand %p5980_p12, %p5966_p3  ;;  %p5988_p6 = scmp.lt.s32.totalorder %s5986_s9, %s5979_s25 }
  0x86   : > { %p5983_p0 = pneg %p5982_p13  ;;  %p5989_p10 = por %p5988_p6, %p5987_p2 }
  0x88   : > { %p5990_p1 = pnand %p5989_p10, %p5983_p0 }
  0x8a   : > { %5993 = shalt.err (!%p5990_p1)
}
  0x8b   : > { %s6091_s27 = smov 64   ;;  %s6092_s5 = smov 4  }
  0x8c   : > { %5365 = dma.hbm_to_vmem [thread:$0]  (!%p6340_p7), %s6334_s12, 512, %s6336_s30, %s6344_s29, %s6091_s27, %s6091_s27, %s6092_s5  }
  0x8d   : > { %p8374_p3 = scmp.ne.s32.totalorder %s8370_s22, 0 }
  0x8f   : > { %399 = sbr.rel (%p8374_p3) target bundleno = 2885 (0xb45), region = 60 }
  0x96   : > { %s401_s7 = sand.u32 1, %s6066_s14   ;;  %p8375_p8 = scmp.ne.s32.totalorder %s8369_s21, 0 }
  0x97   : > { %s4300_s10 = sshll.u32 %s401_s7, 5  ;;  %s402_s13 = scalar_lea.sflag [#allocation6], %s401_s7 }
  0x98   : > { %s6375_s23 = scalar_lea.vmem [#allocation5], %s4300_s10 }
  0x99   : > { %6045 = dma.done.wait (%p8375_p8), %s402_s13, 512  }
  0x9a   : > { %6047 = vsyncadd (%p8375_p8), %s402_s13, 4294966784  ;;  %p8376_p11 = scmp.ne.s32.totalorder %s8368_s20, 0 }
  0x9c   : > { %6049 = dma.done.wait (%p8376_p11), [#allocation9], 3840  }
  0x9d   : > { %6051 = vsyncadd (%p8376_p11), [#allocation9], 4294963456 }
  0x9e   : > { %6053 = dma.done.wait (%p8376_p11), [#allocation12], 6144  }
  0x9f   : > { %6055 = vsyncadd (%p8376_p11), [#allocation12], 4294961152  ;;  %p4305_p7 = scmp.ne.s32.totalorder %s6074_s16, 0 }
  0xa0   : > { %v6093_v0 = vmov (!%p4305_p7), 0.0  }
  0xa1   : > { %466 = sbr.rel (%p4305_p7) target bundleno = 168 (0xa8), region = 84  ;;  %467 = vst [vmem:[#allocation2] sm:$0xff] (!%p4305_p7), %v6093_v0  ;;  %468 = vst [vmem:[#allocation3] sm:$0xff] (!%p4305_p7), %v6093_v0 }
  0xa8 PF: > { %v6390_v1 = vld [vmem:[#allocation8 + $0x4] ss:$12 sps:$4 sm:$0xff]   ;;  %v6392_v2 = vld [vmem:[#allocation8] ss:$12 sps:$4 sm:$0xff]   ;;  %v8197_v3 = vmov 0   ;;  %v8231_v5 = vmov 0.0  }
  0xa9   : > { %664 = vmatprep.mubr.bf16.mxu0 %v8197_v3  ;;  %5438 = vset.pattern.permute.xlu0 %v8197_v3  ;;  %v6397_v4 = vld [vmem:[#allocation8 + $0x1c] ss:$12 sps:$4 sm:$0xff]   ;;  %v6401_v6 = vld [vmem:[#allocation8 + $0x18] ss:$12 sps:$4 sm:$0xff]   ;;  %vm6096_vm0 = vmmov 0   ;;  %vm628_vm1 = vcmask 261120  }
  0xaa   : > { %632 = vmatprep.subr.bf16.mxu0 %v6390_v1  ;;  %4687 = vmatprep.subr.bf16.mxu1 %v8231_v5  ;;  %v6406_v7 = vld [vmem:[#allocation8 + $0x8] ss:$12 sps:$4 sm:$0xff]   ;;  %v6410_v8 = vld [vmem:[#allocation8 + $0x20] ss:$12 sps:$4 sm:$0xff]   ;;  %v4315_v10 = vld [vmem:[%s6375_s23 + $0x4] sm:$0xf] }
  0xab   : > { %633 = vmatpush1.bf16.msra.mxu0 %v6392_v2  ;;  %4691 = vmatprep.mubr.msk.bf16.mxu1 %vm6096_vm0, %v8231_v5  ;;  %v579_v9 = vld [vmem:[%s6375_s23] sm:$0xf]  ;;  %s6437_s20 = sshll.u32 %s6074_s16, 3  ;;  %v4318_v11 = vld [vmem:[%s6375_s23 + $0x8] sm:$0xf]  ;;  %v6455_v14 = vld [vmem:[%s8179_s1] sm:$0xff] }
  0xac   : > { %634 = vmatprep.subr.bf16.mxu0 %v6397_v4  ;;  %5439 = vset.pattern.permute.xlu1 %v8197_v3  ;;  %s2226_s21 = sadd.s32 1, %s6437_s20  ;;  %v1771_v12 = vstv %s6437_s20  ;;  %s3126_s16 = sadd.s32 4, %s6437_s20  ;;  %8377 = vst [vmem:[#allocation19_spill] sm:$0xff] %v6455_v14  ;;  %v4321_v17 = vld [vmem:[%s6375_s23 + $0xc] sm:$0xf]  ;;  %v6611_v49 = vld [vmem:[#allocation2] sm:$0xff] }
  0xad   : > { %4688 = vmatpush3.bf16.msra.mxu1 %v6406_v7  ;;  %v2227_v13 = vstv %s2226_s21  ;;  %vm1772_vm2 = vcmp.lt.s32.totalorder %v1771_v12, %v6455_v14  ;;  %v3127_v16 = vstv %s3126_s16  ;;  %s3726_s30 = sadd.s32 6, %s6437_s20  ;;  %v4324_v21 = vld [vmem:[%s6375_s23 + $0x10] sm:$0xf]  ;;  %v4327_v23 = vld [vmem:[%s6375_s23 + $0x14] sm:$0xf]  ;;  %v1348_v50 = vpack.c.bf16 %v6611_v49, %v6611_v49  ;;  %s8423_s11 = sld [smem:[#allocation66_spill]] }
  0xae   : > { %4689 = vmatprep.subr.bf16.mxu1 %v8231_v5  ;;  %vm2228_vm3 = vcmp.lt.s32.totalorder %v2227_v13, %v6455_v14  ;;  %v1800_v15 = vsel %vm1772_vm2, 1, %v8197_v3  ;;  %vm3128_vm4 = vcmp.lt.s32.totalorder %v3127_v16, %v6455_v14  ;;  %v3727_v19 = vstv %s3726_s30  ;;  %v4330_v24 = vld [vmem:[%s6375_s23 + $0x18] sm:$0xf]  ;;  %v6525_v25 = vld [vmem:[#allocation10 + $0x4] ss:$12 sps:$4 sm:$0xff]   ;;  %s2526_s9 = sadd.s32 2, %s6437_s20 }
  0xaf   : > { %635 = vmatpush1.bf16.msra.mxu0 %v6401_v6  ;;  %1802 = vperm.xlu0 %5438, %v1800_v15   ;;  %v2250_v18 = vsel %vm2228_vm3, 1, %v8197_v3  ;;  %v3150_v20 = vsel %vm3128_vm4, 1, %v8197_v3  ;;  %vm3728_vm5 = vcmp.lt.s32.totalorder %v3727_v19, %v6455_v14  ;;  %8378 = vst [vmem:[#allocation20_spill] sm:$0xff] %v6525_v25  ;;  %v4333_v26 = vld [vmem:[%s6375_s23 + $0x1c] sm:$0xf]  ;;  %s2826_s27 = sadd.s32 3, %s6437_s20 }
  0xb0   : > { %721 = vmatprep.subr.bf16.mxu0 %v6390_v1  ;;  %v3750_v22 = vsel %vm3728_vm5, 1, %v8197_v3  ;;  %v6534_v27 = vld [vmem:[#allocation10] ss:$12 sps:$4 sm:$0xff]   ;;  %v6538_v28 = vld [vmem:[#allocation10 + $0x1c] ss:$12 sps:$4 sm:$0xff]   ;;  %s3426_s5 = sadd.s32 5, %s6437_s20 }
  0xb1   : > { %4690 = vmatpush3.bf16.msra.mxu1 %v6410_v8  ;;  %v6542_v29 = vld [vmem:[#allocation10 + $0x8] ss:$12 sps:$4 sm:$0xff]   ;;  %v6545_v30 = vld [vmem:[#allocation10 + $0x18] ss:$12 sps:$4 sm:$0xff]   ;;  %v6554_v32 = vld [vmem:[#allocation10 + $0x20] ss:$12 sps:$4 sm:$0xff]  }
  0xb2   : > { %4313 = vmatmul.mubr.msk.bf16.vlgmr.msra.gmra.mrb[0].mxu0 %vm628_vm1, %v579_v9  ;;  %4695 = vmatprep.subr.bf16.mxu1 %v8231_v5  ;;  %v6549_v31 = vld [vmem:[#allocation10 + $0x34] ss:$12 sps:$4 sm:$0xff]   ;;  %v6559_v33 = vld [vmem:[#allocation10 + $0x30] ss:$12 sps:$4 sm:$0xff]   ;;  %v6563_v34 = vld [vmem:[#allocation10 + $0x4c] ss:$12 sps:$4 sm:$0xff]  }
  0xb3   : > { %722 = vmatpush1.bf16.msra.mxu0 %v6392_v2  ;;  %753 = vmatprep.mubr.bf16.mxu0 %v8197_v3  ;;  %v6566_v35 = vld [vmem:[#allocation10 + $0x38] ss:$12 sps:$4 sm:$0xff]   ;;  %v6569_v36 = vld [vmem:[#allocation10 + $0x48] ss:$12 sps:$4 sm:$0xff]   ;;  %v6576_v38 = vld [vmem:[#allocation10 + $0x50] ss:$12 sps:$4 sm:$0xff]  }
  0xb4   : > { %723 = vmatprep.subr.bf16.mxu0 %v6397_v4  ;;  %4692 = vmatmul.mubr.msk.bf16.vlgmr.msra.gmra.mrb[0].mxu1 %vm628_vm1, %v579_v9  ;;  %v6573_v37 = vld [vmem:[#allocation10 + $0x64] ss:$12 sps:$4 sm:$0xff]   ;;  %v6579_v39 = vld [vmem:[#allocation10 + $0x60] ss:$12 sps:$4 sm:$0xff]   ;;  %v6583_v40 = vld [vmem:[#allocation10 + $0x7c] ss:$12 sps:$4 sm:$0xff]  }
  0xb5   : > { %4696 = vmatpush3.bf16.msra.mxu1 %v6406_v7  ;;  %4699 = vmatprep.mubr.msk.bf16.mxu1 %vm6096_vm0, %v8231_v5  ;;  %v6586_v41 = vld [vmem:[#allocation10 + $0x68] ss:$12 sps:$4 sm:$0xff]   ;;  %v6589_v42 = vld [vmem:[#allocation10 + $0x78] ss:$12 sps:$4 sm:$0xff]   ;;  %v6596_v44 = vld [vmem:[#allocation10 + $0x80] ss:$12 sps:$4 sm:$0xff]  }
  0xb6   : > { %4697 = vmatprep.subr.bf16.mxu1 %v8231_v5  ;;  %2252 = vperm.xlu0 %5438, %v2250_v18   ;;  %v6593_v43 = vld [vmem:[#allocation10 + $0x94] ss:$12 sps:$4 sm:$0xff]   ;;  %v6599_v45 = vld [vmem:[#allocation10 + $0x90] ss:$12 sps:$4 sm:$0xff]   ;;  %v6603_v46 = vld [vmem:[#allocation10 + $0xac] ss:$12 sps:$4 sm:$0xff]  }
  0xb7   : > { %724 = vmatpush1.bf16.msra.mxu0 %v6401_v6  ;;  %v6606_v47 = vld [vmem:[#allocation10 + $0x98] ss:$12 sps:$4 sm:$0xff]   ;;  %v6609_v48 = vld [vmem:[#allocation10 + $0xa8] ss:$12 sps:$4 sm:$0xff]   ;;  %v6618_v51 = vld [vmem:[#allocation10 + $0xb0] ss:$12 sps:$4 sm:$0xff]  }
  0xb8   : > { %811 = vmatprep.subr.bf16.mxu0 %v6390_v1  ;;  %v6627_v52 = vld [vmem:[#allocation13 + $0x4] ss:$12 sps:$4 sm:$0xff]   ;;  %v6629_v53 = vld [vmem:[#allocation13] ss:$12 sps:$4 sm:$0xff]   ;;  %v6631_v54 = vld [vmem:[#allocation13 + $0x8] ss:$12 sps:$4 sm:$0xff]  }
  0xb9   : > { %4698 = vmatpush3.bf16.msra.mxu1 %v6410_v8  ;;  %v6637_v55 = vld [vmem:[#allocation13 + $0x1c] ss:$12 sps:$4 sm:$0xff]   ;;  %v6639_v56 = vld [vmem:[#allocation13 + $0x18] ss:$12 sps:$4 sm:$0xff]   ;;  %v6641_v57 = vld [vmem:[#allocation13 + $0x20] ss:$12 sps:$4 sm:$0xff]  }
  0xba   : > { %4316 = vmatmul.mubr.msk.bf16.vlgmr.msra.gmra.mrb[4].mxu0 %vm628_vm1, %v4315_v10  ;;  %4703 = vmatprep.subr.bf16.mxu1 %v8231_v5  ;;  %v6645_v58 = vld [vmem:[#allocation13 + $0x34] ss:$12 sps:$4 sm:$0xff]   ;;  %v6647_v59 = vld [vmem:[#allocation13 + $0x38] ss:$12 sps:$4 sm:$0xff]   ;;  %v6651_v60 = vld [vmem:[#allocation13 + $0x30] ss:$12 sps:$4 sm:$0xff]  }
  0xbb   : > { %812 = vmatpush1.bf16.msra.mxu0 %v6392_v2  ;;  %843 = vmatprep.mubr.bf16.mxu0 %v8197_v3  ;;  %v6657_v61 = vld [vmem:[#allocation13 + $0x4c] ss:$12 sps:$4 sm:$0xff]   ;;  %v6659_v62 = vld [vmem:[#allocation13 + $0x48] ss:$12 sps:$4 sm:$0xff]   ;;  %v6661_v63 = vld [vmem:[#allocation13 + $0x50] ss:$12 sps:$4 sm:$0xff]  }
  0xbc   : > { %813 = vmatprep.subr.bf16.mxu0 %v6397_v4  ;;  %4700 = vmatmul.mubr.msk.bf16.vlgmr.msra.gmra.mrb[4].mxu1 %vm628_vm1, %v4315_v10  ;;  %v6666_v0 = vld [vmem:[#allocation13 + $0x64] ss:$12 sps:$4 sm:$0xff]   ;;  %v6699_v12 = vld [vmem:[#allocation13 + $0xa8] ss:$12 sps:$4 sm:$0xff]   ;;  %v6713_v18 = vld [vmem:[#allocation11] ss:$12 sps:$4 sm:$0xff]  }
  0xbd   : > { %4704 = vmatpush3.bf16.msra.mxu1 %v6406_v7  ;;  %4707 = vmatprep.mubr.msk.bf16.mxu1 %vm6096_vm0, %v8231_v5  ;;  %v6689_v9 = vld [vmem:[#allocation13 + $0x90] ss:$12 sps:$4 sm:$0xff]   ;;  %v6691_v10 = vld [vmem:[#allocation13 + $0x98] ss:$12 sps:$4 sm:$0xff]   ;;  %8388 = vst [vmem:[#allocation30_spill] sm:$0xff] %v6699_v12  ;;  %v6709_v16 = vld [vmem:[#allocation3] sm:$0xff] }
  0xbe   : > { %4705 = vmatprep.subr.bf16.mxu1 %v8231_v5  ;;  %3152 = vperm.xlu0 %5438, %v3150_v20   ;;  %8385 = vst [vmem:[#allocation27_spill] sm:$0xff] %v6689_v9  ;;  %8386 = vst [vmem:[#allocation28_spill] sm:$0xff] %v6691_v10  ;;  %v6701_v13 = vld [vmem:[#allocation13 + $0xb0] ss:$12 sps:$4 sm:$0xff]   ;;  %v6715_v19 = vld [vmem:[#allocation11 + $0x8] ss:$12 sps:$4 sm:$0xff]  }
  0xbf   : > { %814 = vmatpush1.bf16.msra.mxu0 %v6401_v6  ;;  %8389 = vst [vmem:[#allocation31_spill] sm:$0xff] %v6701_v13  ;;  %v6706_v15 = vld [vmem:[#allocation11 + $0x4] ss:$12 sps:$4 sm:$0xff]   ;;  %8391 = vst [vmem:[#allocation33_spill] sm:$0xff] %v6709_v16  ;;  %v6720_v20 = vld [vmem:[#allocation11 + $0x1c] ss:$12 sps:$4 sm:$0xff]  }
  0xc0   : > { %901 = vmatprep.subr.bf16.mxu0 %v6390_v1  ;;  %8390 = vst [vmem:[#allocation32_spill] sm:$0xff] %v6706_v15  ;;  %8392 = vst [vmem:[#allocation34_spill] sm:$0xff] %v6713_v18  ;;  %s4026_s7 = sadd.s32 7, %s6437_s20  ;;  %s8432_s23 = sld [smem:[#allocation67_spill]] }
  0xc1   : > { %4706 = vmatpush3.bf16.msra.mxu1 %v6410_v8  ;;  %8393 = vst [vmem:[#allocation35_spill] sm:$0xff] %v6715_v19  ;;  %8394 = vst [vmem:[#allocation36_spill] sm:$0xff] %v6720_v20  ;;  %s8437_s16 = sld [smem:[#allocation68_spill]]  ;;  %s8634_s10 = sadd.s32 4294967295, %s6082_s18  }
  0xc2   : > { %4319 = vmatmul.mubr.msk.bf16.vlgmr.msra.gmra.mrb[8].mxu0 %vm628_vm1, %v4318_v11  ;;  %4711 = vmatprep.subr.bf16.mxu1 %v8231_v5  ;;  %p8132_p9 = scmp.eq.s32.totalorder %s8634_s10, 1 }
  0xc3   : > { %902 = vmatpush1.bf16.msra.mxu0 %v6392_v2  ;;  %933 = vmatprep.mubr.bf16.mxu0 %v8197_v3 }
  0xc4   : > { %903 = vmatprep.subr.bf16.mxu0 %v6397_v4  ;;  %4708 = vmatmul.mubr.msk.bf16.vlgmr.msra.gmra.mrb[8].mxu1 %vm628_vm1, %v4318_v11  ;;  %v6696_v11 = vld [vmem:[#allocation13 + $0xac] ss:$12 sps:$4 sm:$0xff]  }
  0xc5   : > { %4712 = vmatpush3.bf16.msra.mxu1 %v6406_v7  ;;  %4715 = vmatprep.mubr.msk.bf16.mxu1 %vm6096_vm0, %v8231_v5  ;;  %8387 = vst [vmem:[#allocation29_spill] sm:$0xff] %v6696_v11 }
  0xc6   : > { %4713 = vmatprep.subr.bf16.mxu1 %v8231_v5  ;;  %3752 = vperm.xlu0 %5438, %v3750_v22   ;;  %v6725_v22 = vld [vmem:[#allocation11 + $0x20] ss:$12 sps:$4 sm:$0xff]  }
  0xc7   : > { %904 = vmatpush1.bf16.msra.mxu0 %v6401_v6  ;;  %8396 = vst [vmem:[#allocation38_spill] sm:$0xff] %v6725_v22  ;;  %s8438_s22 = smov %s8437_s16 }
  0xc8   : > { %991 = vmatprep.subr.bf16.mxu0 %v6390_v1 }
  0xc9   : > { %4714 = vmatpush3.bf16.msra.mxu1 %v6410_v8 }
  0xca   : > { %4322 = vmatmul.mubr.msk.bf16.vlgmr.msra.gmra.mrb[12].mxu0 %vm628_vm1, %v4321_v17  ;;  %4719 = vmatprep.subr.bf16.mxu1 %v8231_v5 }
  0xcb   : > { %992 = vmatpush1.bf16.msra.mxu0 %v6392_v2  ;;  %1023 = vmatprep.mubr.bf16.mxu0 %v8197_v3 }
  0xcc   : > { %993 = vmatprep.subr.bf16.mxu0 %v6397_v4  ;;  %4716 = vmatmul.mubr.msk.bf16.vlgmr.msra.gmra.mrb[12].mxu1 %vm628_vm1, %v4321_v17  ;;  %v1558_v17 = vpack.c.bf16 %v6709_v16, %v6709_v16  ;;  %v6794_v16 = vld [vmem:[#allocation11 + $0xa8] ss:$12 sps:$4 sm:$0xff]  }
  0xcd   : > { %4720 = vmatpush3.bf16.msra.mxu1 %v6406_v7  ;;  %4723 = vmatprep.mubr.msk.bf16.mxu1 %vm6096_vm0, %v8231_v5  ;;  %8414 = vst [vmem:[#allocation55_spill] sm:$0xff] %v6794_v16 }
  0xce   : > { %4721 = vmatprep.subr.bf16.mxu1 %v8231_v5 }
  0xcf   : > { %994 = vmatpush1.bf16.msra.mxu0 %v6401_v6 }
  0xd0   : > { %1081 = vmatprep.subr.bf16.mxu0 %v6390_v1 }
  0xd1   : > { %4722 = vmatpush3.bf16.msra.mxu1 %v6410_v8 }
  0xd2   : > { %4325 = vmatmul.mubr.msk.bf16.vlgmr.msra.gmra.mrb[16].mxu0 %vm628_vm1, %v4324_v21  ;;  %4727 = vmatprep.subr.bf16.mxu1 %v8231_v5 }
  0xd3   : > { %1082 = vmatpush1.bf16.msra.mxu0 %v6392_v2  ;;  %1113 = vmatprep.mubr.bf16.mxu0 %v8197_v3 }
  0xd4   : > { %1083 = vmatprep.subr.bf16.mxu0 %v6397_v4  ;;  %4724 = vmatmul.mubr.msk.bf16.vlgmr.msra.gmra.mrb[16].mxu1 %vm628_vm1, %v4324_v21  ;;  %v6723_v21 = vld [vmem:[#allocation11 + $0x18] ss:$12 sps:$4 sm:$0xff]  }
  0xd5   : > { %4728 = vmatpush3.bf16.msra.mxu1 %v6406_v7  ;;  %4731 = vmatprep.mubr.msk.bf16.mxu1 %vm6096_vm0, %v8231_v5  ;;  %8395 = vst [vmem:[#allocation37_spill] sm:$0xff] %v6723_v21 }
  0xd6   : > { %4729 = vmatprep.subr.bf16.mxu1 %v8231_v5 }
  0xd7   : > { %1084 = vmatpush1.bf16.msra.mxu0 %v6401_v6 }
  0xd8   : > { %1171 = vmatprep.subr.bf16.mxu0 %v6390_v1 }
  0xd9   : > { %4730 = vmatpush3.bf16.msra.mxu1 %v6410_v8 }
  0xda   : > { %4328 = vmatmul.mubr.msk.bf16.vlgmr.msra.gmra.mrb[20].mxu0 %vm628_vm1, %v4327_v23  ;;  %4735 = vmatprep.subr.bf16.mxu1 %v8231_v5 }
  0xdb   : > { %1172 = vmatpush1.bf16.msra.mxu0 %v6392_v2  ;;  %1203 = vmatprep.mubr.bf16.mxu0 %v8197_v3 }
  0xdc   : > { %1173 = vmatprep.subr.bf16.mxu0 %v6397_v4  ;;  %4732 = vmatmul.mubr.msk.bf16.vlgmr.msra.gmra.mrb[20].mxu1 %vm628_vm1, %v4327_v23  ;;  %v6733_v23 = vld [vmem:[#allocation11 + $0x34] ss:$12 sps:$4 sm:$0xff]  }
  0xdd   : > { %4736 = vmatpush3.bf16.msra.mxu1 %v6406_v7  ;;  %4739 = vmatprep.mubr.msk.bf16.mxu1 %vm6096_vm0, %v8231_v5  ;;  %8397 = vst [vmem:[#allocation39_spill] sm:$0xff] %v6733_v23 }
  0xde   : > { %4737 = vmatprep.subr.bf16.mxu1 %v8231_v5 }
  0xdf   : > { %1174 = vmatpush1.bf16.msra.mxu0 %v6401_v6 }
  0xe0   : > { %1261 = vmatprep.subr.bf16.mxu0 %v6390_v1  ;;  %v6669_v1 = vld [vmem:[#allocation13 + $0x60] ss:$12 sps:$4 sm:$0xff]  }
  0xe1   : > { %4738 = vmatpush3.bf16.msra.mxu1 %v6410_v8  ;;  %8379 = vst [vmem:[#allocation21_spill] sm:$0xff] %v6669_v1 }
  0xe2   : > { %4331 = vmatmul.mubr.msk.bf16.vlgmr.msra.gmra.mrb[24].mxu0 %vm628_vm1, %v4330_v24  ;;  %4743 = vmatprep.subr.bf16.mxu1 %v8231_v5 }
  0xe3   : > { %1262 = vmatpush1.bf16.msra.mxu0 %v6392_v2  ;;  %1293 = vmatprep.mubr.bf16.mxu0 %v8197_v3  ;;  %v6671_v2 = vld [vmem:[#allocation13 + $0x68] ss:$12 sps:$4 sm:$0xff]  }
  0xe4   : > { %1263 = vmatprep.subr.bf16.mxu0 %v6397_v4  ;;  %4740 = vmatmul.mubr.msk.bf16.vlgmr.msra.gmra.mrb[24].mxu1 %vm628_vm1, %v4330_v24  ;;  %8380 = vst [vmem:[#allocation22_spill] sm:$0xff] %v6671_v2  ;;  %v6676_v4 = vld [vmem:[#allocation13 + $0x7c] ss:$12 sps:$4 sm:$0xff]  }
  0xe5   : > { %4744 = vmatpush3.bf16.msra.mxu1 %v6406_v7  ;;  %4747 = vmatprep.mubr.msk.bf16.mxu1 %vm6096_vm0, %v8231_v5  ;;  %8381 = vst [vmem:[#allocation23_spill] sm:$0xff] %v6676_v4  ;;  %v6681_v7 = vld [vmem:[#allocation13 + $0x80] ss:$12 sps:$4 sm:$0xff]   ;;  %v6736_v24 = vld [vmem:[#allocation11 + $0x30] ss:$12 sps:$4 sm:$0xff]  }
  0xe6   : > { %4745 = vmatprep.subr.bf16.mxu1 %v8231_v5  ;;  %8383 = vst [vmem:[#allocation25_spill] sm:$0xff] %v6681_v7  ;;  %8398 = vst [vmem:[#allocation40_spill] sm:$0xff] %v6736_v24 }
  0xe7   : > { %1264 = vmatpush1.bf16.msra.mxu0 %v6401_v6  ;;  %v6679_v6 = vld [vmem:[#allocation13 + $0x78] ss:$12 sps:$4 sm:$0xff]  }
  0xe8   : > { %1477 = vmatprep.subr.bf16.mxu0 %v6525_v25  ;;  %8382 = vst [vmem:[#allocation24_spill] sm:$0xff] %v6679_v6 }
  0xe9   : > { %4746 = vmatpush3.bf16.msra.mxu1 %v6410_v8  ;;  %v6686_v8 = vld [vmem:[#allocation13 + $0x94] ss:$12 sps:$4 sm:$0xff]  }
  0xea   : > { %4334 = vmatmul.mubr.msk.bf16.vlgmr.msra.gmra.mrb[28].mxu0 %vm628_vm1, %v4333_v26  ;;  %4751 = vmatprep.subr.bf16.mxu1 %v8231_v5  ;;  %8384 = vst [vmem:[#allocation26_spill] sm:$0xff] %v6686_v8 }
  0xeb   : > { %1478 = vmatpush1.bf16.msra.mxu0 %v6534_v27  ;;  %1509 = vmatprep.mubr.bf16.mxu0 %v8197_v3 }
  0xec   : > { %1479 = vmatprep.subr.bf16.mxu0 %v6538_v28  ;;  %4748 = vmatmul.mubr.msk.bf16.vlgmr.msra.gmra.mrb[28].mxu1 %vm628_vm1, %v4333_v26  ;;  %v6738_v26 = vld [vmem:[#allocation11 + $0x38] ss:$12 sps:$4 sm:$0xff]  }
  0xed   : > { %4752 = vmatpush3.bf16.msra.mxu1 %v6542_v29  ;;  %4767 = vmatprep.mubr.msk.bf16.mxu1 %vm6096_vm0, %v8231_v5  ;;  %8399 = vst [vmem:[#allocation41_spill] sm:$0xff] %v6738_v26 }
  0xee   : > { %4753 = vmatprep.subr.bf16.mxu1 %v8231_v5 }
  0xef   : > { %1480 = vmatpush1.bf16.msra.mxu0 %v6545_v30 }
  0xf0   : > { %1481 = vmatprep.subr.bf16.mxu0 %v6549_v31 }
  0xf1   : > { %4754 = vmatpush3.bf16.msra.mxu1 %v6554_v32 }
  0xf2   : > { %4755 = vmatprep.subr.bf16.mxu1 %v8231_v5 }
  0xf3   : > { %1482 = vmatpush1.bf16.msra.mxu0 %v6559_v33 }
  0xf4   : > { %1483 = vmatprep.subr.bf16.mxu0 %v6563_v34 }
  0xf5   : > { %4756 = vmatpush3.bf16.msra.mxu1 %v6566_v35 }
  0xf6   : > { %4757 = vmatprep.subr.bf16.mxu1 %v8231_v5 }
  0xf7   : > { %1484 = vmatpush1.bf16.msra.mxu0 %v6569_v36 }
  0xf8   : > { %1485 = vmatprep.subr.bf16.mxu0 %v6573_v37 }
  0xf9   : > { %4758 = vmatpush3.bf16.msra.mxu1 %v6576_v38 }
  0xfa   : > { %4759 = vmatprep.subr.bf16.mxu1 %v8231_v5 }
  0xfb   : > { %1486 = vmatpush1.bf16.msra.mxu0 %v6579_v39 }
  0xfc   : > { %1487 = vmatprep.subr.bf16.mxu0 %v6583_v40 }
  0xfd   : > { %4760 = vmatpush3.bf16.msra.mxu1 %v6586_v41 }
  0xfe   : > { %4761 = vmatprep.subr.bf16.mxu1 %v8231_v5 }
  0xff   : > { %1488 = vmatpush1.bf16.msra.mxu0 %v6589_v42 }
 0x100   : > { %1489 = vmatprep.subr.bf16.mxu0 %v6593_v43 }
 0x101   : > { %4762 = vmatpush3.bf16.msra.mxu1 %v6596_v44 }
 0x102   : > { %4763 = vmatprep.subr.bf16.mxu1 %v8231_v5 }
 0x103   : > { %1490 = vmatpush1.bf16.msra.mxu0 %v6599_v45 }
 0x104   : > { %1491 = vmatprep.subr.bf16.mxu0 %v6603_v46 }
 0x105   : > { %4764 = vmatpush3.bf16.msra.mxu1 %v6606_v47 }
 0x106   : > { %4765 = vmatprep.subr.bf16.mxu1 %v8231_v5 }
 0x107   : > { %1492 = vmatpush1.bf16.msra.mxu0 %v6609_v48 }
 0x108   : > { %1687 = vmatprep.subr.bf16.mxu0 %v6627_v52 }
 0x109   : > { %4766 = vmatpush3.bf16.msra.mxu1 %v6618_v51 }
 0x10a   : > { %1510 = vmatmul.mubr.bf16.vlgmr.msra.gmra.mrb[0].mxu0 %v1348_v50  ;;  %4771 = vmatprep.subr.bf16.mxu1 %v8231_v5 }
 0x10b   : > { %1719 = vmatprep.mubr.bf16.mxu0 %v8197_v3  ;;  %1688 = vmatpush1.bf16.msra.mxu0 %v6629_v53 }
 0x10c   : > { %4768 = vmatmul.mubr.bf16.vlgmr.msra.gmra.mrb[32].mxu1 %v1348_v50  ;;  %1689 = vmatprep.subr.bf16.mxu0 %v6637_v55  ;;  %v6743_v50 = vld [vmem:[#allocation11 + $0x4c] ss:$12 sps:$4 sm:$0xff]  }
 0x10d   : > { %4787 = vmatprep.mubr.msk.bf16.mxu1 %vm6096_vm0, %v8231_v5  ;;  %4772 = vmatpush3.bf16.msra.mxu1 %v6631_v54  ;;  %8400 = vst [vmem:[#allocation42_spill] sm:$0xff] %v6743_v50 }
 0x10e   : > { %4773 = vmatprep.subr.bf16.mxu1 %v8231_v5 }
 0x10f   : > { %1690 = vmatpush1.bf16.msra.mxu0 %v6639_v56 }
 0x110   : > { %1691 = vmatprep.subr.bf16.mxu0 %v6645_v58 }
 0x111   : > { %4774 = vmatpush3.bf16.msra.mxu1 %v6641_v57 }
 0x112   : > { %4775 = vmatprep.subr.bf16.mxu1 %v8231_v5 }
 0x113   : > { %1692 = vmatpush1.bf16.msra.mxu0 %v6651_v60 }
 0x114   : > { %1693 = vmatprep.subr.bf16.mxu0 %v6657_v61 }
 0x115   : > { %4776 = vmatpush3.bf16.msra.mxu1 %v6647_v59 }
 0x116   : > { %4777 = vmatprep.subr.bf16.mxu1 %v8231_v5 }
 0x117   : > { %1694 = vmatpush1.bf16.msra.mxu0 %v6659_v62 }
 0x118   : > { %1695 = vmatprep.subr.bf16.mxu0 %v6666_v0 }
 0x119   : > { %4778 = vmatpush3.bf16.msra.mxu1 %v6661_v63 }
 0x11a   : > { %4779 = vmatprep.subr.bf16.mxu1 %v8231_v5 }
 0x11b   : > { %1696 = vmatpush1.bf16.msra.mxu0 %v6669_v1 }
 0x11c   : > { %1697 = vmatprep.subr.bf16.mxu0 %v6676_v4 }
 0x11d   : > { %4780 = vmatpush3.bf16.msra.mxu1 %v6671_v2 }
 0x11e   : > { %4781 = vmatprep.subr.bf16.mxu1 %v8231_v5 }
 0x11f   : > { %1698 = vmatpush1.bf16.msra.mxu0 %v6679_v6 }
 0x120   : > { %1699 = vmatprep.subr.bf16.mxu0 %v6686_v8 }
 0x121   : > { %4782 = vmatpush3.bf16.msra.mxu1 %v6681_v7 }
 0x122   : > { %4783 = vmatprep.subr.bf16.mxu1 %v8231_v5 }
 0x123   : > { %1700 = vmatpush1.bf16.msra.mxu0 %v6689_v9 }
 0x124   : > { %1701 = vmatprep.subr.bf16.mxu0 %v6696_v11 }
 0x125   : > { %4784 = vmatpush3.bf16.msra.mxu1 %v6691_v10 }
 0x126   : > { %4785 = vmatprep.subr.bf16.mxu1 %v8231_v5 }
 0x127   : > { %1702 = vmatpush1.bf16.msra.mxu0 %v6699_v12 }
 0x128   : > { %1951 = vmatprep.subr.bf16.mxu0 %v6706_v15 }
 0x129   : > { %4786 = vmatpush3.bf16.msra.mxu1 %v6701_v13 }
 0x12a   : > { %4791 = vmatprep.subr.bf16.mxu1 %v8231_v5  ;;  %1720 = vmatmul.mubr.bf16.vlgmr.msra.gmra.mrb[32].mxu0 %v1558_v17 }
 0x12b   : > { %1952 = vmatpush1.bf16.msra.mxu0 %v6713_v18  ;;  %1983 = vmatprep.mubr.bf16.mxu0 %v8197_v3  ;;  %v6748_v3 = vld [vmem:[#allocation11 + $0x50] ss:$12 sps:$4 sm:$0xff]  }
 0x12c   : > { %4788 = vmatmul.mubr.bf16.vlgmr.msra.gmra.mrb[36].mxu1 %v1558_v17  ;;  %1953 = vmatprep.subr.bf16.mxu0 %v6720_v20  ;;  %v6746_v17 = vld [vmem:[#allocation11 + $0x48] ss:$12 sps:$4 sm:$0xff]   ;;  %8402 = vst [vmem:[#allocation44_spill] sm:$0xff] %v6748_v3  ;;  %v6782_v20 = vld [vmem:[#allocation11 + $0x98] ss:$12 sps:$4 sm:$0xff]  }
 0x12d   : > { %4792 = vmatpush3.bf16.msra.mxu1 %v6715_v19  ;;  %4807 = vmatprep.mubr.msk.bf16.mxu1 %vm6096_vm0, %v8231_v5  ;;  %8401 = vst [vmem:[#allocation43_spill] sm:$0xff] %v6746_v17  ;;  %8411 = vst [vmem:[#allocation53_spill] sm:$0xff] %v6782_v20 }
 0x12e   : > { %4793 = vmatprep.subr.bf16.mxu1 %v8231_v5 }
 0x12f   : > { %1954 = vmatpush1.bf16.msra.mxu0 %v6723_v21 }
 0x130   : > { %1955 = vmatprep.subr.bf16.mxu0 %v6733_v23  ;;  %v581_v23 = vlaneseq }
 0x131   : > { %4794 = vmatpush3.bf16.msra.mxu1 %v6725_v22  ;;  %v6753_v22 = vld [vmem:[#allocation11 + $0x64] ss:$12 sps:$4 sm:$0xff]  }
 0x132   : > { %4795 = vmatprep.subr.bf16.mxu1 %v8231_v5  ;;  %8403 = vst [vmem:[#allocation45_spill] sm:$0xff] %v6753_v22  ;;  %v6771_v21 = vshrl.u32 %v581_v23, 7 }
 0x133   : > { %1956 = vmatpush1.bf16.msra.mxu0 %v6736_v24  ;;  %v6756_v24 = vld [vmem:[#allocation11 + $0x60] ss:$12 sps:$4 sm:$0xff]  }
 0x134   : > { %1957 = vmatprep.subr.bf16.mxu0 %v6743_v50  ;;  %8404 = vst [vmem:[#allocation46_spill] sm:$0xff] %v6756_v24  ;;  %v6763_v50 = vld [vmem:[#allocation11 + $0x7c] ss:$12 sps:$4 sm:$0xff]   ;;  %v8249_v23 = vsub.s32 2, %v6771_v21 }
 0x135   : > { %4796 = vmatpush3.bf16.msra.mxu1 %v6738_v26  ;;  %v6758_v26 = vld [vmem:[#allocation11 + $0x68] ss:$12 sps:$4 sm:$0xff]   ;;  %8406 = vst [vmem:[#allocation48_spill] sm:$0xff] %v6763_v50 }
 0x136   : > { %4797 = vmatprep.subr.bf16.mxu1 %v8231_v5  ;;  %8405 = vst [vmem:[#allocation47_spill] sm:$0xff] %v6758_v26 }
 0x137   : > { %1958 = vmatpush1.bf16.msra.mxu0 %v6746_v17  ;;  %v6768_v17 = vld [vmem:[#allocation11 + $0x80] ss:$12 sps:$4 sm:$0xff]  }
 0x138   : > { %1959 = vmatprep.subr.bf16.mxu0 %v6753_v22  ;;  %8408 = vst [vmem:[#allocation50_spill] sm:$0xff] %v6768_v17  ;;  %v6775_v22 = vld [vmem:[#allocation11 + $0x94] ss:$12 sps:$4 sm:$0xff]  }
 0x139   : > { %4798 = vmatpush3.bf16.msra.mxu1 %v6748_v3  ;;  %v6766_v3 = vld [vmem:[#allocation11 + $0x78] ss:$12 sps:$4 sm:$0xff]   ;;  %8409 = vst [vmem:[#allocation51_spill] sm:$0xff] %v6775_v22 }
 0x13a   : > { %4799 = vmatprep.subr.bf16.mxu1 %v8231_v5  ;;  %8407 = vst [vmem:[#allocation49_spill] sm:$0xff] %v6766_v3 }
 0x13b   : > { %1960 = vmatpush1.bf16.msra.mxu0 %v6756_v24 }
 0x13c   : > { %1961 = vmatprep.subr.bf16.mxu0 %v6763_v50 }
 0x13d   : > { %4800 = vmatpush3.bf16.msra.mxu1 %v6758_v26  ;;  %v6780_v26 = vld [vmem:[#allocation11 + $0x90] ss:$12 sps:$4 sm:$0xff]  }
 0x13e   : > { %4801 = vmatprep.subr.bf16.mxu1 %v8231_v5  ;;  %8410 = vst [vmem:[#allocation52_spill] sm:$0xff] %v6780_v26 }
 0x13f   : > { %1962 = vmatpush1.bf16.msra.mxu0 %v6766_v3  ;;  %v8413_v3 = vmov 0.0  }
 0x140   : > { %1963 = vmatprep.subr.bf16.mxu0 %v6775_v22 }
 0x141   : > { %4802 = vmatpush3.bf16.msra.mxu1 %v6768_v17  ;;  %v6788_v17 = vld [vmem:[#allocation11 + $0xac] ss:$12 sps:$4 sm:$0xff]  }
 0x142   : > { %4803 = vmatprep.subr.bf16.mxu1 %v8231_v5  ;;  %8412 = vst [vmem:[#allocation54_spill] sm:$0xff] %v6788_v17  ;;  %v477_v5 = vld [vmem:[%s8181_s3] sm:$0x7] }
 0x143   : > { %1964 = vmatpush1.bf16.msra.mxu0 %v6780_v26 }
 0x144   : > { %1965 = vmatprep.subr.bf16.mxu0 %v6788_v17 }
 0x145   : > { %4804 = vmatpush3.bf16.msra.mxu1 %v6782_v20 }
 0x146   : > { %4805 = vmatprep.subr.bf16.mxu1 %v8413_v3 }
 0x147   : > { %1966 = vmatpush1.bf16.msra.mxu0 %v6794_v16 }
 0x148   : > { %2060 = vmatprep.subr.bf16.mxu0 %v6525_v25 }
 0x187   : > { %v6777_v24 = vpop.f32.mrb[0].mxu1 }
 0x188   : > { %v4693_v19 = vpop.f32.mrb[1].mxu1 }
 0x189   : > { %v710_v50 = vpop.f32.mrb[2].mxu1  ;;  %v6796_v19 = vld [vmem:[#allocation11 + $0xb0] ss:$12 sps:$4 sm:$0xff]  }
 0x18a   : > { %v4694_v18 = vpop.f32.mrb[3].mxu1  ;;  %8415 = vst [vmem:[#allocation56_spill] sm:$0xff] %v6796_v19  ;;  %4806 = vmatpush3.bf16.msra.mxu1 %v6796_v19 }
 0x18b   : > { %v6801_v18 = vrot.slane %v477_v5, %v8249_v23  ;;  %4811 = vmatprep.subr.bf16.mxu1 %v8413_v3 }
 0x18f   : > { %v796_v50 = vpop.f32.mrb[4].mxu1 }
 0x190   : > { %v6808_v20 = vadd.f32 %v796_v50, %v6801_v18  ;;  %v4701_v26 = vpop.f32.mrb[5].mxu1 }
 0x191   : > { %v799_v22 = vpop.f32.mrb[6].mxu1 }
 0x192   : > { %8416 = vst [vmem:[#allocation57_spill] sm:$0xff] %v6808_v20  ;;  %v4702_v14 = vpop.f32.mrb[7].mxu1 }
 0x197   : > { %v886_v17 = vpop.f32.mrb[8].mxu1 }
 0x198   : > { %v6811_v15 = vadd.f32 %v886_v17, %v6801_v18  ;;  %v4709_v23 = vpop.f32.mrb[9].mxu1 }
 0x199   : > { %v889_v13 = vpop.f32.mrb[10].mxu1 }
 0x19a   : > { %8417 = vst [vmem:[#allocation58_spill] sm:$0xff] %v6811_v15  ;;  %v4710_v16 = vpop.f32.mrb[11].mxu1 }
 0x19f   : > { %v976_v12 = vpop.f32.mrb[12].mxu1 }
 0x1a0   : > { %v6814_v19 = vadd.f32 %v976_v12, %v6801_v18  ;;  %v4717_v25 = vpop.f32.mrb[13].mxu1 }
 0x1a1   : > { %v979_v11 = vpop.f32.mrb[14].mxu1 }
 0x1a2   : > { %8418 = vst [vmem:[#allocation59_spill] sm:$0xff] %v6814_v19  ;;  %v4718_v10 = vpop.f32.mrb[15].mxu1 }
 0x1a7   : > { %v1066_v9 = vpop.f32.mrb[16].mxu1 }
 0x1a8   : > { %v6817_v50 = vadd.f32 %v1066_v9, %v6801_v18  ;;  %v4725_v22 = vpop.f32.mrb[17].mxu1 }
 0x1a9   : > { %v1069_v14 = vpop.f32.mrb[18].mxu1 }
 0x1aa   : > { %8419 = vst [vmem:[#allocation60_spill] sm:$0xff] %v6817_v50  ;;  %v4726_v26 = vpop.f32.mrb[19].mxu1 }
 0x1af   : > { %v1156_v20 = vpop.f32.mrb[20].mxu1 }
 0x1b0   : > { %v6820_v17 = vadd.f32 %v1156_v20, %v6801_v18  ;;  %v4733_v13 = vpop.f32.mrb[21].mxu1  ;;  %v8265_v20 = vsub.s32 0, %v6771_v21 }
 0x1b1   : > { %v1159_v16 = vpop.f32.mrb[22].mxu1 }
 0x1b2   : > { %8420 = vst [vmem:[#allocation61_spill] sm:$0xff] %v6820_v17  ;;  %v4734_v23 = vpop.f32.mrb[23].mxu1  ;;  %v6831_v13 = vrot.slane %v477_v5, %v8265_v20 }
 0x1b3   : > { %v8266_v23 = vsub.s32 1, %v6771_v21 }
 0x1b7   : > { %v1246_v15 = vpop.f32.mrb[24].mxu1 }
 0x1b8   : > { %v6823_v12 = vadd.f32 %v1246_v15, %v6801_v18  ;;  %v4741_v25 = vpop.f32.mrb[25].mxu1 }
 0x1b9   : > { %v1249_v10 = vpop.f32.mrb[26].mxu1 }
 0x1ba   : > { %8421 = vst [vmem:[#allocation62_spill] sm:$0xff] %v6823_v12  ;;  %v4742_v11 = vpop.f32.mrb[27].mxu1 }
 0x1bf   : > { %v1336_v19 = vpop.f32.mrb[28].mxu1 }
 0x1c0   : > { %v6826_v9 = vadd.f32 %v1336_v19, %v6801_v18  ;;  %v4749_v22 = vpop.f32.mrb[29].mxu1 }
 0x1c1   : > { %v1339_v14 = vpop.f32.mrb[30].mxu1  ;;  %v6837_v22 = vrot.slane %v477_v5, %v8266_v23  ;;  %v708_v5 = vadd.f32 %v6777_v24, %v6801_v18  ;;  %v8424_v18 = vmov 0  }
 0x1c2   : > { %8422 = vst [vmem:[#allocation63_spill] sm:$0xff] %v6826_v9  ;;  %v4750_v26 = vpop.f32.mrb[31].mxu1 }
 0x1dd   : > { %v1511_v16 = vpop.f32.mrb[0].mxu0 }
 0x1de   : > { %v5231_v15 = vadd.f32 %v1511_v16, %v6831_v13  ;;  %v1513_v25 = vpop.f32.mrb[1].mxu0 }
 0x1df   : > { %v1515_v10 = vpop.f32.mrb[2].mxu0  ;;  %v1552_v19 = vpop.f32.mrb[32].mxu1  ;;  %v5232_v20 = vadd.f32 %v1513_v25, %v6837_v22 }
 0x1e0   : > { %v4384_v11 = vmul.f32 -1.442695, %v5231_v15  ;;  %v1516_v12 = vpop.f32.mrb[3].mxu0  ;;  %v4769_v9 = vpop.f32.mrb[33].mxu1 }
 0x1e1   : > { %v1555_v14 = vpop.f32.mrb[34].mxu1  ;;  %v4385_v17 = vmul.f32 -1.442695, %v5232_v20  ;;  %v6843_v12 = vld [vmem:[%s8423_s11] ss:$0 sm:$0xff] }
 0x1e2   : > { %5544 = vpow2.f32 %v4384_v11  ;;  %v4770_v26 = vpop.f32.mrb[35].mxu1  ;;  %v1793_v9 = vadd.f32 %v6843_v12, %v1552_v19 }
 0x1e3   : > { %5546 = vpow2.f32 %v4385_v17  ;;  %v6849_v26 = vpop.permute.xlu0 %1802 }
 0x1e4   : > { %vm1804_vm6 = vcmp.eq.s32.totalorder %v6849_v26, 1  ;;  %v8445_v26 = vld [vmem:[#allocation37_spill] sm:$0xff] }
 0x1ec   : > { %v5545_v50 = vpop.eup %5544 }
 0x1ed   : > { %v1777_v16 = vadd.f32 1.0, %v5545_v50  ;;  %v5547_v15 = vpop.eup %5546 }
 0x1ee   : > { %v1784_v14 = vadd.f32 1.0, %v5547_v15 }
 0x1ef   : > { %5548 = vrcp.f32 %v1777_v16 }
 0x1f9   : > { %v5549_v10 = vpop.eup %5548 }
 0x1fa   : > { %v1794_v11 = vmul.f32 %v5549_v10, %v1793_v9 }
 0x1fc   : > { %v1795_v25 = vadd.f32 %v1794_v11, %v708_v5  ;;  %v8425_v5 = vld [vmem:[#allocation27_spill] sm:$0xff]  ;;  %v8426_v11 = vld [vmem:[#allocation28_spill] sm:$0xff] }
 0x1fe   : > { %5550 = vtanh.f32 %v1795_v25  ;;  %v8428_v25 = vld [vmem:[#allocation30_spill] sm:$0xff] }
 0x1ff   : > { %5552 = vrcp.f32 %v1784_v14  ;;  %v8427_v14 = vld [vmem:[#allocation29_spill] sm:$0xff] }
 0x208   : > { %v5551_v50 = vpop.eup %5550 }
 0x209   : > { %v1797_v17 = vsub.f32 %v6611_v49, %v5551_v50  ;;  %v5553_v20 = vpop.eup %5552 }
 0x20b   : > { %v1798_v16 = vmul.f32 %v5553_v20, %v1797_v17  ;;  %v8430_v17 = vld [vmem:[#allocation32_spill] sm:$0xff]  ;;  %v2527_v20 = vstv %s2526_s9 }
 0x20d   : > { %v1799_v19 = vadd.f32 %v5551_v50, %v1798_v16  ;;  %v8429_v50 = vld [vmem:[#allocation31_spill] sm:$0xff]  ;;  %v2827_v16 = vstv %s2826_s27 }
 0x20f   : > { %v6855_v23 = vsel %vm1804_vm6, %v1799_v19, %v6611_v49  ;;  %v1762_v49 = vpop.f32.mrb[36].mxu1  ;;  %v8431_v19 = vld [vmem:[#allocation19_spill] sm:$0xff] }
 0x210   : > { %v1806_v24 = vpack.c.bf16 %v6855_v23, %v6855_v23  ;;  %v4789_v9 = vpop.f32.mrb[37].mxu1  ;;  %vm2528_vm7 = vcmp.lt.s32.totalorder %v2527_v20, %v8431_v19  ;;  %vm2828_vm8 = vcmp.lt.s32.totalorder %v2827_v16, %v8431_v19 }
 0x211   : > { %v1765_v15 = vpop.f32.mrb[38].mxu1  ;;  %v3427_v9 = vstv %s3426_s5  ;;  %s6097_s5 = smov [#allocation14]  }
 0x212   : > { %1984 = vmatmul.mubr.bf16.vlgmr.msra.gmra.mrb[32].mxu0 %v1806_v24  ;;  %4808 = vmatmul.mubr.bf16.vlgmr.msra.gmra.mrb[40].mxu1 %v1806_v24  ;;  %v4790_v10 = vpop.f32.mrb[39].mxu1  ;;  %v543_v15 = vld [vmem:[%s8432_s23] sm:$0x7]  ;;  %vm3428_vm9 = vcmp.lt.s32.totalorder %v3427_v9, %v8431_v19 }
 0x213   : > { %2061 = vmatpush1.bf16.msra.mxu0 %v6534_v27  ;;  %4812 = vmatpush3.bf16.msra.mxu1 %v6542_v29  ;;  %v2850_v10 = vsel %vm2828_vm8, 1, %v8424_v18  ;;  %v3450_v20 = vsel %vm3428_vm9, 1, %v8424_v18 }
 0x214   : > { %2062 = vmatprep.subr.bf16.mxu0 %v6538_v28  ;;  %4813 = vmatprep.subr.bf16.mxu1 %v8413_v3 }
 0x215   : > { %2092 = vmatprep.mubr.bf16.mxu0 %v8424_v18  ;;  %4827 = vmatprep.mubr.msk.bf16.mxu1 %vm6096_vm0, %v8413_v3 }
 0x217   : > { %2063 = vmatpush1.bf16.msra.mxu0 %v6545_v30  ;;  %4814 = vmatpush3.bf16.msra.mxu1 %v6554_v32 }
 0x218   : > { %2064 = vmatprep.subr.bf16.mxu0 %v6549_v31  ;;  %4815 = vmatprep.subr.bf16.mxu1 %v8413_v3 }
 0x21b   : > { %2065 = vmatpush1.bf16.msra.mxu0 %v6559_v33  ;;  %4816 = vmatpush3.bf16.msra.mxu1 %v6566_v35 }
 0x21c   : > { %2066 = vmatprep.subr.bf16.mxu0 %v6563_v34  ;;  %4817 = vmatprep.subr.bf16.mxu1 %v8413_v3 }
 0x21f   : > { %2067 = vmatpush1.bf16.msra.mxu0 %v6569_v36  ;;  %4818 = vmatpush3.bf16.msra.mxu1 %v6576_v38 }
 0x220   : > { %2068 = vmatprep.subr.bf16.mxu0 %v6573_v37  ;;  %4819 = vmatprep.subr.bf16.mxu1 %v8413_v3 }
 0x223   : > { %2069 = vmatpush1.bf16.msra.mxu0 %v6579_v39  ;;  %4820 = vmatpush3.bf16.msra.mxu1 %v6586_v41 }
 0x224   : > { %2070 = vmatprep.subr.bf16.mxu0 %v6583_v40  ;;  %4821 = vmatprep.subr.bf16.mxu1 %v8413_v3 }
 0x227   : > { %2071 = vmatpush1.bf16.msra.mxu0 %v6589_v42  ;;  %4822 = vmatpush3.bf16.msra.mxu1 %v6596_v44 }
 0x228   : > { %2072 = vmatprep.subr.bf16.mxu0 %v6593_v43  ;;  %4823 = vmatprep.subr.bf16.mxu1 %v8413_v3 }
 0x22b   : > { %2073 = vmatpush1.bf16.msra.mxu0 %v6599_v45  ;;  %4824 = vmatpush3.bf16.msra.mxu1 %v6606_v47 }
 0x22c   : > { %2074 = vmatprep.subr.bf16.mxu0 %v6603_v46  ;;  %4825 = vmatprep.subr.bf16.mxu1 %v8413_v3 }
 0x22f   : > { %2075 = vmatpush1.bf16.msra.mxu0 %v6609_v48  ;;  %4826 = vmatpush3.bf16.msra.mxu1 %v6618_v51 }
 0x230   : > { %2142 = vmatprep.subr.bf16.mxu0 %v6627_v52  ;;  %4831 = vmatprep.subr.bf16.mxu1 %v8413_v3 }
 0x232   : > { %2093 = vmatmul.mubr.bf16.vlgmr.msra.gmra.mrb[4].mxu0 %v1806_v24  ;;  %4828 = vmatmul.mubr.bf16.vlgmr.msra.gmra.mrb[44].mxu1 %v1806_v24  ;;  %v2550_v24 = vsel %vm2528_vm7, 1, %v8424_v18 }
 0x233   : > { %2143 = vmatpush1.bf16.msra.mxu0 %v6629_v53  ;;  %4832 = vmatpush3.bf16.msra.mxu1 %v6631_v54 }
 0x234   : > { %2144 = vmatprep.subr.bf16.mxu0 %v6637_v55  ;;  %4833 = vmatprep.subr.bf16.mxu1 %v8413_v3 }
 0x235   : > { %2174 = vmatprep.mubr.bf16.mxu0 %v8424_v18  ;;  %4847 = vmatprep.mubr.msk.bf16.mxu1 %vm6096_vm0, %v8413_v3 }
 0x236   : > { %2552 = vperm.xlu1 %5439, %v2550_v24  }
 0x237   : > { %2145 = vmatpush1.bf16.msra.mxu0 %v6639_v56  ;;  %4834 = vmatpush3.bf16.msra.mxu1 %v6641_v57 }
 0x238   : > { %2146 = vmatprep.subr.bf16.mxu0 %v6645_v58  ;;  %4835 = vmatprep.subr.bf16.mxu1 %v8413_v3 }
 0x23a   : > { %2852 = vperm.xlu1 %5439, %v2850_v10   ;;  %v8435_v10 = vsub.s32 1, %v6771_v21 }
 0x23b   : > { %2147 = vmatpush1.bf16.msra.mxu0 %v6651_v60  ;;  %4836 = vmatpush3.bf16.msra.mxu1 %v6647_v59 }
 0x23c   : > { %2148 = vmatprep.subr.bf16.mxu0 %v6657_v61  ;;  %4837 = vmatprep.subr.bf16.mxu1 %v8413_v3 }
 0x23e   : > { %3452 = vperm.xlu1 %5439, %v3450_v20  }
 0x23f   : > { %2149 = vmatpush1.bf16.msra.mxu0 %v6659_v62  ;;  %4838 = vmatpush3.bf16.msra.mxu1 %v6661_v63 }
 0x240   : > { %2150 = vmatprep.subr.bf16.mxu0 %v6666_v0  ;;  %4839 = vmatprep.subr.bf16.mxu1 %v8413_v3 }
 0x243   : > { %2151 = vmatpush1.bf16.msra.mxu0 %v6669_v1  ;;  %4840 = vmatpush3.bf16.msra.mxu1 %v6671_v2  ;;  %v6951_v2 = vrot.slane %v543_v15, %v8435_v10 }
 0x244   : > { %2152 = vmatprep.subr.bf16.mxu0 %v6676_v4  ;;  %4841 = vmatprep.subr.bf16.mxu1 %v8413_v3 }
 0x245   : > { %8436 = vst [vmem:[#allocation64_spill] sm:$0xff] %v6951_v2 }
 0x247   : > { %2153 = vmatpush1.bf16.msra.mxu0 %v6679_v6  ;;  %4842 = vmatpush3.bf16.msra.mxu1 %v6681_v7 }
 0x248   : > { %2154 = vmatprep.subr.bf16.mxu0 %v6686_v8  ;;  %4843 = vmatprep.subr.bf16.mxu1 %v8413_v3 }
 0x24b   : > { %2155 = vmatpush1.bf16.msra.mxu0 %v8425_v5  ;;  %4844 = vmatpush3.bf16.msra.mxu1 %v8426_v11 }
 0x24c   : > { %2156 = vmatprep.subr.bf16.mxu0 %v8427_v14  ;;  %4845 = vmatprep.subr.bf16.mxu1 %v8413_v3 }
 0x24f   : > { %2157 = vmatpush1.bf16.msra.mxu0 %v8428_v25  ;;  %4846 = vmatpush3.bf16.msra.mxu1 %v8429_v50  ;;  %v8433_v50 = vsub.s32 0, %v6771_v21 }
 0x250   : > { %2257 = vmatprep.subr.bf16.mxu0 %v8430_v17  ;;  %4851 = vmatprep.subr.bf16.mxu1 %v8413_v3  ;;  %v4027_v17 = vstv %s4026_s7  ;;  %s4172_s7 = sshll.u32 %s6097_s5, 4  ;;  %s4173_s7 = int_to_ptr.vmem [resolvable:$true] %s4172_s7 }
 0x251   : > { %v6943_v25 = vrot.slane %v543_v15, %v8433_v50  ;;  %vm4028_vm10 = vcmp.lt.s32.totalorder %v4027_v17, %v8431_v19  ;;  %s5994_s23 = scalar_lea.vmem %s4173_s7, 128  ;;  %p6001_p13 = scmp.lt.s32.totalorder %s4173_s7, %s4173_s7 }
 0x252   : > { %v4050_v9 = vsel %vm4028_vm10, 1, %v8424_v18  ;;  %p5995_p4 = scmp.ne.s32.totalorder %s4173_s7, %s5994_s23  ;;  %p6002_p0 = scmp.lt.s32.totalorder %s5994_s23, %s5994_s23 }
 0x253   : > { %8434 = vst [vmem:[#allocation19_spill] sm:$0xff] %v6943_v25  ;;  %4052 = vperm.xlu1 %5439, %v4050_v9  }
 0x254   : > { %p5996_p5 = pnand %p5995_p4, %p8132_p9  ;;  %p6003_p2 = por %p6002_p0, %p6001_p13 }
 0x256   : > { %p5997_p12 = pneg %p5996_p5 }
 0x258   : > { %p6004_p6 = pnand %p6003_p2, %p5997_p12 }
 0x2e5   : > { %v1985_v16 = vpop.f32.mrb[32].mxu0  ;;  %v2026_v24 = vpop.f32.mrb[40].mxu1 }
 0x2e6   : > { %v1986_v14 = vadd.f32 %v1985_v16, %v6943_v25  ;;  %v1987_v11 = vpop.f32.mrb[33].mxu0  ;;  %v4809_v5 = vpop.f32.mrb[41].mxu1 }
 0x2e7   : > { %v1989_v8 = vpop.f32.mrb[34].mxu0  ;;  %v2029_v7 = vpop.f32.mrb[42].mxu1  ;;  %v1988_v17 = vadd.f32 %v1987_v11, %v6951_v2 }
 0x2e8   : > { %v4411_v6 = vmul.f32 -1.442695, %v1986_v14  ;;  %v1990_v4 = vpop.f32.mrb[35].mxu0  ;;  %v4810_v50 = vpop.f32.mrb[43].mxu1  ;;  %v6957_v7 = vld [vmem:[%s8437_s16] ss:$0 sm:$0xff] }
 0x2e9   : > { %v4412_v19 = vmul.f32 -1.442695, %v1988_v17  ;;  %v8439_v4 = vsub.s32 2, %v6771_v21  ;;  %v2052_v5 = vadd.f32 %v6957_v7, %v1762_v49 }
 0x2ea   : > { %5554 = vpow2.f32 %v4411_v6 }
 0x2eb   : > { %5556 = vpow2.f32 %v4412_v19  ;;  %v6961_v6 = vrot.slane %v543_v15, %v8439_v4 }
 0x2ed   : > { %8440 = vst [vmem:[#allocation65_spill] sm:$0xff] %v6961_v6  ;;  %v2027_v11 = vadd.f32 %v2026_v24, %v6961_v6 }
 0x2f4   : > { %v5555_v16 = vpop.eup %5554 }
 0x2f5   : > { %v2036_v25 = vadd.f32 1.0, %v5555_v16  ;;  %v5557_v8 = vpop.eup %5556 }
 0x2f6   : > { %v2043_v50 = vadd.f32 1.0, %v5557_v8 }
 0x2f7   : > { %5558 = vrcp.f32 %v2036_v25 }
 0x301   : > { %v5559_v14 = vpop.eup %5558 }
 0x302   : > { %v2053_v20 = vmul.f32 %v5559_v14, %v2052_v5  ;;  %v8441_v5 = vld [vmem:[#allocation33_spill] sm:$0xff] }
 0x304   : > { %v2054_v9 = vadd.f32 %v2053_v20, %v2027_v11 }
 0x305   : > { %v2094_v10 = vpop.f32.mrb[4].mxu0  ;;  %v2135_v25 = vpop.f32.mrb[44].mxu1 }
 0x306   : > { %5560 = vtanh.f32 %v2054_v9  ;;  %v5233_v17 = vadd.f32 %v2094_v10, %v6831_v13  ;;  %v2096_v19 = vpop.f32.mrb[5].mxu0  ;;  %v4829_v16 = vpop.f32.mrb[45].mxu1 }
 0x307   : > { %v2098_v2 = vpop.f32.mrb[6].mxu0  ;;  %v2138_v21 = vpop.f32.mrb[46].mxu1  ;;  %5562 = vrcp.f32 %v2043_v50  ;;  %v5234_v49 = vadd.f32 %v2096_v19, %v6837_v22  ;;  %v8442_v50 = vld [vmem:[#allocation34_spill] sm:$0xff]  ;;  %v8444_v19 = vld [vmem:[#allocation36_spill] sm:$0xff] }
 0x308   : > { %v4414_v15 = vmul.f32 -1.442695, %v5233_v17  ;;  %v2099_v4 = vpop.f32.mrb[7].mxu0  ;;  %v4830_v1 = vpop.f32.mrb[47].mxu1  ;;  %v8443_v17 = vld [vmem:[#allocation35_spill] sm:$0xff]  ;;  %v2243_v21 = vadd.f32 %v6843_v12, %v2135_v25  ;;  %v8453_v25 = vld [vmem:[#allocation44_spill] sm:$0xff] }
 0x309   : > { %v4415_v11 = vmul.f32 -1.442695, %v5234_v49 }
 0x30a   : > { %5564 = vpow2.f32 %v4414_v15  ;;  %v8447_v15 = vld [vmem:[#allocation39_spill] sm:$0xff] }
 0x30b   : > { %5566 = vpow2.f32 %v4415_v11 }
 0x310   : > { %v5561_v24 = vpop.eup %5560 }
 0x311   : > { %v2056_v14 = vsub.f32 %v8441_v5, %v5561_v24  ;;  %v5563_v8 = vpop.eup %5562 }
 0x313   : > { %v2057_v20 = vmul.f32 %v5563_v8, %v2056_v14  ;;  %v8450_v14 = vld [vmem:[#allocation57_spill] sm:$0xff] }
 0x314   : > { %v5565_v9 = vpop.eup %5564 }
 0x315   : > { %v2233_v6 = vadd.f32 1.0, %v5565_v9  ;;  %v2058_v10 = vadd.f32 %v5561_v24, %v2057_v20  ;;  %v5567_v16 = vpop.eup %5566  ;;  %v8448_v24 = vld [vmem:[#allocation40_spill] sm:$0xff]  ;;  %v8451_v20 = vld [vmem:[#allocation42_spill] sm:$0xff]  ;;  %v8452_v9 = vld [vmem:[#allocation43_spill] sm:$0xff] }
 0x316   : > { %v2240_v11 = vadd.f32 1.0, %v5567_v16  ;;  %v8458_v16 = vld [vmem:[#allocation49_spill] sm:$0xff] }
 0x317   : > { %5568 = vrcp.f32 %v2233_v6  ;;  %v6971_v2 = vsel %vm1804_vm6, %v2058_v10, %v8441_v5  ;;  %v8446_v6 = vld [vmem:[#allocation38_spill] sm:$0xff]  ;;  %v8449_v5 = vld [vmem:[#allocation41_spill] sm:$0xff] }
 0x318   : > { %v2141_v1 = vpack.c.bf16 %v6971_v2, %v6971_v2  ;;  %v8454_v10 = vld [vmem:[#allocation45_spill] sm:$0xff] }
 0x31a   : > { %2175 = vmatmul.mubr.bf16.vlgmr.msra.gmra.mrb[36].mxu0 %v2141_v1  ;;  %4848 = vmatmul.mubr.bf16.vlgmr.msra.gmra.mrb[48].mxu1 %v2141_v1  ;;  %v8455_v1 = vld [vmem:[#allocation46_spill] sm:$0xff] }
 0x31b   : > { %2258 = vmatpush1.bf16.msra.mxu0 %v8442_v50  ;;  %4852 = vmatpush3.bf16.msra.mxu1 %v8443_v17 }
 0x31c   : > { %2259 = vmatprep.subr.bf16.mxu0 %v8444_v19  ;;  %4853 = vmatprep.subr.bf16.mxu1 %v8413_v3 }
 0x31d   : > { %2289 = vmatprep.mubr.bf16.mxu0 %v8424_v18  ;;  %4867 = vmatprep.mubr.msk.bf16.mxu1 %vm6096_vm0, %v8413_v3 }
 0x31f   : > { %2260 = vmatpush1.bf16.msra.mxu0 %v8445_v26  ;;  %4854 = vmatpush3.bf16.msra.mxu1 %v8446_v6 }
 0x320   : > { %2261 = vmatprep.subr.bf16.mxu0 %v8447_v15  ;;  %4855 = vmatprep.subr.bf16.mxu1 %v8413_v3 }
 0x321   : > { %v5569_v4 = vpop.eup %5568 }
 0x322   : > { %v2244_v49 = vmul.f32 %v5569_v4, %v2243_v21  ;;  %v8456_v21 = vld [vmem:[#allocation47_spill] sm:$0xff]  ;;  %v8457_v4 = vld [vmem:[#allocation48_spill] sm:$0xff] }
 0x323   : > { %2262 = vmatpush1.bf16.msra.mxu0 %v8448_v24  ;;  %4856 = vmatpush3.bf16.msra.mxu1 %v8449_v5 }
 0x324   : > { %v2245_v8 = vadd.f32 %v2244_v49, %v8450_v14  ;;  %2263 = vmatprep.subr.bf16.mxu0 %v8451_v20  ;;  %4857 = vmatprep.subr.bf16.mxu1 %v8413_v3  ;;  %v8459_v49 = vld [vmem:[#allocation50_spill] sm:$0xff] }
 0x326   : > { %5570 = vtanh.f32 %v2245_v8  ;;  %v8460_v8 = vld [vmem:[#allocation51_spill] sm:$0xff] }
 0x327   : > { %2264 = vmatpush1.bf16.msra.mxu0 %v8452_v9  ;;  %4858 = vmatpush3.bf16.msra.mxu1 %v8453_v25  ;;  %5572 = vrcp.f32 %v2240_v11  ;;  %v8465_v9 = vld [vmem:[#allocation56_spill] sm:$0xff] }
 0x328   : > { %2265 = vmatprep.subr.bf16.mxu0 %v8454_v10  ;;  %4859 = vmatprep.subr.bf16.mxu1 %v8413_v3 }
 0x32b   : > { %2266 = vmatpush1.bf16.msra.mxu0 %v8455_v1  ;;  %4860 = vmatpush3.bf16.msra.mxu1 %v8456_v21  ;;  %v8461_v1 = vld [vmem:[#allocation52_spill] sm:$0xff]  ;;  %v8462_v21 = vld [vmem:[#allocation53_spill] sm:$0xff] }
 0x32c   : > { %2267 = vmatprep.subr.bf16.mxu0 %v8457_v4  ;;  %4861 = vmatprep.subr.bf16.mxu1 %v8413_v3  ;;  %v8463_v4 = vld [vmem:[#allocation54_spill] sm:$0xff] }
 0x32f   : > { %2268 = vmatpush1.bf16.msra.mxu0 %v8458_v16  ;;  %4862 = vmatpush3.bf16.msra.mxu1 %v8459_v49  ;;  %v7009_v16 = vpop.permute.xlu0 %2252 }
 0x330   : > { %v5571_v14 = vpop.eup %5570  ;;  %2269 = vmatprep.subr.bf16.mxu0 %v8460_v8  ;;  %4863 = vmatprep.subr.bf16.mxu1 %v8413_v3  ;;  %vm2254_vm11 = vcmp.eq.s32.totalorder %v7009_v16, 1  ;;  %v8464_v8 = vld [vmem:[#allocation55_spill] sm:$0xff] }
 0x331   : > { %v2247_v11 = vsub.f32 %v6855_v23, %v5571_v14  ;;  %v5573_v10 = vpop.eup %5572 }
 0x333   : > { %v2248_v25 = vmul.f32 %v5573_v10, %v2247_v11  ;;  %2270 = vmatpush1.bf16.msra.mxu0 %v8461_v1  ;;  %4864 = vmatpush3.bf16.msra.mxu1 %v8462_v21 }
 0x334   : > { %2271 = vmatprep.subr.bf16.mxu0 %v8463_v4  ;;  %4865 = vmatprep.subr.bf16.mxu1 %v8413_v3  ;;  %v8466_v4 = vld [vmem:[#allocation20_spill] sm:$0xff] }
 0x335   : > { %v2249_v49 = vadd.f32 %v5571_v14, %v2248_v25 }
 0x337   : > { %2272 = vmatpush1.bf16.msra.mxu0 %v8464_v8  ;;  %4866 = vmatpush3.bf16.msra.mxu1 %v8465_v9  ;;  %v7017_v10 = vsel %vm2254_vm11, %v2249_v49, %v6855_v23 }
 0x338   : > { %v2256_v11 = vpack.c.bf16 %v7017_v10, %v7017_v10  ;;  %2360 = vmatprep.subr.bf16.mxu0 %v8466_v4  ;;  %4871 = vmatprep.subr.bf16.mxu1 %v8413_v3 }
 0x33a   : > { %2290 = vmatmul.mubr.bf16.vlgmr.msra.gmra.mrb[36].mxu0 %v2256_v11  ;;  %4868 = vmatmul.mubr.bf16.vlgmr.msra.gmra.mrb[52].mxu1 %v2256_v11 }
 0x33b   : > { %2361 = vmatpush1.bf16.msra.mxu0 %v6534_v27  ;;  %4872 = vmatpush3.bf16.msra.mxu1 %v6542_v29  ;;  %v8467_v27 = vld [vmem:[#allocation21_spill] sm:$0xff]  ;;  %v8469_v29 = vld [vmem:[#allocation23_spill] sm:$0xff] }
 0x33c   : > { %2362 = vmatprep.subr.bf16.mxu0 %v6538_v28  ;;  %4873 = vmatprep.subr.bf16.mxu1 %v8413_v3  ;;  %v8468_v28 = vld [vmem:[#allocation22_spill] sm:$0xff] }
 0x33d   : > { %2392 = vmatprep.mubr.bf16.mxu0 %v8424_v18  ;;  %4887 = vmatprep.mubr.msk.bf16.mxu1 %vm6096_vm0, %v8413_v3 }
 0x33f   : > { %2363 = vmatpush1.bf16.msra.mxu0 %v6545_v30  ;;  %4874 = vmatpush3.bf16.msra.mxu1 %v6554_v32  ;;  %v8470_v30 = vld [vmem:[#allocation24_spill] sm:$0xff]  ;;  %v8472_v32 = vld [vmem:[#allocation26_spill] sm:$0xff] }
 0x340   : > { %2364 = vmatprep.subr.bf16.mxu0 %v6549_v31  ;;  %4875 = vmatprep.subr.bf16.mxu1 %v8413_v3  ;;  %v8471_v31 = vld [vmem:[#allocation25_spill] sm:$0xff] }
 0x343   : > { %2365 = vmatpush1.bf16.msra.mxu0 %v6559_v33  ;;  %4876 = vmatpush3.bf16.msra.mxu1 %v6566_v35  ;;  %v8473_v33 = vld [vmem:[#allocation27_spill] sm:$0xff]  ;;  %v8475_v35 = vld [vmem:[#allocation29_spill] sm:$0xff] }
 0x344   : > { %2366 = vmatprep.subr.bf16.mxu0 %v6563_v34  ;;  %4877 = vmatprep.subr.bf16.mxu1 %v8413_v3  ;;  %v8474_v34 = vld [vmem:[#allocation28_spill] sm:$0xff] }
 0x347   : > { %2367 = vmatpush1.bf16.msra.mxu0 %v6569_v36  ;;  %4878 = vmatpush3.bf16.msra.mxu1 %v6576_v38  ;;  %v8476_v36 = vld [vmem:[#allocation30_spill] sm:$0xff]  ;;  %v8478_v38 = vld [vmem:[#allocation32_spill] sm:$0xff] }
 0x348   : > { %2368 = vmatprep.subr.bf16.mxu0 %v6573_v37  ;;  %4879 = vmatprep.subr.bf16.mxu1 %v8413_v3  ;;  %v8477_v37 = vld [vmem:[#allocation31_spill] sm:$0xff] }
 0x34b   : > { %2369 = vmatpush1.bf16.msra.mxu0 %v6579_v39  ;;  %4880 = vmatpush3.bf16.msra.mxu1 %v6586_v41 }
 0x34c   : > { %2370 = vmatprep.subr.bf16.mxu0 %v6583_v40  ;;  %4881 = vmatprep.subr.bf16.mxu1 %v8413_v3 }
 0x34f   : > { %2371 = vmatpush1.bf16.msra.mxu0 %v6589_v42  ;;  %4882 = vmatpush3.bf16.msra.mxu1 %v6596_v44 }
 0x350   : > { %2372 = vmatprep.subr.bf16.mxu0 %v6593_v43  ;;  %4883 = vmatprep.subr.bf16.mxu1 %v8413_v3 }
 0x353   : > { %2373 = vmatpush1.bf16.msra.mxu0 %v6599_v45  ;;  %4884 = vmatpush3.bf16.msra.mxu1 %v6606_v47  ;;  %v8479_v45 = vld [vmem:[#allocation19_spill] sm:$0xff] }
 0x354   : > { %2374 = vmatprep.subr.bf16.mxu0 %v6603_v46  ;;  %4885 = vmatprep.subr.bf16.mxu1 %v8413_v3 }
 0x357   : > { %2375 = vmatpush1.bf16.msra.mxu0 %v6609_v48  ;;  %4886 = vmatpush3.bf16.msra.mxu1 %v6618_v51 }
 0x358   : > { %2442 = vmatprep.subr.bf16.mxu0 %v6627_v52  ;;  %4891 = vmatprep.subr.bf16.mxu1 %v8413_v3 }
 0x35a   : > { %2393 = vmatmul.mubr.bf16.vlgmr.msra.gmra.mrb[8].mxu0 %v2256_v11  ;;  %4888 = vmatmul.mubr.bf16.vlgmr.msra.gmra.mrb[56].mxu1 %v2256_v11 }
 0x35b   : > { %2443 = vmatpush1.bf16.msra.mxu0 %v6629_v53  ;;  %4892 = vmatpush3.bf16.msra.mxu1 %v6631_v54 }
 0x35c   : > { %2444 = vmatprep.subr.bf16.mxu0 %v6637_v55  ;;  %4893 = vmatprep.subr.bf16.mxu1 %v8413_v3 }
 0x35d   : > { %2474 = vmatprep.mubr.bf16.mxu0 %v8424_v18  ;;  %4907 = vmatprep.mubr.msk.bf16.mxu1 %vm6096_vm0, %v8413_v3 }
 0x35f   : > { %2445 = vmatpush1.bf16.msra.mxu0 %v6639_v56  ;;  %4894 = vmatpush3.bf16.msra.mxu1 %v6641_v57  ;;  %v8480_v56 = vld [vmem:[#allocation64_spill] sm:$0xff] }
 0x360   : > { %2446 = vmatprep.subr.bf16.mxu0 %v6645_v58  ;;  %4895 = vmatprep.subr.bf16.mxu1 %v8413_v3 }
 0x363   : > { %2447 = vmatpush1.bf16.msra.mxu0 %v6651_v60  ;;  %4896 = vmatpush3.bf16.msra.mxu1 %v6647_v59 }
 0x364   : > { %2448 = vmatprep.subr.bf16.mxu0 %v6657_v61  ;;  %4897 = vmatprep.subr.bf16.mxu1 %v8413_v3 }
 0x367   : > { %2449 = vmatpush1.bf16.msra.mxu0 %v6659_v62  ;;  %4898 = vmatpush3.bf16.msra.mxu1 %v6661_v63 }
 0x368   : > { %2450 = vmatprep.subr.bf16.mxu0 %v6666_v0  ;;  %4899 = vmatprep.subr.bf16.mxu1 %v8413_v3  ;;  %v8481_v0 = vld [vmem:[#allocation65_spill] sm:$0xff] }
 0x36b   : > { %2451 = vmatpush1.bf16.msra.mxu0 %v8467_v27  ;;  %4900 = vmatpush3.bf16.msra.mxu1 %v8468_v28 }
 0x36c   : > { %2452 = vmatprep.subr.bf16.mxu0 %v8469_v29  ;;  %4901 = vmatprep.subr.bf16.mxu1 %v8413_v3 }
 0x36f   : > { %2453 = vmatpush1.bf16.msra.mxu0 %v8470_v30  ;;  %4902 = vmatpush3.bf16.msra.mxu1 %v8471_v31 }
 0x370   : > { %2454 = vmatprep.subr.bf16.mxu0 %v8472_v32  ;;  %4903 = vmatprep.subr.bf16.mxu1 %v8413_v3 }
 0x373   : > { %2455 = vmatpush1.bf16.msra.mxu0 %v8473_v33  ;;  %4904 = vmatpush3.bf16.msra.mxu1 %v8474_v34 }
 0x374   : > { %2456 = vmatprep.subr.bf16.mxu0 %v8475_v35  ;;  %4905 = vmatprep.subr.bf16.mxu1 %v8413_v3 }
 0x377   : > { %2457 = vmatpush1.bf16.msra.mxu0 %v8476_v36  ;;  %4906 = vmatpush3.bf16.msra.mxu1 %v8477_v37 }
 0x378   : > { %2557 = vmatprep.subr.bf16.mxu0 %v8478_v38  ;;  %4911 = vmatprep.subr.bf16.mxu1 %v8413_v3 }
 0x3ed   : > { %v2217_v39 = vpop.f32.mrb[48].mxu1 }
 0x3ee   : > { %v4849_v40 = vpop.f32.mrb[49].mxu1  ;;  %v2352_v62 = vadd.f32 %v6957_v7, %v2217_v39 }
 0x3ef   : > { %v2220_v41 = vpop.f32.mrb[50].mxu1 }
 0x3f0   : > { %v4850_v42 = vpop.f32.mrb[51].mxu1 }
 0x40d   : > { %v2291_v43 = vpop.f32.mrb[36].mxu0  ;;  %v2332_v44 = vpop.f32.mrb[52].mxu1 }
 0x40e   : > { %v2292_v46 = vadd.f32 %v2291_v43, %v8479_v45  ;;  %v2293_v47 = vpop.f32.mrb[37].mxu0  ;;  %v4869_v48 = vpop.f32.mrb[53].mxu1  ;;  %v2333_v23 = vadd.f32 %v2332_v44, %v8481_v0 }
 0x40f   : > { %v2295_v51 = vpop.f32.mrb[38].mxu0  ;;  %v2335_v52 = vpop.f32.mrb[54].mxu1  ;;  %v2294_v57 = vadd.f32 %v2293_v47, %v8480_v56 }
 0x410   : > { %v4416_v53 = vmul.f32 -1.442695, %v2292_v46  ;;  %v2296_v54 = vpop.f32.mrb[39].mxu0  ;;  %v4870_v55 = vpop.f32.mrb[55].mxu1  ;;  %v8490_v51 = vld [vmem:[#allocation50_spill] sm:$0xff] }
 0x411   : > { %v4417_v58 = vmul.f32 -1.442695, %v2294_v57  ;;  %v7137_v57 = vpop.permute.xlu1 %2552 }
 0x412   : > { %5574 = vpow2.f32 %v4416_v53  ;;  %v8491_v53 = vld [vmem:[#allocation51_spill] sm:$0xff]  ;;  %vm2554_vm12 = vcmp.eq.s32.totalorder %v7137_v57, 1 }
 0x413   : > { %5576 = vpow2.f32 %v4417_v58  ;;  %v7359_v57 = vld [vmem:[#allocation11 + $0x20] ss:$12 sps:$4 sm:$0xff]  }
 0x41c   : > { %v5575_v59 = vpop.eup %5574 }
 0x41d   : > { %v2342_v60 = vadd.f32 1.0, %v5575_v59  ;;  %v5577_v61 = vpop.eup %5576  ;;  %v8492_v59 = vld [vmem:[#allocation54_spill] sm:$0xff] }
 0x41e   : > { %v2349_v49 = vadd.f32 1.0, %v5577_v61 }
 0x41f   : > { %5578 = vrcp.f32 %v2342_v60 }
 0x429   : > { %v5579_v63 = vpop.eup %5578 }
 0x42a   : > { %v2353_v25 = vmul.f32 %v5579_v63, %v2352_v62  ;;  %v7174_v62 = vld [vmem:[#allocation10 + $0x18] ss:$12 sps:$4 sm:$0xff]   ;;  %v7177_v63 = vld [vmem:[#allocation10 + $0x20] ss:$12 sps:$4 sm:$0xff]  }
 0x42c   : > { %v2354_v4 = vadd.f32 %v2353_v25, %v2333_v23  ;;  %v7180_v23 = vld [vmem:[#allocation10 + $0x34] ss:$12 sps:$4 sm:$0xff]   ;;  %v7184_v25 = vld [vmem:[#allocation10 + $0x30] ss:$12 sps:$4 sm:$0xff]  }
 0x42d   : > { %v2394_v14 = vpop.f32.mrb[8].mxu0  ;;  %v2435_v11 = vpop.f32.mrb[56].mxu1 }
 0x42e   : > { %5580 = vtanh.f32 %v2354_v4  ;;  %v5235_v27 = vadd.f32 %v2394_v14, %v6831_v13  ;;  %v2396_v28 = vpop.f32.mrb[9].mxu0  ;;  %v4889_v29 = vpop.f32.mrb[57].mxu1  ;;  %v2543_v16 = vadd.f32 %v6843_v12, %v2435_v11  ;;  %v8484_v12 = vld [vmem:[#allocation44_spill] sm:$0xff]  ;;  %v7187_v4 = vld [vmem:[#allocation10 + $0x38] ss:$12 sps:$4 sm:$0xff]  }
 0x42f   : > { %v2398_v30 = vpop.f32.mrb[10].mxu0  ;;  %v2438_v31 = vpop.f32.mrb[58].mxu1  ;;  %5582 = vrcp.f32 %v2349_v49  ;;  %v5236_v35 = vadd.f32 %v2396_v28, %v6837_v22  ;;  %v7190_v49 = vld [vmem:[#allocation10 + $0x4c] ss:$12 sps:$4 sm:$0xff]   ;;  %v7194_v14 = vld [vmem:[#allocation10 + $0x48] ss:$12 sps:$4 sm:$0xff]  }
 0x430   : > { %v4418_v32 = vmul.f32 -1.442695, %v5235_v27  ;;  %v2399_v33 = vpop.f32.mrb[11].mxu0  ;;  %v4890_v34 = vpop.f32.mrb[59].mxu1  ;;  %v7197_v11 = vld [vmem:[#allocation10 + $0x50] ss:$12 sps:$4 sm:$0xff]  }
 0x431   : > { %v4419_v39 = vmul.f32 -1.442695, %v5236_v35  ;;  %v7200_v27 = vld [vmem:[#allocation10 + $0x64] ss:$12 sps:$4 sm:$0xff]   ;;  %v7204_v28 = vld [vmem:[#allocation10 + $0x60] ss:$12 sps:$4 sm:$0xff]  }
 0x432   : > { %5584 = vpow2.f32 %v4418_v32  ;;  %v7207_v29 = vld [vmem:[#allocation10 + $0x68] ss:$12 sps:$4 sm:$0xff]   ;;  %v7214_v31 = vld [vmem:[#allocation10 + $0x78] ss:$12 sps:$4 sm:$0xff]   ;;  %v7217_v32 = vld [vmem:[#allocation10 + $0x80] ss:$12 sps:$4 sm:$0xff]  }
 0x433   : > { %5586 = vpow2.f32 %v4419_v39  ;;  %v7210_v30 = vld [vmem:[#allocation10 + $0x7c] ss:$12 sps:$4 sm:$0xff]   ;;  %v7220_v33 = vld [vmem:[#allocation10 + $0x94] ss:$12 sps:$4 sm:$0xff]   ;;  %v7227_v35 = vld [vmem:[#allocation10 + $0x98] ss:$12 sps:$4 sm:$0xff]  }
 0x434   : > { %v7224_v34 = vld [vmem:[#allocation10 + $0x90] ss:$12 sps:$4 sm:$0xff]  }
 0x435   : > { %v7240_v39 = vld [vmem:[#allocation13 + $0x4] ss:$12 sps:$4 sm:$0xff]  }
 0x436   : > { %8496 = vst [vmem:[#allocation36_spill] sm:$0xff] %v7240_v39 }
 0x438   : > { %v5581_v36 = vpop.eup %5580 }
 0x439   : > { %v2356_v37 = vsub.f32 %v6971_v2, %v5581_v36  ;;  %v5583_v38 = vpop.eup %5582 }
 0x43b   : > { %v2357_v40 = vmul.f32 %v5583_v38, %v2356_v37  ;;  %v7234_v37 = vld [vmem:[#allocation10 + $0xa8] ss:$12 sps:$4 sm:$0xff]   ;;  %v7237_v38 = vld [vmem:[#allocation10 + $0xb0] ss:$12 sps:$4 sm:$0xff]  }
 0x43c   : > { %v5585_v41 = vpop.eup %5584  ;;  %8494 = vst [vmem:[#allocation34_spill] sm:$0xff] %v7234_v37  ;;  %8495 = vst [vmem:[#allocation35_spill] sm:$0xff] %v7237_v38 }
 0x43d   : > { %v2533_v42 = vadd.f32 1.0, %v5585_v41  ;;  %v2358_v43 = vadd.f32 %v5581_v36, %v2357_v40  ;;  %v7230_v36 = vld [vmem:[#allocation10 + $0xac] ss:$12 sps:$4 sm:$0xff]   ;;  %v7249_v41 = vld [vmem:[#allocation13 + $0x8] ss:$12 sps:$4 sm:$0xff]  }
 0x43e   : > { %8493 = vst [vmem:[#allocation33_spill] sm:$0xff] %v7230_v36  ;;  %v7246_v40 = vld [vmem:[#allocation13] ss:$12 sps:$4 sm:$0xff]   ;;  %8498 = vst [vmem:[#allocation38_spill] sm:$0xff] %v7249_v41 }
 0x43f   : > { %5588 = vrcp.f32 %v2533_v42  ;;  %v7103_v44 = vsel %vm2254_vm11, %v2358_v43, %v6971_v2  ;;  %v5587_v2 = vpop.eup %5586  ;;  %8497 = vst [vmem:[#allocation37_spill] sm:$0xff] %v7246_v40  ;;  %v7252_v42 = vld [vmem:[#allocation13 + $0x1c] ss:$12 sps:$4 sm:$0xff]   ;;  %v7259_v43 = vld [vmem:[#allocation13 + $0x18] ss:$12 sps:$4 sm:$0xff]  }
 0x440   : > { %v2441_v46 = vpack.c.bf16 %v7103_v44, %v7103_v44  ;;  %v2540_v48 = vadd.f32 1.0, %v5587_v2  ;;  %8499 = vst [vmem:[#allocation39_spill] sm:$0xff] %v7252_v42  ;;  %8500 = vst [vmem:[#allocation40_spill] sm:$0xff] %v7259_v43  ;;  %v7265_v2 = vld [vmem:[#allocation13 + $0x34] ss:$12 sps:$4 sm:$0xff]  }
 0x441   : > { %8502 = vst [vmem:[#allocation57_spill] sm:$0xff] %v7265_v2 }
 0x442   : > { %2475 = vmatmul.mubr.bf16.vlgmr.msra.gmra.mrb[40].mxu0 %v2441_v46  ;;  %4908 = vmatmul.mubr.bf16.vlgmr.msra.gmra.mrb[60].mxu1 %v2441_v46  ;;  %v7262_v46 = vld [vmem:[#allocation13 + $0x20] ss:$12 sps:$4 sm:$0xff]  }
 0x443   : > { %2558 = vmatpush1.bf16.msra.mxu0 %v8442_v50  ;;  %4912 = vmatpush3.bf16.msra.mxu1 %v8443_v17  ;;  %8501 = vst [vmem:[#allocation41_spill] sm:$0xff] %v7262_v46 }
 0x444   : > { %2559 = vmatprep.subr.bf16.mxu0 %v8444_v19  ;;  %4913 = vmatprep.subr.bf16.mxu1 %v8413_v3  ;;  %v8482_v19 = vld [vmem:[#allocation58_spill] sm:$0xff] }
 0x445   : > { %2589 = vmatprep.mubr.bf16.mxu0 %v8424_v18  ;;  %4927 = vmatprep.mubr.msk.bf16.mxu1 %vm6096_vm0, %v8413_v3 }
 0x447   : > { %2560 = vmatpush1.bf16.msra.mxu0 %v8445_v26  ;;  %4914 = vmatpush3.bf16.msra.mxu1 %v8446_v6  ;;  %v8483_v26 = vld [vmem:[#allocation43_spill] sm:$0xff]  ;;  %v8485_v6 = vld [vmem:[#allocation45_spill] sm:$0xff] }
 0x448   : > { %2561 = vmatprep.subr.bf16.mxu0 %v8447_v15  ;;  %4915 = vmatprep.subr.bf16.mxu1 %v8413_v3  ;;  %v8486_v15 = vld [vmem:[#allocation46_spill] sm:$0xff] }
 0x449   : > { %v5589_v50 = vpop.eup %5588 }
 0x44a   : > { %v2544_v17 = vmul.f32 %v5589_v50, %v2543_v16  ;;  %v7269_v16 = vld [vmem:[#allocation13 + $0x30] ss:$12 sps:$4 sm:$0xff]   ;;  %v7272_v50 = vld [vmem:[#allocation13 + $0x38] ss:$12 sps:$4 sm:$0xff]  }
 0x44b   : > { %2562 = vmatpush1.bf16.msra.mxu0 %v8448_v24  ;;  %4916 = vmatpush3.bf16.msra.mxu1 %v8449_v5  ;;  %v8487_v24 = vld [vmem:[#allocation47_spill] sm:$0xff]  ;;  %v8488_v5 = vld [vmem:[#allocation48_spill] sm:$0xff]  ;;  %8503 = vst [vmem:[#allocation42_spill] sm:$0xff] %v7269_v16  ;;  %8504 = vst [vmem:[#allocation52_spill] sm:$0xff] %v7272_v50 }
 0x44c   : > { %v2545_v47 = vadd.f32 %v2544_v17, %v8482_v19  ;;  %2563 = vmatprep.subr.bf16.mxu0 %v8451_v20  ;;  %4917 = vmatprep.subr.bf16.mxu1 %v8413_v3  ;;  %v8489_v20 = vld [vmem:[#allocation49_spill] sm:$0xff]  ;;  %v7279_v19 = vld [vmem:[#allocation13 + $0x48] ss:$12 sps:$4 sm:$0xff]  }
 0x44d   : > { %v7275_v17 = vld [vmem:[#allocation13 + $0x4c] ss:$12 sps:$4 sm:$0xff]   ;;  %8506 = vst [vmem:[#allocation55_spill] sm:$0xff] %v7279_v19 }
 0x44e   : > { %5590 = vtanh.f32 %v2545_v47  ;;  %8505 = vst [vmem:[#allocation53_spill] sm:$0xff] %v7275_v17  ;;  %v7282_v47 = vld [vmem:[#allocation13 + $0x50] ss:$12 sps:$4 sm:$0xff]  }
 0x44f   : > { %2564 = vmatpush1.bf16.msra.mxu0 %v8483_v26  ;;  %4918 = vmatpush3.bf16.msra.mxu1 %v8484_v12  ;;  %5592 = vrcp.f32 %v2540_v48  ;;  %8507 = vst [vmem:[#allocation56_spill] sm:$0xff] %v7282_v47  ;;  %v7285_v48 = vld [vmem:[#allocation13 + $0x64] ss:$12 sps:$4 sm:$0xff]   ;;  %v7289_v26 = vld [vmem:[#allocation13 + $0x60] ss:$12 sps:$4 sm:$0xff]  }
 0x450   : > { %2565 = vmatprep.subr.bf16.mxu0 %v8485_v6  ;;  %4919 = vmatprep.subr.bf16.mxu1 %v8413_v3  ;;  %8508 = vst [vmem:[#allocation20_spill] sm:$0xff] %v7285_v48  ;;  %8509 = vst [vmem:[#allocation21_spill] sm:$0xff] %v7289_v26  ;;  %v7292_v12 = vld [vmem:[#allocation13 + $0x68] ss:$12 sps:$4 sm:$0xff]  }
 0x451   : > { %8510 = vst [vmem:[#allocation22_spill] sm:$0xff] %v7292_v12  ;;  %v7295_v6 = vld [vmem:[#allocation13 + $0x7c] ss:$12 sps:$4 sm:$0xff]  }
 0x452   : > { %8511 = vst [vmem:[#allocation23_spill] sm:$0xff] %v7295_v6 }
 0x453   : > { %2566 = vmatpush1.bf16.msra.mxu0 %v8486_v15  ;;  %4920 = vmatpush3.bf16.msra.mxu1 %v8487_v24  ;;  %v7299_v15 = vld [vmem:[#allocation13 + $0x78] ss:$12 sps:$4 sm:$0xff]   ;;  %v7302_v24 = vld [vmem:[#allocation13 + $0x80] ss:$12 sps:$4 sm:$0xff]  }
 0x454   : > { %2567 = vmatprep.subr.bf16.mxu0 %v8488_v5  ;;  %4921 = vmatprep.subr.bf16.mxu1 %v8413_v3  ;;  %8512 = vst [vmem:[#allocation24_spill] sm:$0xff] %v7299_v15  ;;  %8513 = vst [vmem:[#allocation25_spill] sm:$0xff] %v7302_v24  ;;  %v7305_v5 = vld [vmem:[#allocation13 + $0x94] ss:$12 sps:$4 sm:$0xff]  }
 0x455   : > { %8514 = vst [vmem:[#allocation26_spill] sm:$0xff] %v7305_v5 }
 0x457   : > { %2568 = vmatpush1.bf16.msra.mxu0 %v8489_v20  ;;  %4922 = vmatpush3.bf16.msra.mxu1 %v8490_v51  ;;  %v7309_v20 = vld [vmem:[#allocation13 + $0x90] ss:$12 sps:$4 sm:$0xff]   ;;  %v7312_v51 = vld [vmem:[#allocation13 + $0x98] ss:$12 sps:$4 sm:$0xff]  }
 0x458   : > { %v5591_v52 = vpop.eup %5590  ;;  %2569 = vmatprep.subr.bf16.mxu0 %v8491_v53  ;;  %4923 = vmatprep.subr.bf16.mxu1 %v8413_v3  ;;  %8515 = vst [vmem:[#allocation27_spill] sm:$0xff] %v7309_v20  ;;  %8516 = vst [vmem:[#allocation28_spill] sm:$0xff] %v7312_v51  ;;  %v7319_v53 = vld [vmem:[#allocation13 + $0xa8] ss:$12 sps:$4 sm:$0xff]  }
 0x459   : > { %v2547_v54 = vsub.f32 %v7017_v10, %v5591_v52  ;;  %v5593_v55 = vpop.eup %5592  ;;  %8518 = vst [vmem:[#allocation30_spill] sm:$0xff] %v7319_v53 }
 0x45b   : > { %v2548_v58 = vmul.f32 %v5593_v55, %v2547_v54  ;;  %2570 = vmatpush1.bf16.msra.mxu0 %v8461_v1  ;;  %4924 = vmatpush3.bf16.msra.mxu1 %v8462_v21  ;;  %v7155_v21 = vld [vmem:[#allocation10 + $0x4] ss:$12 sps:$4 sm:$0xff]  }
 0x45c   : > { %2571 = vmatprep.subr.bf16.mxu0 %v8492_v59  ;;  %4925 = vmatprep.subr.bf16.mxu1 %v8413_v3  ;;  %v7322_v54 = vld [vmem:[#allocation13 + $0xb0] ss:$12 sps:$4 sm:$0xff]  }
 0x45d   : > { %v2549_v60 = vadd.f32 %v5591_v52, %v2548_v58  ;;  %v7315_v52 = vld [vmem:[#allocation13 + $0xac] ss:$12 sps:$4 sm:$0xff]   ;;  %8519 = vst [vmem:[#allocation31_spill] sm:$0xff] %v7322_v54  ;;  %v7325_v55 = vld [vmem:[#allocation11 + $0x4] ss:$12 sps:$4 sm:$0xff]  }
 0x45e   : > { %8517 = vst [vmem:[#allocation29_spill] sm:$0xff] %v7315_v52  ;;  %8520 = vst [vmem:[#allocation32_spill] sm:$0xff] %v7325_v55 }
 0x45f   : > { %v7147_v61 = vsel %vm2554_vm12, %v2549_v60, %v7017_v10  ;;  %2572 = vmatpush1.bf16.msra.mxu0 %v8464_v8  ;;  %4926 = vmatpush3.bf16.msra.mxu1 %v8465_v9  ;;  %v7161_v10 = vld [vmem:[#allocation10] ss:$12 sps:$4 sm:$0xff]   ;;  %v7164_v8 = vld [vmem:[#allocation10 + $0x8] ss:$12 sps:$4 sm:$0xff]  }
 0x460   : > { %v7153_v1 = vpack.c.bf16 %v7147_v61, %v7147_v61  ;;  %2660 = vmatprep.subr.bf16.mxu0 %v7155_v21  ;;  %4931 = vmatprep.subr.bf16.mxu1 %v8413_v3  ;;  %v7167_v9 = vld [vmem:[#allocation10 + $0x1c] ss:$12 sps:$4 sm:$0xff]  }
 0x462   : > { %2590 = vmatmul.mubr.bf16.vlgmr.msra.gmra.mrb[40].mxu0 %v7153_v1  ;;  %4928 = vmatmul.mubr.bf16.vlgmr.msra.gmra.mrb[64].mxu1 %v7153_v1 }
 0x463   : > { %2661 = vmatpush1.bf16.msra.mxu0 %v7161_v10  ;;  %4932 = vmatpush3.bf16.msra.mxu1 %v7164_v8 }
 0x464   : > { %2662 = vmatprep.subr.bf16.mxu0 %v7167_v9  ;;  %4933 = vmatprep.subr.bf16.mxu1 %v8413_v3 }
 0x465   : > { %2692 = vmatprep.mubr.bf16.mxu0 %v8424_v18  ;;  %4947 = vmatprep.mubr.msk.bf16.mxu1 %vm6096_vm0, %v8413_v3 }
 0x467   : > { %2663 = vmatpush1.bf16.msra.mxu0 %v7174_v62  ;;  %4934 = vmatpush3.bf16.msra.mxu1 %v7177_v63 }
 0x468   : > { %2664 = vmatprep.subr.bf16.mxu0 %v7180_v23  ;;  %4935 = vmatprep.subr.bf16.mxu1 %v8413_v3 }
 0x46b   : > { %2665 = vmatpush1.bf16.msra.mxu0 %v7184_v25  ;;  %4936 = vmatpush3.bf16.msra.mxu1 %v7187_v4 }
 0x46c   : > { %2666 = vmatprep.subr.bf16.mxu0 %v7190_v49  ;;  %4937 = vmatprep.subr.bf16.mxu1 %v8413_v3 }
 0x46f   : > { %2667 = vmatpush1.bf16.msra.mxu0 %v7194_v14  ;;  %4938 = vmatpush3.bf16.msra.mxu1 %v7197_v11 }
 0x470   : > { %2668 = vmatprep.subr.bf16.mxu0 %v7200_v27  ;;  %4939 = vmatprep.subr.bf16.mxu1 %v8413_v3 }
 0x473   : > { %2669 = vmatpush1.bf16.msra.mxu0 %v7204_v28  ;;  %4940 = vmatpush3.bf16.msra.mxu1 %v7207_v29 }
 0x474   : > { %2670 = vmatprep.subr.bf16.mxu0 %v7210_v30  ;;  %4941 = vmatprep.subr.bf16.mxu1 %v8413_v3 }
 0x477   : > { %2671 = vmatpush1.bf16.msra.mxu0 %v7214_v31  ;;  %4942 = vmatpush3.bf16.msra.mxu1 %v7217_v32 }
 0x478   : > { %2672 = vmatprep.subr.bf16.mxu0 %v7220_v33  ;;  %4943 = vmatprep.subr.bf16.mxu1 %v8413_v3 }
 0x47b   : > { %2673 = vmatpush1.bf16.msra.mxu0 %v7224_v34  ;;  %4944 = vmatpush3.bf16.msra.mxu1 %v7227_v35 }
 0x47c   : > { %2674 = vmatprep.subr.bf16.mxu0 %v7230_v36  ;;  %4945 = vmatprep.subr.bf16.mxu1 %v8413_v3 }
 0x47f   : > { %2675 = vmatpush1.bf16.msra.mxu0 %v7234_v37  ;;  %4946 = vmatpush3.bf16.msra.mxu1 %v7237_v38 }
 0x480   : > { %2742 = vmatprep.subr.bf16.mxu0 %v7240_v39  ;;  %4951 = vmatprep.subr.bf16.mxu1 %v8413_v3 }
 0x482   : > { %2693 = vmatmul.mubr.bf16.vlgmr.msra.gmra.mrb[12].mxu0 %v7153_v1  ;;  %4948 = vmatmul.mubr.bf16.vlgmr.msra.gmra.mrb[68].mxu1 %v7153_v1 }
 0x483   : > { %2743 = vmatpush1.bf16.msra.mxu0 %v7246_v40  ;;  %4952 = vmatpush3.bf16.msra.mxu1 %v7249_v41 }
 0x484   : > { %2744 = vmatprep.subr.bf16.mxu0 %v7252_v42  ;;  %4953 = vmatprep.subr.bf16.mxu1 %v8413_v3 }
 0x485   : > { %2774 = vmatprep.mubr.bf16.mxu0 %v8424_v18  ;;  %4967 = vmatprep.mubr.msk.bf16.mxu1 %vm6096_vm0, %v8413_v3 }
 0x487   : > { %2745 = vmatpush1.bf16.msra.mxu0 %v7259_v43  ;;  %4954 = vmatpush3.bf16.msra.mxu1 %v7262_v46 }
 0x488   : > { %2746 = vmatprep.subr.bf16.mxu0 %v7265_v2  ;;  %4955 = vmatprep.subr.bf16.mxu1 %v8413_v3 }
 0x48b   : > { %2747 = vmatpush1.bf16.msra.mxu0 %v7269_v16  ;;  %4956 = vmatpush3.bf16.msra.mxu1 %v7272_v50 }
 0x48c   : > { %2748 = vmatprep.subr.bf16.mxu0 %v7275_v17  ;;  %4957 = vmatprep.subr.bf16.mxu1 %v8413_v3 }
 0x48f   : > { %2749 = vmatpush1.bf16.msra.mxu0 %v7279_v19  ;;  %4958 = vmatpush3.bf16.msra.mxu1 %v7282_v47 }
 0x490   : > { %2750 = vmatprep.subr.bf16.mxu0 %v7285_v48  ;;  %4959 = vmatprep.subr.bf16.mxu1 %v8413_v3 }
 0x493   : > { %2751 = vmatpush1.bf16.msra.mxu0 %v7289_v26  ;;  %4960 = vmatpush3.bf16.msra.mxu1 %v7292_v12 }
 0x494   : > { %2752 = vmatprep.subr.bf16.mxu0 %v7295_v6  ;;  %4961 = vmatprep.subr.bf16.mxu1 %v8413_v3 }
 0x497   : > { %2753 = vmatpush1.bf16.msra.mxu0 %v7299_v15  ;;  %4962 = vmatpush3.bf16.msra.mxu1 %v7302_v24 }
 0x498   : > { %2754 = vmatprep.subr.bf16.mxu0 %v7305_v5  ;;  %4963 = vmatprep.subr.bf16.mxu1 %v8413_v3 }
 0x49b   : > { %2755 = vmatpush1.bf16.msra.mxu0 %v7309_v20  ;;  %4964 = vmatpush3.bf16.msra.mxu1 %v7312_v51 }
 0x49c   : > { %2756 = vmatprep.subr.bf16.mxu0 %v7315_v52  ;;  %4965 = vmatprep.subr.bf16.mxu1 %v8413_v3 }
 0x49f   : > { %2757 = vmatpush1.bf16.msra.mxu0 %v7319_v53  ;;  %4966 = vmatpush3.bf16.msra.mxu1 %v7322_v54 }
 0x4a0   : > { %2857 = vmatprep.subr.bf16.mxu0 %v7325_v55  ;;  %4971 = vmatprep.subr.bf16.mxu1 %v8413_v3 }
 0x515   : > { %v2517_v58 = vpop.f32.mrb[60].mxu1 }
 0x516   : > { %v4909_v59 = vpop.f32.mrb[61].mxu1 }
 0x517   : > { %v2520_v60 = vpop.f32.mrb[62].mxu1 }
 0x518   : > { %v4910_v1 = vpop.f32.mrb[63].mxu1  ;;  %v2652_v60 = vadd.f32 %v6957_v7, %v2517_v58 }
 0x535   : > { %v2591_v52 = vpop.f32.mrb[40].mxu0  ;;  %v2632_v51 = vpop.f32.mrb[64].mxu1 }
 0x536   : > { %v2592_v20 = vadd.f32 %v2591_v52, %v8479_v45  ;;  %v2593_v5 = vpop.f32.mrb[41].mxu0  ;;  %v4929_v53 = vpop.f32.mrb[65].mxu1  ;;  %v2633_v52 = vadd.f32 %v2632_v51, %v8481_v0 }
 0x537   : > { %v2595_v24 = vpop.f32.mrb[42].mxu0  ;;  %v2635_v15 = vpop.f32.mrb[66].mxu1  ;;  %v2594_v55 = vadd.f32 %v2593_v5, %v8480_v56 }
 0x538   : > { %v4420_v6 = vmul.f32 -1.442695, %v2592_v20  ;;  %v2596_v54 = vpop.f32.mrb[43].mxu0  ;;  %v4930_v12 = vpop.f32.mrb[67].mxu1 }
 0x539   : > { %v4421_v26 = vmul.f32 -1.442695, %v2594_v55 }
 0x53a   : > { %5594 = vpow2.f32 %v4420_v6 }
 0x53b   : > { %5596 = vpow2.f32 %v4421_v26 }
 0x544   : > { %v5595_v48 = vpop.eup %5594 }
 0x545   : > { %v2642_v47 = vadd.f32 1.0, %v5595_v48  ;;  %v5597_v59 = vpop.eup %5596 }
 0x546   : > { %v2649_v15 = vadd.f32 1.0, %v5597_v59 }
 0x547   : > { %5598 = vrcp.f32 %v2642_v47 }
 0x551   : > { %v5599_v1 = vpop.eup %5598 }
 0x552   : > { %v2653_v53 = vmul.f32 %v5599_v1, %v2652_v60 }
 0x554   : > { %v2654_v24 = vadd.f32 %v2653_v53, %v2633_v52 }
 0x555   : > { %v2694_v20 = vpop.f32.mrb[12].mxu0  ;;  %v2735_v54 = vpop.f32.mrb[68].mxu1 }
 0x556   : > { %5600 = vtanh.f32 %v2654_v24  ;;  %v5237_v12 = vadd.f32 %v2694_v20, %v6831_v13  ;;  %v2696_v6 = vpop.f32.mrb[13].mxu0  ;;  %v4949_v5 = vpop.f32.mrb[69].mxu1  ;;  %v7343_v20 = vld [vmem:[#allocation11] ss:$12 sps:$4 sm:$0xff]  }
 0x557   : > { %v2698_v55 = vpop.f32.mrb[14].mxu0  ;;  %v2738_v48 = vpop.f32.mrb[70].mxu1  ;;  %5602 = vrcp.f32 %v2649_v15  ;;  %v5238_v7 = vadd.f32 %v2696_v6, %v6837_v22  ;;  %v7349_v6 = vld [vmem:[#allocation11 + $0x1c] ss:$12 sps:$4 sm:$0xff]  }
 0x558   : > { %v4422_v47 = vmul.f32 -1.442695, %v5237_v12  ;;  %v2699_v26 = vpop.f32.mrb[15].mxu0  ;;  %v4950_v56 = vpop.f32.mrb[71].mxu1  ;;  %v7346_v12 = vld [vmem:[#allocation11 + $0x8] ss:$12 sps:$4 sm:$0xff]  }
 0x559   : > { %v4423_v60 = vmul.f32 -1.442695, %v5238_v7  ;;  %v7365_v55 = vld [vmem:[%s8423_s11] ss:$0 sm:$0xff] }
 0x55a   : > { %5604 = vpow2.f32 %v4422_v47  ;;  %v2843_v48 = vadd.f32 %v7365_v55, %v2735_v54  ;;  %v7368_v47 = vld [vmem:[#allocation11 + $0x34] ss:$12 sps:$4 sm:$0xff]   ;;  %v7379_v54 = vld [vmem:[#allocation11 + $0x4c] ss:$12 sps:$4 sm:$0xff]  }
 0x55b   : > { %5606 = vpow2.f32 %v4423_v60 }
 0x560   : > { %v5601_v51 = vpop.eup %5600 }
 0x561   : > { %v2656_v58 = vsub.f32 %v7103_v44, %v5601_v51  ;;  %v5603_v59 = vpop.eup %5602 }
 0x563   : > { %v2657_v1 = vmul.f32 %v5603_v59, %v2656_v58  ;;  %v7375_v58 = vld [vmem:[#allocation11 + $0x38] ss:$12 sps:$4 sm:$0xff]   ;;  %v8521_v59 = vld [vmem:[#allocation59_spill] sm:$0xff] }
 0x564   : > { %v5605_v52 = vpop.eup %5604 }
 0x565   : > { %v2833_v53 = vadd.f32 1.0, %v5605_v52  ;;  %v2658_v24 = vadd.f32 %v5601_v51, %v2657_v1  ;;  %v5607_v5 = vpop.eup %5606  ;;  %v7372_v51 = vld [vmem:[#allocation11 + $0x30] ss:$12 sps:$4 sm:$0xff]   ;;  %v7383_v52 = vld [vmem:[#allocation11 + $0x48] ss:$12 sps:$4 sm:$0xff]  }
 0x566   : > { %v2840_v1 = vadd.f32 1.0, %v5607_v5  ;;  %v7396_v5 = vld [vmem:[#allocation11 + $0x68] ss:$12 sps:$4 sm:$0xff]  }
 0x567   : > { %5608 = vrcp.f32 %v2833_v53  ;;  %v7339_v15 = vsel %vm2554_vm12, %v2658_v24, %v7103_v44  ;;  %v7356_v44 = vld [vmem:[#allocation11 + $0x18] ss:$12 sps:$4 sm:$0xff]   ;;  %v7386_v53 = vld [vmem:[#allocation11 + $0x50] ss:$12 sps:$4 sm:$0xff]   ;;  %8524 = vst [vmem:[#allocation43_spill] sm:$0xff] %v7396_v5 }
 0x568   : > { %v2741_v56 = vpack.c.bf16 %v7339_v15, %v7339_v15  ;;  %v7389_v24 = vld [vmem:[#allocation11 + $0x64] ss:$12 sps:$4 sm:$0xff]  }
 0x569   : > { %8522 = vst [vmem:[#allocation65_spill] sm:$0xff] %v7389_v24 }
 0x56a   : > { %2775 = vmatmul.mubr.bf16.vlgmr.msra.gmra.mrb[44].mxu0 %v2741_v56  ;;  %4968 = vmatmul.mubr.bf16.vlgmr.msra.gmra.mrb[72].mxu1 %v2741_v56  ;;  %v7393_v56 = vld [vmem:[#allocation11 + $0x60] ss:$12 sps:$4 sm:$0xff]  }
 0x56b   : > { %2858 = vmatpush1.bf16.msra.mxu0 %v7343_v20  ;;  %4972 = vmatpush3.bf16.msra.mxu1 %v7346_v12  ;;  %8523 = vst [vmem:[#allocation58_spill] sm:$0xff] %v7393_v56 }
 0x56c   : > { %2859 = vmatprep.subr.bf16.mxu0 %v7349_v6  ;;  %4973 = vmatprep.subr.bf16.mxu1 %v8413_v3 }
 0x56d   : > { %2889 = vmatprep.mubr.bf16.mxu0 %v8424_v18  ;;  %4987 = vmatprep.mubr.msk.bf16.mxu1 %vm6096_vm0, %v8413_v3 }
 0x56f   : > { %2860 = vmatpush1.bf16.msra.mxu0 %v7356_v44  ;;  %4974 = vmatpush3.bf16.msra.mxu1 %v7359_v57 }
 0x570   : > { %2861 = vmatprep.subr.bf16.mxu0 %v7368_v47  ;;  %4975 = vmatprep.subr.bf16.mxu1 %v8413_v3 }
 0x571   : > { %v5609_v26 = vpop.eup %5608 }
 0x572   : > { %v2844_v7 = vmul.f32 %v5609_v26, %v2843_v48  ;;  %v7399_v48 = vld [vmem:[#allocation11 + $0x7c] ss:$12 sps:$4 sm:$0xff]   ;;  %v7403_v26 = vld [vmem:[#allocation11 + $0x78] ss:$12 sps:$4 sm:$0xff]  }
 0x573   : > { %2862 = vmatpush1.bf16.msra.mxu0 %v7372_v51  ;;  %4976 = vmatpush3.bf16.msra.mxu1 %v7375_v58  ;;  %8525 = vst [vmem:[#allocation44_spill] sm:$0xff] %v7399_v48  ;;  %8526 = vst [vmem:[#allocation45_spill] sm:$0xff] %v7403_v26 }
 0x574   : > { %v2845_v60 = vadd.f32 %v2844_v7, %v8521_v59  ;;  %2863 = vmatprep.subr.bf16.mxu0 %v7379_v54  ;;  %4977 = vmatprep.subr.bf16.mxu1 %v8413_v3  ;;  %v7406_v7 = vld [vmem:[#allocation11 + $0x80] ss:$12 sps:$4 sm:$0xff]  }
 0x575   : > { %8527 = vst [vmem:[#allocation46_spill] sm:$0xff] %v7406_v7 }
 0x576   : > { %5610 = vtanh.f32 %v2845_v60  ;;  %v7409_v60 = vld [vmem:[#allocation11 + $0x94] ss:$12 sps:$4 sm:$0xff]  }
 0x577   : > { %2864 = vmatpush1.bf16.msra.mxu0 %v7383_v52  ;;  %4978 = vmatpush3.bf16.msra.mxu1 %v7386_v53  ;;  %5612 = vrcp.f32 %v2840_v1  ;;  %8528 = vst [vmem:[#allocation47_spill] sm:$0xff] %v7409_v60 }
 0x578   : > { %2865 = vmatprep.subr.bf16.mxu0 %v7389_v24  ;;  %4979 = vmatprep.subr.bf16.mxu1 %v8413_v3 }
 0x57b   : > { %2866 = vmatpush1.bf16.msra.mxu0 %v7393_v56  ;;  %4980 = vmatpush3.bf16.msra.mxu1 %v7396_v5  ;;  %v7414_v56 = vld [vmem:[#allocation11 + $0x90] ss:$12 sps:$4 sm:$0xff]  }
 0x57c   : > { %2867 = vmatprep.subr.bf16.mxu0 %v7399_v48  ;;  %4981 = vmatprep.subr.bf16.mxu1 %v8413_v3 }
 0x57f   : > { %2868 = vmatpush1.bf16.msra.mxu0 %v7403_v26  ;;  %4982 = vmatpush3.bf16.msra.mxu1 %v7406_v7  ;;  %v7417_v26 = vld [vmem:[#allocation11 + $0x98] ss:$12 sps:$4 sm:$0xff]  }
 0x580   : > { %v5611_v59 = vpop.eup %5610  ;;  %2869 = vmatprep.subr.bf16.mxu0 %v7409_v60  ;;  %4983 = vmatprep.subr.bf16.mxu1 %v8413_v3  ;;  %8529 = vst [vmem:[#allocation48_spill] sm:$0xff] %v7417_v26  ;;  %v7420_v7 = vld [vmem:[#allocation11 + $0xac] ss:$12 sps:$4 sm:$0xff]   ;;  %v7424_v60 = vpop.permute.xlu1 %2852 }
 0x581   : > { %v2847_v1 = vsub.f32 %v7147_v61, %v5611_v59  ;;  %v5613_v48 = vpop.eup %5612  ;;  %8530 = vst [vmem:[#allocation49_spill] sm:$0xff] %v7420_v7  ;;  %vm2854_vm13 = vcmp.eq.s32.totalorder %v7424_v60, 1 }
 0x583   : > { %v2848_v5 = vmul.f32 %v5613_v48, %v2847_v1  ;;  %2870 = vmatpush1.bf16.msra.mxu0 %v7414_v56  ;;  %4984 = vmatpush3.bf16.msra.mxu1 %v7417_v26  ;;  %v7427_v48 = vld [vmem:[#allocation11 + $0xa8] ss:$12 sps:$4 sm:$0xff]   ;;  %v7430_v1 = vld [vmem:[#allocation11 + $0xb0] ss:$12 sps:$4 sm:$0xff]  }
 0x584   : > { %2871 = vmatprep.subr.bf16.mxu0 %v7420_v7  ;;  %4985 = vmatprep.subr.bf16.mxu1 %v8413_v3 }
 0x585   : > { %v2849_v24 = vadd.f32 %v5611_v59, %v2848_v5  ;;  %v8533_v5 = vld [vmem:[#allocation21_spill] sm:$0xff]  ;;  %v8535_v59 = vld [vmem:[#allocation23_spill] sm:$0xff] }
 0x587   : > { %2872 = vmatpush1.bf16.msra.mxu0 %v7427_v48  ;;  %4986 = vmatpush3.bf16.msra.mxu1 %v7430_v1  ;;  %v7436_v26 = vsel %vm2854_vm13, %v2849_v24, %v7147_v61  ;;  %v8531_v61 = vld [vmem:[#allocation56_spill] sm:$0xff] }
 0x588   : > { %v2856_v7 = vpack.c.bf16 %v7436_v26, %v7436_v26  ;;  %2960 = vmatprep.subr.bf16.mxu0 %v7155_v21  ;;  %4991 = vmatprep.subr.bf16.mxu1 %v8413_v3  ;;  %v8532_v24 = vld [vmem:[#allocation20_spill] sm:$0xff] }
 0x58a   : > { %2890 = vmatmul.mubr.bf16.vlgmr.msra.gmra.mrb[44].mxu0 %v2856_v7  ;;  %4988 = vmatmul.mubr.bf16.vlgmr.msra.gmra.mrb[76].mxu1 %v2856_v7 }
 0x58b   : > { %2961 = vmatpush1.bf16.msra.mxu0 %v7161_v10  ;;  %4992 = vmatpush3.bf16.msra.mxu1 %v7164_v8 }
 0x58c   : > { %2962 = vmatprep.subr.bf16.mxu0 %v7167_v9  ;;  %4993 = vmatprep.subr.bf16.mxu1 %v8413_v3 }
 0x58d   : > { %2992 = vmatprep.mubr.bf16.mxu0 %v8424_v18  ;;  %5007 = vmatprep.mubr.msk.bf16.mxu1 %vm6096_vm0, %v8413_v3 }
 0x58f   : > { %2963 = vmatpush1.bf16.msra.mxu0 %v7174_v62  ;;  %4994 = vmatpush3.bf16.msra.mxu1 %v7177_v63 }
 0x590   : > { %2964 = vmatprep.subr.bf16.mxu0 %v7180_v23  ;;  %4995 = vmatprep.subr.bf16.mxu1 %v8413_v3 }
 0x593   : > { %2965 = vmatpush1.bf16.msra.mxu0 %v7184_v25  ;;  %4996 = vmatpush3.bf16.msra.mxu1 %v7187_v4 }
 0x594   : > { %2966 = vmatprep.subr.bf16.mxu0 %v7190_v49  ;;  %4997 = vmatprep.subr.bf16.mxu1 %v8413_v3 }
 0x597   : > { %2967 = vmatpush1.bf16.msra.mxu0 %v7194_v14  ;;  %4998 = vmatpush3.bf16.msra.mxu1 %v7197_v11 }
 0x598   : > { %2968 = vmatprep.subr.bf16.mxu0 %v7200_v27  ;;  %4999 = vmatprep.subr.bf16.mxu1 %v8413_v3 }
 0x59b   : > { %2969 = vmatpush1.bf16.msra.mxu0 %v7204_v28  ;;  %5000 = vmatpush3.bf16.msra.mxu1 %v7207_v29 }
 0x59c   : > { %2970 = vmatprep.subr.bf16.mxu0 %v7210_v30  ;;  %5001 = vmatprep.subr.bf16.mxu1 %v8413_v3 }
 0x59f   : > { %2971 = vmatpush1.bf16.msra.mxu0 %v7214_v31  ;;  %5002 = vmatpush3.bf16.msra.mxu1 %v7217_v32 }
 0x5a0   : > { %2972 = vmatprep.subr.bf16.mxu0 %v7220_v33  ;;  %5003 = vmatprep.subr.bf16.mxu1 %v8413_v3 }
 0x5a3   : > { %2973 = vmatpush1.bf16.msra.mxu0 %v7224_v34  ;;  %5004 = vmatpush3.bf16.msra.mxu1 %v7227_v35 }
 0x5a4   : > { %2974 = vmatprep.subr.bf16.mxu0 %v7230_v36  ;;  %5005 = vmatprep.subr.bf16.mxu1 %v8413_v3 }
 0x5a7   : > { %2975 = vmatpush1.bf16.msra.mxu0 %v7234_v37  ;;  %5006 = vmatpush3.bf16.msra.mxu1 %v7237_v38 }
 0x5a8   : > { %3042 = vmatprep.subr.bf16.mxu0 %v7240_v39  ;;  %5011 = vmatprep.subr.bf16.mxu1 %v8413_v3 }
 0x5aa   : > { %2993 = vmatmul.mubr.bf16.vlgmr.msra.gmra.mrb[16].mxu0 %v2856_v7  ;;  %5008 = vmatmul.mubr.bf16.vlgmr.msra.gmra.mrb[80].mxu1 %v2856_v7  ;;  %v8534_v7 = vld [vmem:[#allocation22_spill] sm:$0xff] }
 0x5ab   : > { %3043 = vmatpush1.bf16.msra.mxu0 %v7246_v40  ;;  %5012 = vmatpush3.bf16.msra.mxu1 %v7249_v41 }
 0x5ac   : > { %3044 = vmatprep.subr.bf16.mxu0 %v7252_v42  ;;  %5013 = vmatprep.subr.bf16.mxu1 %v8413_v3 }
 0x5ad   : > { %3074 = vmatprep.mubr.bf16.mxu0 %v8424_v18  ;;  %5027 = vmatprep.mubr.msk.bf16.mxu1 %vm6096_vm0, %v8413_v3 }
 0x5af   : > { %3045 = vmatpush1.bf16.msra.mxu0 %v7259_v43  ;;  %5014 = vmatpush3.bf16.msra.mxu1 %v7262_v46 }
 0x5b0   : > { %3046 = vmatprep.subr.bf16.mxu0 %v7265_v2  ;;  %5015 = vmatprep.subr.bf16.mxu1 %v8413_v3 }
 0x5b3   : > { %3047 = vmatpush1.bf16.msra.mxu0 %v7269_v16  ;;  %5016 = vmatpush3.bf16.msra.mxu1 %v7272_v50  ;;  %v8536_v50 = vld [vmem:[#allocation24_spill] sm:$0xff]  ;;  %v8538_v16 = vld [vmem:[#allocation26_spill] sm:$0xff] }
 0x5b4   : > { %3048 = vmatprep.subr.bf16.mxu0 %v7275_v17  ;;  %5017 = vmatprep.subr.bf16.mxu1 %v8413_v3  ;;  %v8537_v17 = vld [vmem:[#allocation25_spill] sm:$0xff] }
 0x5b7   : > { %3049 = vmatpush1.bf16.msra.mxu0 %v7279_v19  ;;  %5018 = vmatpush3.bf16.msra.mxu1 %v8531_v61  ;;  %v8539_v61 = vld [vmem:[#allocation27_spill] sm:$0xff]  ;;  %v8541_v19 = vld [vmem:[#allocation29_spill] sm:$0xff] }
 0x5b8   : > { %3050 = vmatprep.subr.bf16.mxu0 %v8532_v24  ;;  %5019 = vmatprep.subr.bf16.mxu1 %v8413_v3  ;;  %v8540_v24 = vld [vmem:[#allocation28_spill] sm:$0xff] }
 0x5bb   : > { %3051 = vmatpush1.bf16.msra.mxu0 %v8533_v5  ;;  %5020 = vmatpush3.bf16.msra.mxu1 %v8534_v7  ;;  %v8542_v7 = vld [vmem:[#allocation30_spill] sm:$0xff]  ;;  %v8544_v5 = vld [vmem:[#allocation32_spill] sm:$0xff] }
 0x5bc   : > { %3052 = vmatprep.subr.bf16.mxu0 %v8535_v59  ;;  %5021 = vmatprep.subr.bf16.mxu1 %v8413_v3  ;;  %v8543_v59 = vld [vmem:[#allocation31_spill] sm:$0xff] }
 0x5bf   : > { %3053 = vmatpush1.bf16.msra.mxu0 %v8536_v50  ;;  %5022 = vmatpush3.bf16.msra.mxu1 %v8537_v17 }
 0x5c0   : > { %3054 = vmatprep.subr.bf16.mxu0 %v8538_v16  ;;  %5023 = vmatprep.subr.bf16.mxu1 %v8413_v3 }
 0x5c3   : > { %3055 = vmatpush1.bf16.msra.mxu0 %v8539_v61  ;;  %5024 = vmatpush3.bf16.msra.mxu1 %v8540_v24 }
 0x5c4   : > { %3056 = vmatprep.subr.bf16.mxu0 %v8541_v19  ;;  %5025 = vmatprep.subr.bf16.mxu1 %v8413_v3 }
 0x5c7   : > { %3057 = vmatpush1.bf16.msra.mxu0 %v8542_v7  ;;  %5026 = vmatpush3.bf16.msra.mxu1 %v8543_v59  ;;  %v8545_v59 = vld [vmem:[#allocation64_spill] sm:$0xff] }
 0x5c8   : > { %3157 = vmatprep.subr.bf16.mxu0 %v8544_v5  ;;  %5031 = vmatprep.subr.bf16.mxu1 %v8413_v3 }
 0x63d   : > { %v2817_v17 = vpop.f32.mrb[72].mxu1 }
 0x63e   : > { %v4969_v16 = vpop.f32.mrb[73].mxu1 }
 0x63f   : > { %v2820_v50 = vpop.f32.mrb[74].mxu1 }
 0x640   : > { %v4970_v2 = vpop.f32.mrb[75].mxu1 }
 0x65d   : > { %v2891_v46 = vpop.f32.mrb[44].mxu0  ;;  %v2932_v61 = vpop.f32.mrb[76].mxu1 }
 0x65e   : > { %v2892_v24 = vadd.f32 %v2891_v46, %v8479_v45  ;;  %v2893_v43 = vpop.f32.mrb[45].mxu0  ;;  %v4989_v19 = vpop.f32.mrb[77].mxu1  ;;  %v7517_v46 = vld [vmem:[%s8438_s22] ss:$0 sm:$0xff]  ;;  %v2933_v16 = vadd.f32 %v2932_v61, %v8481_v0 }
 0x65f   : > { %v2895_v42 = vpop.f32.mrb[46].mxu0  ;;  %v2935_v41 = vpop.f32.mrb[78].mxu1  ;;  %v2894_v5 = vadd.f32 %v2893_v43, %v8545_v59 }
 0x660   : > { %v4424_v40 = vmul.f32 -1.442695, %v2892_v24  ;;  %v2896_v7 = vpop.f32.mrb[47].mxu0  ;;  %v4990_v39 = vpop.f32.mrb[79].mxu1  ;;  %v2952_v42 = vadd.f32 %v7517_v46, %v2817_v17 }
 0x661   : > { %v4425_v38 = vmul.f32 -1.442695, %v2894_v5 }
 0x662   : > { %5614 = vpow2.f32 %v4424_v40 }
 0x663   : > { %5616 = vpow2.f32 %v4425_v38 }
 0x66c   : > { %v5615_v37 = vpop.eup %5614 }
 0x66d   : > { %v2942_v36 = vadd.f32 1.0, %v5615_v37  ;;  %v5617_v2 = vpop.eup %5616 }
 0x66e   : > { %v2949_v50 = vadd.f32 1.0, %v5617_v2 }
 0x66f   : > { %5618 = vrcp.f32 %v2942_v36 }
 0x679   : > { %v5619_v41 = vpop.eup %5618 }
 0x67a   : > { %v2953_v39 = vmul.f32 %v5619_v41, %v2952_v42 }
 0x67c   : > { %v2954_v40 = vadd.f32 %v2953_v39, %v2933_v16 }
 0x67d   : > { %v2994_v43 = vpop.f32.mrb[16].mxu0  ;;  %v3035_v19 = vpop.f32.mrb[80].mxu1 }
 0x67e   : > { %5620 = vtanh.f32 %v2954_v40  ;;  %v5239_v37 = vadd.f32 %v2994_v43, %v6831_v13  ;;  %v2996_v36 = vpop.f32.mrb[17].mxu0  ;;  %v5009_v38 = vpop.f32.mrb[81].mxu1  ;;  %v3143_v60 = vadd.f32 %v7365_v55, %v3035_v19  ;;  %v8547_v19 = vld [vmem:[#allocation65_spill] sm:$0xff] }
 0x67f   : > { %v2998_v24 = vpop.f32.mrb[18].mxu0  ;;  %v3038_v5 = vpop.f32.mrb[82].mxu1  ;;  %5622 = vrcp.f32 %v2949_v50  ;;  %v5240_v17 = vadd.f32 %v2996_v36, %v6837_v22  ;;  %v8546_v36 = vld [vmem:[#allocation60_spill] sm:$0xff] }
 0x680   : > { %v4426_v7 = vmul.f32 -1.442695, %v5239_v37  ;;  %v2999_v59 = vpop.f32.mrb[19].mxu0  ;;  %v5010_v45 = vpop.f32.mrb[83].mxu1  ;;  %v8548_v5 = vld [vmem:[#allocation58_spill] sm:$0xff] }
 0x681   : > { %v4427_v41 = vmul.f32 -1.442695, %v5240_v17  ;;  %v8550_v17 = vld [vmem:[#allocation44_spill] sm:$0xff] }
 0x682   : > { %5624 = vpow2.f32 %v4426_v7  ;;  %v8549_v7 = vld [vmem:[#allocation43_spill] sm:$0xff] }
 0x683   : > { %5626 = vpow2.f32 %v4427_v41  ;;  %v8553_v41 = vld [vmem:[#allocation47_spill] sm:$0xff] }
 0x688   : > { %v5621_v61 = vpop.eup %5620 }
 0x689   : > { %v2956_v42 = vsub.f32 %v7339_v15, %v5621_v61  ;;  %v5623_v2 = vpop.eup %5622 }
 0x68b   : > { %v2957_v16 = vmul.f32 %v5623_v2, %v2956_v42  ;;  %v8552_v42 = vld [vmem:[#allocation46_spill] sm:$0xff] }
 0x68c   : > { %v5625_v39 = vpop.eup %5624 }
 0x68d   : > { %v3133_v40 = vadd.f32 1.0, %v5625_v39  ;;  %v2958_v43 = vadd.f32 %v5621_v61, %v2957_v16  ;;  %v8551_v61 = vld [vmem:[#allocation45_spill] sm:$0xff] }
 0x68f   : > { %5628 = vrcp.f32 %v3133_v40  ;;  %v7527_v50 = vsel %vm2854_vm13, %v2958_v43, %v7339_v15  ;;  %v5627_v15 = vpop.eup %5626  ;;  %v8554_v43 = vld [vmem:[#allocation48_spill] sm:$0xff] }
 0x690   : > { %v3041_v45 = vpack.c.bf16 %v7527_v50, %v7527_v50  ;;  %v3140_v24 = vadd.f32 1.0, %v5627_v15  ;;  %v7565_v15 = vpop.permute.xlu0 %3152 }
 0x691   : > { %vm3154_vm14 = vcmp.eq.s32.totalorder %v7565_v15, 1 }
 0x692   : > { %3075 = vmatmul.mubr.bf16.vlgmr.msra.gmra.mrb[48].mxu0 %v3041_v45  ;;  %5028 = vmatmul.mubr.bf16.vlgmr.msra.gmra.mrb[84].mxu1 %v3041_v45  ;;  %v8555_v45 = vld [vmem:[#allocation49_spill] sm:$0xff] }
 0x693   : > { %3158 = vmatpush1.bf16.msra.mxu0 %v7343_v20  ;;  %5032 = vmatpush3.bf16.msra.mxu1 %v7346_v12 }
 0x694   : > { %3159 = vmatprep.subr.bf16.mxu0 %v7349_v6  ;;  %5033 = vmatprep.subr.bf16.mxu1 %v8413_v3 }
 0x695   : > { %3189 = vmatprep.mubr.bf16.mxu0 %v8424_v18  ;;  %5047 = vmatprep.mubr.msk.bf16.mxu1 %vm6096_vm0, %v8413_v3 }
 0x697   : > { %3160 = vmatpush1.bf16.msra.mxu0 %v7356_v44  ;;  %5034 = vmatpush3.bf16.msra.mxu1 %v7359_v57 }
 0x698   : > { %3161 = vmatprep.subr.bf16.mxu0 %v7368_v47  ;;  %5035 = vmatprep.subr.bf16.mxu1 %v8413_v3 }
 0x699   : > { %v5629_v59 = vpop.eup %5628 }
 0x69a   : > { %v3144_v37 = vmul.f32 %v5629_v59, %v3143_v60 }
 0x69b   : > { %3162 = vmatpush1.bf16.msra.mxu0 %v7372_v51  ;;  %5036 = vmatpush3.bf16.msra.mxu1 %v7375_v58 }
 0x69c   : > { %v3145_v38 = vadd.f32 %v3144_v37, %v8546_v36  ;;  %3163 = vmatprep.subr.bf16.mxu0 %v7379_v54  ;;  %5037 = vmatprep.subr.bf16.mxu1 %v8413_v3  ;;  %v8578_v36 = vld [vmem:[#allocation27_spill] sm:$0xff] }
 0x69e   : > { %5630 = vtanh.f32 %v3145_v38  ;;  %v8579_v38 = vld [vmem:[#allocation28_spill] sm:$0xff] }
 0x69f   : > { %3164 = vmatpush1.bf16.msra.mxu0 %v7383_v52  ;;  %5038 = vmatpush3.bf16.msra.mxu1 %v7386_v53  ;;  %5632 = vrcp.f32 %v3140_v24  ;;  %v8580_v24 = vld [vmem:[#allocation29_spill] sm:$0xff] }
 0x6a0   : > { %3165 = vmatprep.subr.bf16.mxu0 %v8547_v19  ;;  %5039 = vmatprep.subr.bf16.mxu1 %v8413_v3 }
 0x6a3   : > { %3166 = vmatpush1.bf16.msra.mxu0 %v8548_v5  ;;  %5040 = vmatpush3.bf16.msra.mxu1 %v8549_v7 }
 0x6a4   : > { %3167 = vmatprep.subr.bf16.mxu0 %v8550_v17  ;;  %5041 = vmatprep.subr.bf16.mxu1 %v8413_v3 }
 0x6a7   : > { %3168 = vmatpush1.bf16.msra.mxu0 %v8551_v61  ;;  %5042 = vmatpush3.bf16.msra.mxu1 %v8552_v42 }
 0x6a8   : > { %v5631_v2 = vpop.eup %5630  ;;  %3169 = vmatprep.subr.bf16.mxu0 %v8553_v41  ;;  %5043 = vmatprep.subr.bf16.mxu1 %v8413_v3 }
 0x6a9   : > { %v3147_v16 = vsub.f32 %v7436_v26, %v5631_v2  ;;  %v5633_v39 = vpop.eup %5632 }
 0x6ab   : > { %v3148_v40 = vmul.f32 %v5633_v39, %v3147_v16  ;;  %3170 = vmatpush1.bf16.msra.mxu0 %v7414_v56  ;;  %5044 = vmatpush3.bf16.msra.mxu1 %v8554_v43  ;;  %v8582_v16 = vld [vmem:[#allocation31_spill] sm:$0xff]  ;;  %v8583_v39 = vld [vmem:[#allocation32_spill] sm:$0xff] }
 0x6ac   : > { %3171 = vmatprep.subr.bf16.mxu0 %v8555_v45  ;;  %5045 = vmatprep.subr.bf16.mxu1 %v8413_v3 }
 0x6ad   : > { %v3149_v60 = vadd.f32 %v5631_v2, %v3148_v40  ;;  %v8581_v2 = vld [vmem:[#allocation30_spill] sm:$0xff] }
 0x6af   : > { %3172 = vmatpush1.bf16.msra.mxu0 %v7427_v48  ;;  %5046 = vmatpush3.bf16.msra.mxu1 %v7430_v1  ;;  %v7573_v59 = vsel %vm3154_vm14, %v3149_v60, %v7436_v26  ;;  %v8577_v26 = vld [vmem:[#allocation26_spill] sm:$0xff] }
 0x6b0   : > { %3260 = vmatprep.subr.bf16.mxu0 %v7155_v21  ;;  %5051 = vmatprep.subr.bf16.mxu1 %v8413_v3  ;;  %v3156_v37 = vpack.c.bf16 %v7573_v59, %v7573_v59  ;;  %v8556_v21 = vld [vmem:[#allocation33_spill] sm:$0xff] }
 0x6b2   : > { %3190 = vmatmul.mubr.bf16.vlgmr.msra.gmra.mrb[48].mxu0 %v3156_v37  ;;  %5048 = vmatmul.mubr.bf16.vlgmr.msra.gmra.mrb[88].mxu1 %v3156_v37 }
 0x6b3   : > { %3261 = vmatpush1.bf16.msra.mxu0 %v7161_v10  ;;  %5052 = vmatpush3.bf16.msra.mxu1 %v7164_v8  ;;  %v8557_v10 = vld [vmem:[#allocation34_spill] sm:$0xff]  ;;  %v8558_v8 = vld [vmem:[#allocation35_spill] sm:$0xff] }
 0x6b4   : > { %3262 = vmatprep.subr.bf16.mxu0 %v7167_v9  ;;  %5053 = vmatprep.subr.bf16.mxu1 %v8413_v3  ;;  %v8559_v9 = vld [vmem:[#allocation36_spill] sm:$0xff] }
 0x6b5   : > { %3292 = vmatprep.mubr.bf16.mxu0 %v8424_v18  ;;  %5067 = vmatprep.mubr.msk.bf16.mxu1 %vm6096_vm0, %v8413_v3 }
 0x6b7   : > { %3263 = vmatpush1.bf16.msra.mxu0 %v7174_v62  ;;  %5054 = vmatpush3.bf16.msra.mxu1 %v7177_v63  ;;  %v8560_v62 = vld [vmem:[#allocation37_spill] sm:$0xff]  ;;  %v8561_v63 = vld [vmem:[#allocation38_spill] sm:$0xff] }
 0x6b8   : > { %3264 = vmatprep.subr.bf16.mxu0 %v7180_v23  ;;  %5055 = vmatprep.subr.bf16.mxu1 %v8413_v3  ;;  %v8562_v23 = vld [vmem:[#allocation39_spill] sm:$0xff] }
 0x6bb   : > { %3265 = vmatpush1.bf16.msra.mxu0 %v7184_v25  ;;  %5056 = vmatpush3.bf16.msra.mxu1 %v7187_v4  ;;  %v8563_v25 = vld [vmem:[#allocation40_spill] sm:$0xff]  ;;  %v8564_v4 = vld [vmem:[#allocation41_spill] sm:$0xff] }
 0x6bc   : > { %3266 = vmatprep.subr.bf16.mxu0 %v7190_v49  ;;  %5057 = vmatprep.subr.bf16.mxu1 %v8413_v3  ;;  %v8565_v49 = vld [vmem:[#allocation57_spill] sm:$0xff] }
 0x6bf   : > { %3267 = vmatpush1.bf16.msra.mxu0 %v7194_v14  ;;  %5058 = vmatpush3.bf16.msra.mxu1 %v7197_v11  ;;  %v8566_v14 = vld [vmem:[#allocation42_spill] sm:$0xff]  ;;  %v8567_v11 = vld [vmem:[#allocation52_spill] sm:$0xff] }
 0x6c0   : > { %3268 = vmatprep.subr.bf16.mxu0 %v7200_v27  ;;  %5059 = vmatprep.subr.bf16.mxu1 %v8413_v3  ;;  %v8568_v27 = vld [vmem:[#allocation53_spill] sm:$0xff] }
 0x6c3   : > { %3269 = vmatpush1.bf16.msra.mxu0 %v7204_v28  ;;  %5060 = vmatpush3.bf16.msra.mxu1 %v7207_v29  ;;  %v8569_v28 = vld [vmem:[#allocation55_spill] sm:$0xff]  ;;  %v8570_v29 = vld [vmem:[#allocation56_spill] sm:$0xff] }
 0x6c4   : > { %3270 = vmatprep.subr.bf16.mxu0 %v7210_v30  ;;  %5061 = vmatprep.subr.bf16.mxu1 %v8413_v3  ;;  %v8571_v30 = vld [vmem:[#allocation20_spill] sm:$0xff] }
 0x6c7   : > { %3271 = vmatpush1.bf16.msra.mxu0 %v7214_v31  ;;  %5062 = vmatpush3.bf16.msra.mxu1 %v7217_v32  ;;  %v8572_v31 = vld [vmem:[#allocation21_spill] sm:$0xff]  ;;  %v8573_v32 = vld [vmem:[#allocation22_spill] sm:$0xff] }
 0x6c8   : > { %3272 = vmatprep.subr.bf16.mxu0 %v7220_v33  ;;  %5063 = vmatprep.subr.bf16.mxu1 %v8413_v3  ;;  %v8574_v33 = vld [vmem:[#allocation23_spill] sm:$0xff] }
 0x6cb   : > { %3273 = vmatpush1.bf16.msra.mxu0 %v7224_v34  ;;  %5064 = vmatpush3.bf16.msra.mxu1 %v7227_v35  ;;  %v8575_v34 = vld [vmem:[#allocation24_spill] sm:$0xff]  ;;  %v8576_v35 = vld [vmem:[#allocation25_spill] sm:$0xff] }
 0x6cc   : > { %3274 = vmatprep.subr.bf16.mxu0 %v8556_v21  ;;  %5065 = vmatprep.subr.bf16.mxu1 %v8413_v3 }
 0x6cf   : > { %3275 = vmatpush1.bf16.msra.mxu0 %v8557_v10  ;;  %5066 = vmatpush3.bf16.msra.mxu1 %v8558_v8 }
 0x6d0   : > { %3342 = vmatprep.subr.bf16.mxu0 %v8559_v9  ;;  %5071 = vmatprep.subr.bf16.mxu1 %v8413_v3  ;;  %v8584_v9 = vld [vmem:[#allocation19_spill] sm:$0xff] }
 0x6d2   : > { %3293 = vmatmul.mubr.bf16.vlgmr.msra.gmra.mrb[20].mxu0 %v3156_v37  ;;  %5068 = vmatmul.mubr.bf16.vlgmr.msra.gmra.mrb[92].mxu1 %v3156_v37 }
 0x6d3   : > { %3343 = vmatpush1.bf16.msra.mxu0 %v8560_v62  ;;  %5072 = vmatpush3.bf16.msra.mxu1 %v8561_v63 }
 0x6d4   : > { %3344 = vmatprep.subr.bf16.mxu0 %v8562_v23  ;;  %5073 = vmatprep.subr.bf16.mxu1 %v8413_v3 }
 0x6d5   : > { %3374 = vmatprep.mubr.bf16.mxu0 %v8424_v18  ;;  %5087 = vmatprep.mubr.msk.bf16.mxu1 %vm6096_vm0, %v8413_v3 }
 0x6d7   : > { %3345 = vmatpush1.bf16.msra.mxu0 %v8563_v25  ;;  %5074 = vmatpush3.bf16.msra.mxu1 %v8564_v4 }
 0x6d8   : > { %3346 = vmatprep.subr.bf16.mxu0 %v8565_v49  ;;  %5075 = vmatprep.subr.bf16.mxu1 %v8413_v3 }
 0x6db   : > { %3347 = vmatpush1.bf16.msra.mxu0 %v8566_v14  ;;  %5076 = vmatpush3.bf16.msra.mxu1 %v8567_v11 }
 0x6dc   : > { %3348 = vmatprep.subr.bf16.mxu0 %v8568_v27  ;;  %5077 = vmatprep.subr.bf16.mxu1 %v8413_v3  ;;  %v8585_v27 = vld [vmem:[#allocation64_spill] sm:$0xff] }
 0x6df   : > { %3349 = vmatpush1.bf16.msra.mxu0 %v8569_v28  ;;  %5078 = vmatpush3.bf16.msra.mxu1 %v8570_v29 }
 0x6e0   : > { %3350 = vmatprep.subr.bf16.mxu0 %v8571_v30  ;;  %5079 = vmatprep.subr.bf16.mxu1 %v8413_v3 }
 0x6e3   : > { %3351 = vmatpush1.bf16.msra.mxu0 %v8572_v31  ;;  %5080 = vmatpush3.bf16.msra.mxu1 %v8573_v32 }
 0x6e4   : > { %3352 = vmatprep.subr.bf16.mxu0 %v8574_v33  ;;  %5081 = vmatprep.subr.bf16.mxu1 %v8413_v3 }
 0x6e7   : > { %3353 = vmatpush1.bf16.msra.mxu0 %v8575_v34  ;;  %5082 = vmatpush3.bf16.msra.mxu1 %v8576_v35 }
 0x6e8   : > { %3354 = vmatprep.subr.bf16.mxu0 %v8577_v26  ;;  %5083 = vmatprep.subr.bf16.mxu1 %v8413_v3 }
 0x6eb   : > { %3355 = vmatpush1.bf16.msra.mxu0 %v8578_v36  ;;  %5084 = vmatpush3.bf16.msra.mxu1 %v8579_v38 }
 0x6ec   : > { %3356 = vmatprep.subr.bf16.mxu0 %v8580_v24  ;;  %5085 = vmatprep.subr.bf16.mxu1 %v8413_v3 }
 0x6ef   : > { %3357 = vmatpush1.bf16.msra.mxu0 %v8581_v2  ;;  %5086 = vmatpush3.bf16.msra.mxu1 %v8582_v16 }
 0x6f0   : > { %3457 = vmatprep.subr.bf16.mxu0 %v8583_v39  ;;  %5091 = vmatprep.subr.bf16.mxu1 %v8413_v3 }
 0x765   : > { %v3117_v40 = vpop.f32.mrb[84].mxu1 }
 0x766   : > { %v5029_v60 = vpop.f32.mrb[85].mxu1  ;;  %v3252_v33 = vadd.f32 %v7517_v46, %v3117_v40 }
 0x767   : > { %v3120_v37 = vpop.f32.mrb[86].mxu1 }
 0x768   : > { %v5030_v21 = vpop.f32.mrb[87].mxu1 }
 0x785   : > { %v3191_v10 = vpop.f32.mrb[48].mxu0  ;;  %v3232_v8 = vpop.f32.mrb[88].mxu1 }
 0x786   : > { %v3192_v62 = vadd.f32 %v3191_v10, %v8584_v9  ;;  %v3193_v63 = vpop.f32.mrb[49].mxu0  ;;  %v5049_v23 = vpop.f32.mrb[89].mxu1  ;;  %v3233_v35 = vadd.f32 %v3232_v8, %v8481_v0 }
 0x787   : > { %v3195_v25 = vpop.f32.mrb[50].mxu0  ;;  %v3235_v4 = vpop.f32.mrb[90].mxu1  ;;  %v3194_v28 = vadd.f32 %v3193_v63, %v8585_v27 }
 0x788   : > { %v4428_v49 = vmul.f32 -1.442695, %v3192_v62  ;;  %v3196_v14 = vpop.f32.mrb[51].mxu0  ;;  %v5050_v11 = vpop.f32.mrb[91].mxu1 }
 0x789   : > { %v4429_v29 = vmul.f32 -1.442695, %v3194_v28 }
 0x78a   : > { %5634 = vpow2.f32 %v4428_v49 }
 0x78b   : > { %5636 = vpow2.f32 %v4429_v29 }
 0x794   : > { %v5635_v30 = vpop.eup %5634 }
 0x795   : > { %v3242_v31 = vadd.f32 1.0, %v5635_v30  ;;  %v5637_v32 = vpop.eup %5636 }
 0x796   : > { %v3249_v38 = vadd.f32 1.0, %v5637_v32 }
 0x797   : > { %5638 = vrcp.f32 %v3242_v31 }
 0x7a1   : > { %v5639_v34 = vpop.eup %5638 }
 0x7a2   : > { %v3253_v26 = vmul.f32 %v5639_v34, %v3252_v33  ;;  %v7763_v33 = vld [vmem:[#allocation10 + $0x68] ss:$12 sps:$4 sm:$0xff]  }
 0x7a3   : > { %v7766_v34 = vld [vmem:[#allocation10 + $0x7c] ss:$12 sps:$4 sm:$0xff]  }
 0x7a4   : > { %v3254_v36 = vadd.f32 %v3253_v26, %v3233_v35  ;;  %v7770_v35 = vld [vmem:[#allocation10 + $0x78] ss:$12 sps:$4 sm:$0xff]   ;;  %v7773_v26 = vld [vmem:[#allocation10 + $0x80] ss:$12 sps:$4 sm:$0xff]  }
 0x7a5   : > { %v3294_v24 = vpop.f32.mrb[20].mxu0  ;;  %v3335_v2 = vpop.f32.mrb[92].mxu1 }
 0x7a6   : > { %5640 = vtanh.f32 %v3254_v36  ;;  %v5241_v16 = vadd.f32 %v3294_v24, %v6831_v13  ;;  %v3296_v39 = vpop.f32.mrb[21].mxu0  ;;  %v5069_v60 = vpop.f32.mrb[93].mxu1  ;;  %v3443_v15 = vadd.f32 %v7365_v55, %v3335_v2  ;;  %v7776_v36 = vld [vmem:[#allocation10 + $0x94] ss:$12 sps:$4 sm:$0xff]   ;;  %v7783_v24 = vld [vmem:[#allocation10 + $0x98] ss:$12 sps:$4 sm:$0xff]  }
 0x7a7   : > { %v3298_v37 = vpop.f32.mrb[22].mxu0  ;;  %v3338_v21 = vpop.f32.mrb[94].mxu1  ;;  %5642 = vrcp.f32 %v3249_v38  ;;  %v5242_v40 = vadd.f32 %v3296_v39, %v6837_v22  ;;  %v7780_v38 = vld [vmem:[#allocation10 + $0x90] ss:$12 sps:$4 sm:$0xff]   ;;  %v7786_v2 = vld [vmem:[#allocation10 + $0xac] ss:$12 sps:$4 sm:$0xff]  }
 0x7a8   : > { %v4430_v10 = vmul.f32 -1.442695, %v5241_v16  ;;  %v3299_v62 = vpop.f32.mrb[23].mxu0  ;;  %v5070_v63 = vpop.f32.mrb[95].mxu1  ;;  %v7790_v16 = vld [vmem:[#allocation10 + $0xa8] ss:$12 sps:$4 sm:$0xff]  }
 0x7a9   : > { %v4431_v4 = vmul.f32 -1.442695, %v5242_v40  ;;  %v7793_v39 = vld [vmem:[#allocation10 + $0xb0] ss:$12 sps:$4 sm:$0xff]   ;;  %v7802_v37 = vld [vmem:[#allocation13] ss:$12 sps:$4 sm:$0xff]  }
 0x7aa   : > { %5644 = vpow2.f32 %v4430_v10  ;;  %v7796_v60 = vld [vmem:[#allocation13 + $0x4] ss:$12 sps:$4 sm:$0xff]   ;;  %v7805_v21 = vld [vmem:[#allocation13 + $0x8] ss:$12 sps:$4 sm:$0xff]   ;;  %v7818_v63 = vld [vmem:[#allocation13 + $0x20] ss:$12 sps:$4 sm:$0xff]  }
 0x7ab   : > { %5646 = vpow2.f32 %v4431_v4  ;;  %v7808_v10 = vld [vmem:[#allocation13 + $0x1c] ss:$12 sps:$4 sm:$0xff]   ;;  %v7815_v62 = vld [vmem:[#allocation13 + $0x18] ss:$12 sps:$4 sm:$0xff]   ;;  %v7821_v40 = vld [vmem:[#allocation13 + $0x34] ss:$12 sps:$4 sm:$0xff]  }
 0x7ac   : > { %v7835_v4 = vld [vmem:[#allocation13 + $0x48] ss:$12 sps:$4 sm:$0xff]  }
 0x7b0   : > { %v5641_v8 = vpop.eup %5640 }
 0x7b1   : > { %v3256_v23 = vsub.f32 %v7527_v50, %v5641_v8  ;;  %v5643_v25 = vpop.eup %5642 }
 0x7b3   : > { %v3257_v49 = vmul.f32 %v5643_v25, %v3256_v23  ;;  %v7828_v23 = vld [vmem:[#allocation13 + $0x38] ss:$12 sps:$4 sm:$0xff]  }
 0x7b4   : > { %v5645_v14 = vpop.eup %5644  ;;  %v7831_v25 = vld [vmem:[#allocation13 + $0x4c] ss:$12 sps:$4 sm:$0xff]  }
 0x7b5   : > { %v3433_v11 = vadd.f32 1.0, %v5645_v14  ;;  %v3258_v28 = vadd.f32 %v5641_v8, %v3257_v49  ;;  %v7825_v8 = vld [vmem:[#allocation13 + $0x30] ss:$12 sps:$4 sm:$0xff]  }
 0x7b6   : > { %v7838_v49 = vld [vmem:[#allocation13 + $0x50] ss:$12 sps:$4 sm:$0xff]  }
 0x7b7   : > { %5648 = vrcp.f32 %v3433_v11  ;;  %v7659_v29 = vsel %vm3154_vm14, %v3258_v28, %v7527_v50  ;;  %v5647_v50 = vpop.eup %5646  ;;  %8587 = vst [vmem:[#allocation50_spill] sm:$0xff] %v7838_v49  ;;  %v7841_v14 = vld [vmem:[#allocation13 + $0x64] ss:$12 sps:$4 sm:$0xff]   ;;  %v7845_v11 = vld [vmem:[#allocation13 + $0x60] ss:$12 sps:$4 sm:$0xff]  }
 0x7b8   : > { %v3341_v30 = vpack.c.bf16 %v7659_v29, %v7659_v29  ;;  %v3440_v32 = vadd.f32 1.0, %v5647_v50  ;;  %8588 = vst [vmem:[#allocation51_spill] sm:$0xff] %v7841_v14  ;;  %8589 = vst [vmem:[#allocation54_spill] sm:$0xff] %v7845_v11  ;;  %v7848_v28 = vld [vmem:[#allocation13 + $0x68] ss:$12 sps:$4 sm:$0xff]  }
 0x7b9   : > { %8590 = vst [vmem:[#allocation59_spill] sm:$0xff] %v7848_v28  ;;  %v7855_v50 = vld [vmem:[#allocation13 + $0x78] ss:$12 sps:$4 sm:$0xff]  }
 0x7ba   : > { %3375 = vmatmul.mubr.bf16.vlgmr.msra.gmra.mrb[52].mxu0 %v3341_v30  ;;  %5088 = vmatmul.mubr.bf16.vlgmr.msra.gmra.mrb[96].mxu1 %v3341_v30  ;;  %v7851_v30 = vld [vmem:[#allocation13 + $0x7c] ss:$12 sps:$4 sm:$0xff]   ;;  %8592 = vst [vmem:[#allocation65_spill] sm:$0xff] %v7855_v50 }
 0x7bb   : > { %3458 = vmatpush1.bf16.msra.mxu0 %v7343_v20  ;;  %5092 = vmatpush3.bf16.msra.mxu1 %v7346_v12  ;;  %8591 = vst [vmem:[#allocation60_spill] sm:$0xff] %v7851_v30 }
 0x7bc   : > { %3459 = vmatprep.subr.bf16.mxu0 %v7349_v6  ;;  %5093 = vmatprep.subr.bf16.mxu1 %v8413_v3  ;;  %v8586_v6 = vld [vmem:[#allocation61_spill] sm:$0xff] }
 0x7bd   : > { %3489 = vmatprep.mubr.bf16.mxu0 %v8424_v18  ;;  %5107 = vmatprep.mubr.msk.bf16.mxu1 %vm6096_vm0, %v8413_v3 }
 0x7bf   : > { %3460 = vmatpush1.bf16.msra.mxu0 %v7356_v44  ;;  %5094 = vmatpush3.bf16.msra.mxu1 %v7359_v57 }
 0x7c0   : > { %3461 = vmatprep.subr.bf16.mxu0 %v7368_v47  ;;  %5095 = vmatprep.subr.bf16.mxu1 %v8413_v3 }
 0x7c1   : > { %v5649_v20 = vpop.eup %5648 }
 0x7c2   : > { %v3444_v12 = vmul.f32 %v5649_v20, %v3443_v15  ;;  %v7858_v15 = vld [vmem:[#allocation13 + $0x80] ss:$12 sps:$4 sm:$0xff]  }
 0x7c3   : > { %3462 = vmatpush1.bf16.msra.mxu0 %v7372_v51  ;;  %5096 = vmatpush3.bf16.msra.mxu1 %v7375_v58  ;;  %v7697_v51 = vpop.permute.xlu1 %3452  ;;  %8593 = vst [vmem:[#allocation58_spill] sm:$0xff] %v7858_v15  ;;  %v7861_v20 = vld [vmem:[#allocation13 + $0x94] ss:$12 sps:$4 sm:$0xff]  }
 0x7c4   : > { %v3445_v31 = vadd.f32 %v3444_v12, %v8586_v6  ;;  %3463 = vmatprep.subr.bf16.mxu0 %v7379_v54  ;;  %5097 = vmatprep.subr.bf16.mxu1 %v8413_v3  ;;  %vm3454_vm15 = vcmp.eq.s32.totalorder %v7697_v51, 1  ;;  %8594 = vst [vmem:[#allocation43_spill] sm:$0xff] %v7861_v20  ;;  %v7865_v12 = vld [vmem:[#allocation13 + $0x90] ss:$12 sps:$4 sm:$0xff]   ;;  %v7868_v6 = vld [vmem:[#allocation13 + $0x98] ss:$12 sps:$4 sm:$0xff]  }
 0x7c5   : > { %8595 = vst [vmem:[#allocation44_spill] sm:$0xff] %v7865_v12  ;;  %8596 = vst [vmem:[#allocation45_spill] sm:$0xff] %v7868_v6  ;;  %v7915_v51 = vld [vmem:[#allocation11 + $0x20] ss:$12 sps:$4 sm:$0xff]  }
 0x7c6   : > { %5650 = vtanh.f32 %v3445_v31  ;;  %v7871_v31 = vld [vmem:[#allocation13 + $0xac] ss:$12 sps:$4 sm:$0xff]  }
 0x7c7   : > { %3464 = vmatpush1.bf16.msra.mxu0 %v7383_v52  ;;  %5098 = vmatpush3.bf16.msra.mxu1 %v7386_v53  ;;  %5652 = vrcp.f32 %v3440_v32  ;;  %v7711_v53 = vld [vmem:[#allocation10 + $0x4] ss:$12 sps:$4 sm:$0xff]   ;;  %8597 = vst [vmem:[#allocation46_spill] sm:$0xff] %v7871_v31  ;;  %v7875_v32 = vld [vmem:[#allocation13 + $0xa8] ss:$12 sps:$4 sm:$0xff]  }
 0x7c8   : > { %3465 = vmatprep.subr.bf16.mxu0 %v8547_v19  ;;  %5099 = vmatprep.subr.bf16.mxu1 %v8413_v3  ;;  %v7730_v19 = vld [vmem:[#allocation10 + $0x18] ss:$12 sps:$4 sm:$0xff]   ;;  %8598 = vst [vmem:[#allocation47_spill] sm:$0xff] %v7875_v32 }
 0x7cb   : > { %3466 = vmatpush1.bf16.msra.mxu0 %v8548_v5  ;;  %5100 = vmatpush3.bf16.msra.mxu1 %v8549_v7  ;;  %v7733_v5 = vld [vmem:[#allocation10 + $0x20] ss:$12 sps:$4 sm:$0xff]  }
 0x7cc   : > { %3467 = vmatprep.subr.bf16.mxu0 %v8550_v17  ;;  %5101 = vmatprep.subr.bf16.mxu1 %v8413_v3  ;;  %v7736_v7 = vld [vmem:[#allocation10 + $0x34] ss:$12 sps:$4 sm:$0xff]   ;;  %v7740_v17 = vld [vmem:[#allocation10 + $0x30] ss:$12 sps:$4 sm:$0xff]  }
 0x7cf   : > { %3468 = vmatpush1.bf16.msra.mxu0 %v8551_v61  ;;  %5102 = vmatpush3.bf16.msra.mxu1 %v8552_v42  ;;  %v7743_v61 = vld [vmem:[#allocation10 + $0x38] ss:$12 sps:$4 sm:$0xff]  }
 0x7d0   : > { %v5651_v44 = vpop.eup %5650  ;;  %3469 = vmatprep.subr.bf16.mxu0 %v8553_v41  ;;  %5103 = vmatprep.subr.bf16.mxu1 %v8413_v3  ;;  %v7746_v42 = vld [vmem:[#allocation10 + $0x4c] ss:$12 sps:$4 sm:$0xff]   ;;  %v7750_v41 = vld [vmem:[#allocation10 + $0x48] ss:$12 sps:$4 sm:$0xff]  }
 0x7d1   : > { %v3447_v57 = vsub.f32 %v7573_v59, %v5651_v44  ;;  %v5653_v55 = vpop.eup %5652 }
 0x7d3   : > { %v3448_v47 = vmul.f32 %v5653_v55, %v3447_v57  ;;  %3470 = vmatpush1.bf16.msra.mxu0 %v7414_v56  ;;  %5104 = vmatpush3.bf16.msra.mxu1 %v8554_v43  ;;  %v7717_v56 = vld [vmem:[#allocation10] ss:$12 sps:$4 sm:$0xff]   ;;  %v7753_v43 = vld [vmem:[#allocation10 + $0x50] ss:$12 sps:$4 sm:$0xff]  }
 0x7d4   : > { %3471 = vmatprep.subr.bf16.mxu0 %v8555_v45  ;;  %5105 = vmatprep.subr.bf16.mxu1 %v8413_v3  ;;  %v7756_v45 = vld [vmem:[#allocation10 + $0x64] ss:$12 sps:$4 sm:$0xff]  }
 0x7d5   : > { %v3449_v58 = vadd.f32 %v5651_v44, %v3448_v47  ;;  %v7878_v44 = vld [vmem:[#allocation13 + $0xb0] ss:$12 sps:$4 sm:$0xff]  }
 0x7d6   : > { %8599 = vst [vmem:[#allocation48_spill] sm:$0xff] %v7878_v44  ;;  %v7881_v57 = vld [vmem:[#allocation11 + $0x4] ss:$12 sps:$4 sm:$0xff]  }
 0x7d7   : > { %3472 = vmatpush1.bf16.msra.mxu0 %v7427_v48  ;;  %5106 = vmatpush3.bf16.msra.mxu1 %v7430_v1  ;;  %v7705_v54 = vsel %vm3454_vm15, %v3449_v58, %v7573_v59  ;;  %v7720_v48 = vld [vmem:[#allocation10 + $0x8] ss:$12 sps:$4 sm:$0xff]   ;;  %v7760_v59 = vld [vmem:[#allocation10 + $0x60] ss:$12 sps:$4 sm:$0xff]   ;;  %8600 = vst [vmem:[#allocation49_spill] sm:$0xff] %v7881_v57 }
 0x7d8   : > { %v7709_v52 = vpack.c.bf16 %v7705_v54, %v7705_v54  ;;  %3560 = vmatprep.subr.bf16.mxu0 %v7711_v53  ;;  %5111 = vmatprep.subr.bf16.mxu1 %v8413_v3  ;;  %v7723_v1 = vld [vmem:[#allocation10 + $0x1c] ss:$12 sps:$4 sm:$0xff]  }
 0x7da   : > { %3490 = vmatmul.mubr.bf16.vlgmr.msra.gmra.mrb[52].mxu0 %v7709_v52  ;;  %5108 = vmatmul.mubr.bf16.vlgmr.msra.gmra.mrb[100].mxu1 %v7709_v52 }
 0x7db   : > { %3561 = vmatpush1.bf16.msra.mxu0 %v7717_v56  ;;  %5112 = vmatpush3.bf16.msra.mxu1 %v7720_v48 }
 0x7dc   : > { %3562 = vmatprep.subr.bf16.mxu0 %v7723_v1  ;;  %5113 = vmatprep.subr.bf16.mxu1 %v8413_v3 }
 0x7dd   : > { %3592 = vmatprep.mubr.bf16.mxu0 %v8424_v18  ;;  %5127 = vmatprep.mubr.msk.bf16.mxu1 %vm6096_vm0, %v8413_v3 }
 0x7df   : > { %3563 = vmatpush1.bf16.msra.mxu0 %v7730_v19  ;;  %5114 = vmatpush3.bf16.msra.mxu1 %v7733_v5 }
 0x7e0   : > { %3564 = vmatprep.subr.bf16.mxu0 %v7736_v7  ;;  %5115 = vmatprep.subr.bf16.mxu1 %v8413_v3 }
 0x7e3   : > { %3565 = vmatpush1.bf16.msra.mxu0 %v7740_v17  ;;  %5116 = vmatpush3.bf16.msra.mxu1 %v7743_v61 }
 0x7e4   : > { %3566 = vmatprep.subr.bf16.mxu0 %v7746_v42  ;;  %5117 = vmatprep.subr.bf16.mxu1 %v8413_v3 }
 0x7e7   : > { %3567 = vmatpush1.bf16.msra.mxu0 %v7750_v41  ;;  %5118 = vmatpush3.bf16.msra.mxu1 %v7753_v43 }
 0x7e8   : > { %3568 = vmatprep.subr.bf16.mxu0 %v7756_v45  ;;  %5119 = vmatprep.subr.bf16.mxu1 %v8413_v3 }
 0x7eb   : > { %3569 = vmatpush1.bf16.msra.mxu0 %v7760_v59  ;;  %5120 = vmatpush3.bf16.msra.mxu1 %v7763_v33 }
 0x7ec   : > { %3570 = vmatprep.subr.bf16.mxu0 %v7766_v34  ;;  %5121 = vmatprep.subr.bf16.mxu1 %v8413_v3 }
 0x7ef   : > { %3571 = vmatpush1.bf16.msra.mxu0 %v7770_v35  ;;  %5122 = vmatpush3.bf16.msra.mxu1 %v7773_v26 }
 0x7f0   : > { %3572 = vmatprep.subr.bf16.mxu0 %v7776_v36  ;;  %5123 = vmatprep.subr.bf16.mxu1 %v8413_v3 }
 0x7f3   : > { %3573 = vmatpush1.bf16.msra.mxu0 %v7780_v38  ;;  %5124 = vmatpush3.bf16.msra.mxu1 %v7783_v24 }
 0x7f4   : > { %3574 = vmatprep.subr.bf16.mxu0 %v7786_v2  ;;  %5125 = vmatprep.subr.bf16.mxu1 %v8413_v3 }
 0x7f7   : > { %3575 = vmatpush1.bf16.msra.mxu0 %v7790_v16  ;;  %5126 = vmatpush3.bf16.msra.mxu1 %v7793_v39 }
 0x7f8   : > { %3642 = vmatprep.subr.bf16.mxu0 %v7796_v60  ;;  %5131 = vmatprep.subr.bf16.mxu1 %v8413_v3 }
 0x7fa   : > { %3593 = vmatmul.mubr.bf16.vlgmr.msra.gmra.mrb[24].mxu0 %v7709_v52  ;;  %5128 = vmatmul.mubr.bf16.vlgmr.msra.gmra.mrb[104].mxu1 %v7709_v52 }
 0x7fb   : > { %3643 = vmatpush1.bf16.msra.mxu0 %v7802_v37  ;;  %5132 = vmatpush3.bf16.msra.mxu1 %v7805_v21 }
 0x7fc   : > { %3644 = vmatprep.subr.bf16.mxu0 %v7808_v10  ;;  %5133 = vmatprep.subr.bf16.mxu1 %v8413_v3 }
 0x7fd   : > { %3674 = vmatprep.mubr.bf16.mxu0 %v8424_v18  ;;  %5147 = vmatprep.mubr.msk.bf16.mxu1 %vm6096_vm0, %v8413_v3 }
 0x7ff   : > { %3645 = vmatpush1.bf16.msra.mxu0 %v7815_v62  ;;  %5134 = vmatpush3.bf16.msra.mxu1 %v7818_v63 }
 0x800   : > { %3646 = vmatprep.subr.bf16.mxu0 %v7821_v40  ;;  %5135 = vmatprep.subr.bf16.mxu1 %v8413_v3 }
 0x803   : > { %3647 = vmatpush1.bf16.msra.mxu0 %v7825_v8  ;;  %5136 = vmatpush3.bf16.msra.mxu1 %v7828_v23 }
 0x804   : > { %3648 = vmatprep.subr.bf16.mxu0 %v7831_v25  ;;  %5137 = vmatprep.subr.bf16.mxu1 %v8413_v3 }
 0x807   : > { %3649 = vmatpush1.bf16.msra.mxu0 %v7835_v4  ;;  %5138 = vmatpush3.bf16.msra.mxu1 %v7838_v49 }
 0x808   : > { %3650 = vmatprep.subr.bf16.mxu0 %v7841_v14  ;;  %5139 = vmatprep.subr.bf16.mxu1 %v8413_v3 }
 0x80b   : > { %3651 = vmatpush1.bf16.msra.mxu0 %v7845_v11  ;;  %5140 = vmatpush3.bf16.msra.mxu1 %v7848_v28 }
 0x80c   : > { %3652 = vmatprep.subr.bf16.mxu0 %v7851_v30  ;;  %5141 = vmatprep.subr.bf16.mxu1 %v8413_v3 }
 0x80f   : > { %3653 = vmatpush1.bf16.msra.mxu0 %v7855_v50  ;;  %5142 = vmatpush3.bf16.msra.mxu1 %v7858_v15 }
 0x810   : > { %3654 = vmatprep.subr.bf16.mxu0 %v7861_v20  ;;  %5143 = vmatprep.subr.bf16.mxu1 %v8413_v3 }
 0x813   : > { %3655 = vmatpush1.bf16.msra.mxu0 %v7865_v12  ;;  %5144 = vmatpush3.bf16.msra.mxu1 %v7868_v6 }
 0x814   : > { %3656 = vmatprep.subr.bf16.mxu0 %v7871_v31  ;;  %5145 = vmatprep.subr.bf16.mxu1 %v8413_v3 }
 0x817   : > { %3657 = vmatpush1.bf16.msra.mxu0 %v7875_v32  ;;  %5146 = vmatpush3.bf16.msra.mxu1 %v7878_v44 }
 0x818   : > { %3757 = vmatprep.subr.bf16.mxu0 %v7881_v57  ;;  %5151 = vmatprep.subr.bf16.mxu1 %v8413_v3 }
 0x88d   : > { %v3417_v55 = vpop.f32.mrb[96].mxu1 }
 0x88e   : > { %v5089_v47 = vpop.f32.mrb[97].mxu1 }
 0x88f   : > { %v3420_v58 = vpop.f32.mrb[98].mxu1 }
 0x890   : > { %v5090_v52 = vpop.f32.mrb[99].mxu1  ;;  %v3552_v58 = vadd.f32 %v7517_v46, %v3417_v55 }
 0x8ad   : > { %v3491_v31 = vpop.f32.mrb[52].mxu0  ;;  %v3532_v6 = vpop.f32.mrb[100].mxu1 }
 0x8ae   : > { %v3492_v12 = vadd.f32 %v3491_v31, %v8584_v9  ;;  %v3493_v20 = vpop.f32.mrb[53].mxu0  ;;  %v5109_v32 = vpop.f32.mrb[101].mxu1  ;;  %v3533_v31 = vadd.f32 %v3532_v6, %v8481_v0 }
 0x8af   : > { %v3495_v15 = vpop.f32.mrb[54].mxu0  ;;  %v3535_v50 = vpop.f32.mrb[102].mxu1  ;;  %v3494_v57 = vadd.f32 %v3493_v20, %v8585_v27 }
 0x8b0   : > { %v4432_v30 = vmul.f32 -1.442695, %v3492_v12  ;;  %v3496_v44 = vpop.f32.mrb[55].mxu0  ;;  %v5110_v28 = vpop.f32.mrb[103].mxu1 }
 0x8b1   : > { %v4433_v11 = vmul.f32 -1.442695, %v3494_v57 }
 0x8b2   : > { %5654 = vpow2.f32 %v4432_v30 }
 0x8b3   : > { %5656 = vpow2.f32 %v4433_v11 }
 0x8bc   : > { %v5655_v14 = vpop.eup %5654 }
 0x8bd   : > { %v3542_v49 = vadd.f32 1.0, %v5655_v14  ;;  %v5657_v47 = vpop.eup %5656 }
 0x8be   : > { %v3549_v50 = vadd.f32 1.0, %v5657_v47 }
 0x8bf   : > { %5658 = vrcp.f32 %v3542_v49 }
 0x8c9   : > { %v5659_v52 = vpop.eup %5658 }
 0x8ca   : > { %v3553_v32 = vmul.f32 %v5659_v52, %v3552_v58 }
 0x8cc   : > { %v3554_v15 = vadd.f32 %v3553_v32, %v3533_v31 }
 0x8cd   : > { %v3594_v12 = vpop.f32.mrb[24].mxu0  ;;  %v3635_v44 = vpop.f32.mrb[104].mxu1 }
 0x8ce   : > { %5660 = vtanh.f32 %v3554_v15  ;;  %v5243_v28 = vadd.f32 %v3594_v12, %v6831_v13  ;;  %v3596_v30 = vpop.f32.mrb[25].mxu0  ;;  %v5129_v20 = vpop.f32.mrb[105].mxu1  ;;  %v7899_v12 = vld [vmem:[#allocation11] ss:$12 sps:$4 sm:$0xff]  }
 0x8cf   : > { %v3598_v57 = vpop.f32.mrb[26].mxu0  ;;  %v3638_v14 = vpop.f32.mrb[106].mxu1  ;;  %5662 = vrcp.f32 %v3549_v50  ;;  %v5244_v46 = vadd.f32 %v3596_v30, %v6837_v22  ;;  %v7905_v30 = vld [vmem:[#allocation11 + $0x1c] ss:$12 sps:$4 sm:$0xff]  }
 0x8d0   : > { %v4434_v49 = vmul.f32 -1.442695, %v5243_v28  ;;  %v3599_v11 = vpop.f32.mrb[27].mxu0  ;;  %v5130_v27 = vpop.f32.mrb[107].mxu1  ;;  %v7902_v28 = vld [vmem:[#allocation11 + $0x8] ss:$12 sps:$4 sm:$0xff]  }
 0x8d1   : > { %v4435_v58 = vmul.f32 -1.442695, %v5244_v46  ;;  %v7921_v57 = vld [vmem:[%s8423_s11] ss:$0 sm:$0xff] }
 0x8d2   : > { %5664 = vpow2.f32 %v4434_v49  ;;  %v3743_v14 = vadd.f32 %v7921_v57, %v3635_v44  ;;  %v7924_v49 = vld [vmem:[#allocation11 + $0x34] ss:$12 sps:$4 sm:$0xff]   ;;  %v7935_v44 = vld [vmem:[#allocation11 + $0x4c] ss:$12 sps:$4 sm:$0xff]  }
 0x8d3   : > { %5666 = vpow2.f32 %v4435_v58 }
 0x8d8   : > { %v5661_v6 = vpop.eup %5660 }
 0x8d9   : > { %v3556_v55 = vsub.f32 %v7659_v29, %v5661_v6  ;;  %v5663_v47 = vpop.eup %5662 }
 0x8db   : > { %v3557_v52 = vmul.f32 %v5663_v47, %v3556_v55  ;;  %v7931_v55 = vld [vmem:[#allocation11 + $0x38] ss:$12 sps:$4 sm:$0xff]  }
 0x8dc   : > { %v5665_v31 = vpop.eup %5664  ;;  %v8601_v47 = vld [vmem:[#allocation62_spill] sm:$0xff] }
 0x8dd   : > { %v3733_v32 = vadd.f32 1.0, %v5665_v31  ;;  %v3558_v15 = vadd.f32 %v5661_v6, %v3557_v52  ;;  %v5667_v20 = vpop.eup %5666  ;;  %v7928_v6 = vld [vmem:[#allocation11 + $0x30] ss:$12 sps:$4 sm:$0xff]   ;;  %v7939_v31 = vld [vmem:[#allocation11 + $0x48] ss:$12 sps:$4 sm:$0xff]  }
 0x8de   : > { %v3740_v52 = vadd.f32 1.0, %v5667_v20  ;;  %v7952_v20 = vld [vmem:[#allocation11 + $0x68] ss:$12 sps:$4 sm:$0xff]  }
 0x8df   : > { %5668 = vrcp.f32 %v3733_v32  ;;  %v7895_v50 = vsel %vm3454_vm15, %v3558_v15, %v7659_v29  ;;  %v7912_v29 = vld [vmem:[#allocation11 + $0x18] ss:$12 sps:$4 sm:$0xff]   ;;  %v7942_v32 = vld [vmem:[#allocation11 + $0x50] ss:$12 sps:$4 sm:$0xff]   ;;  %8605 = vst [vmem:[#allocation36_spill] sm:$0xff] %v7952_v20 }
 0x8e0   : > { %v3641_v27 = vpack.c.bf16 %v7895_v50, %v7895_v50  ;;  %8602 = vst [vmem:[#allocation33_spill] sm:$0xff] %v7942_v32  ;;  %v7945_v15 = vld [vmem:[#allocation11 + $0x64] ss:$12 sps:$4 sm:$0xff]  }
 0x8e1   : > { %8603 = vst [vmem:[#allocation34_spill] sm:$0xff] %v7945_v15 }
 0x8e2   : > { %3675 = vmatmul.mubr.bf16.vlgmr.msra.gmra.mrb[56].mxu0 %v3641_v27  ;;  %5148 = vmatmul.mubr.bf16.vlgmr.msra.gmra.mrb[108].mxu1 %v3641_v27  ;;  %v7949_v27 = vld [vmem:[#allocation11 + $0x60] ss:$12 sps:$4 sm:$0xff]  }
 0x8e3   : > { %3758 = vmatpush1.bf16.msra.mxu0 %v7899_v12  ;;  %5152 = vmatpush3.bf16.msra.mxu1 %v7902_v28  ;;  %8604 = vst [vmem:[#allocation35_spill] sm:$0xff] %v7949_v27 }
 0x8e4   : > { %3759 = vmatprep.subr.bf16.mxu0 %v7905_v30  ;;  %5153 = vmatprep.subr.bf16.mxu1 %v8413_v3 }
 0x8e5   : > { %3789 = vmatprep.mubr.bf16.mxu0 %v8424_v18  ;;  %5167 = vmatprep.mubr.msk.bf16.mxu1 %vm6096_vm0, %v8413_v3 }
 0x8e7   : > { %3760 = vmatpush1.bf16.msra.mxu0 %v7912_v29  ;;  %5154 = vmatpush3.bf16.msra.mxu1 %v7915_v51 }
 0x8e8   : > { %3761 = vmatprep.subr.bf16.mxu0 %v7924_v49  ;;  %5155 = vmatprep.subr.bf16.mxu1 %v8413_v3 }
 0x8e9   : > { %v5669_v11 = vpop.eup %5668 }
 0x8ea   : > { %v3744_v46 = vmul.f32 %v5669_v11, %v3743_v14  ;;  %v7955_v14 = vld [vmem:[#allocation11 + $0x7c] ss:$12 sps:$4 sm:$0xff]   ;;  %v7959_v11 = vld [vmem:[#allocation11 + $0x78] ss:$12 sps:$4 sm:$0xff]  }
 0x8eb   : > { %3762 = vmatpush1.bf16.msra.mxu0 %v7928_v6  ;;  %5156 = vmatpush3.bf16.msra.mxu1 %v7931_v55  ;;  %8606 = vst [vmem:[#allocation37_spill] sm:$0xff] %v7955_v14  ;;  %8607 = vst [vmem:[#allocation38_spill] sm:$0xff] %v7959_v11 }
 0x8ec   : > { %v3745_v58 = vadd.f32 %v3744_v46, %v8601_v47  ;;  %3763 = vmatprep.subr.bf16.mxu0 %v7935_v44  ;;  %5157 = vmatprep.subr.bf16.mxu1 %v8413_v3  ;;  %v7962_v46 = vld [vmem:[#allocation11 + $0x80] ss:$12 sps:$4 sm:$0xff]  }
 0x8ed   : > { %8608 = vst [vmem:[#allocation39_spill] sm:$0xff] %v7962_v46 }
 0x8ee   : > { %5670 = vtanh.f32 %v3745_v58  ;;  %v7965_v58 = vld [vmem:[#allocation11 + $0x94] ss:$12 sps:$4 sm:$0xff]  }
 0x8ef   : > { %3764 = vmatpush1.bf16.msra.mxu0 %v7939_v31  ;;  %5158 = vmatpush3.bf16.msra.mxu1 %v7942_v32  ;;  %5672 = vrcp.f32 %v3740_v52  ;;  %8609 = vst [vmem:[#allocation40_spill] sm:$0xff] %v7965_v58  ;;  %v7983_v32 = vld [vmem:[#allocation11 + $0xa8] ss:$12 sps:$4 sm:$0xff]  }
 0x8f0   : > { %3765 = vmatprep.subr.bf16.mxu0 %v7945_v15  ;;  %5159 = vmatprep.subr.bf16.mxu1 %v8413_v3  ;;  %v7972_v15 = vld [vmem:[#allocation11 + $0x90] ss:$12 sps:$4 sm:$0xff]  }
 0x8f3   : > { %3766 = vmatpush1.bf16.msra.mxu0 %v7949_v27  ;;  %5160 = vmatpush3.bf16.msra.mxu1 %v7952_v20  ;;  %v7970_v20 = vpop.permute.xlu0 %3752 }
 0x8f4   : > { %3767 = vmatprep.subr.bf16.mxu0 %v7955_v14  ;;  %5161 = vmatprep.subr.bf16.mxu1 %v8413_v3  ;;  %vm3754_vm1 = vcmp.eq.s32.totalorder %v7970_v20, 1 }
 0x8f7   : > { %3768 = vmatpush1.bf16.msra.mxu0 %v7959_v11  ;;  %5162 = vmatpush3.bf16.msra.mxu1 %v7962_v46  ;;  %v7975_v11 = vld [vmem:[#allocation11 + $0x98] ss:$12 sps:$4 sm:$0xff]  }
 0x8f8   : > { %v5671_v47 = vpop.eup %5670  ;;  %3769 = vmatprep.subr.bf16.mxu0 %v7965_v58  ;;  %5163 = vmatprep.subr.bf16.mxu1 %v8413_v3  ;;  %v7978_v46 = vld [vmem:[#allocation11 + $0xac] ss:$12 sps:$4 sm:$0xff]  }
 0x8f9   : > { %v3747_v52 = vsub.f32 %v7705_v54, %v5671_v47  ;;  %v5673_v14 = vpop.eup %5672 }
 0x8fb   : > { %v3748_v27 = vmul.f32 %v5673_v14, %v3747_v52  ;;  %3770 = vmatpush1.bf16.msra.mxu0 %v7972_v15  ;;  %5164 = vmatpush3.bf16.msra.mxu1 %v7975_v11  ;;  %v7986_v14 = vld [vmem:[#allocation11 + $0xb0] ss:$12 sps:$4 sm:$0xff]  }
 0x8fc   : > { %3771 = vmatprep.subr.bf16.mxu0 %v7978_v46  ;;  %5165 = vmatprep.subr.bf16.mxu1 %v8413_v3 }
 0x8fd   : > { %v3749_v58 = vadd.f32 %v5671_v47, %v3748_v27 }
 0x8ff   : > { %3772 = vmatpush1.bf16.msra.mxu0 %v7983_v32  ;;  %5166 = vmatpush3.bf16.msra.mxu1 %v7986_v14  ;;  %v7992_v52 = vsel %vm3754_vm1, %v3749_v58, %v7705_v54  ;;  %v8610_v54 = vld [vmem:[#allocation50_spill] sm:$0xff] }
 0x900   : > { %3860 = vmatprep.subr.bf16.mxu0 %v7711_v53  ;;  %5171 = vmatprep.subr.bf16.mxu1 %v8413_v3  ;;  %v3756_v27 = vpack.c.bf16 %v7992_v52, %v7992_v52  ;;  %v8611_v53 = vld [vmem:[#allocation51_spill] sm:$0xff] }
 0x902   : > { %3790 = vmatmul.mubr.bf16.vlgmr.msra.gmra.mrb[56].mxu0 %v3756_v27  ;;  %5168 = vmatmul.mubr.bf16.vlgmr.msra.gmra.mrb[112].mxu1 %v3756_v27 }
 0x903   : > { %3861 = vmatpush1.bf16.msra.mxu0 %v7717_v56  ;;  %5172 = vmatpush3.bf16.msra.mxu1 %v7720_v48  ;;  %v8612_v56 = vld [vmem:[#allocation54_spill] sm:$0xff]  ;;  %v8613_v48 = vld [vmem:[#allocation59_spill] sm:$0xff] }
 0x904   : > { %3862 = vmatprep.subr.bf16.mxu0 %v7723_v1  ;;  %5173 = vmatprep.subr.bf16.mxu1 %v8413_v3  ;;  %v8614_v1 = vld [vmem:[#allocation60_spill] sm:$0xff] }
 0x905   : > { %3892 = vmatprep.mubr.bf16.mxu0 %v8424_v18  ;;  %5187 = vmatprep.mubr.msk.bf16.mxu1 %vm6096_vm0, %v8413_v3 }
 0x907   : > { %3863 = vmatpush1.bf16.msra.mxu0 %v7730_v19  ;;  %5174 = vmatpush3.bf16.msra.mxu1 %v7733_v5  ;;  %v8615_v19 = vld [vmem:[#allocation65_spill] sm:$0xff]  ;;  %v8616_v5 = vld [vmem:[#allocation58_spill] sm:$0xff] }
 0x908   : > { %3864 = vmatprep.subr.bf16.mxu0 %v7736_v7  ;;  %5175 = vmatprep.subr.bf16.mxu1 %v8413_v3  ;;  %v8617_v7 = vld [vmem:[#allocation43_spill] sm:$0xff] }
 0x90b   : > { %3865 = vmatpush1.bf16.msra.mxu0 %v7740_v17  ;;  %5176 = vmatpush3.bf16.msra.mxu1 %v7743_v61  ;;  %v8618_v17 = vld [vmem:[#allocation44_spill] sm:$0xff]  ;;  %v8619_v61 = vld [vmem:[#allocation45_spill] sm:$0xff] }
 0x90c   : > { %3866 = vmatprep.subr.bf16.mxu0 %v7746_v42  ;;  %5177 = vmatprep.subr.bf16.mxu1 %v8413_v3  ;;  %v8620_v42 = vld [vmem:[#allocation46_spill] sm:$0xff] }
 0x90f   : > { %3867 = vmatpush1.bf16.msra.mxu0 %v7750_v41  ;;  %5178 = vmatpush3.bf16.msra.mxu1 %v7753_v43  ;;  %v8621_v41 = vld [vmem:[#allocation47_spill] sm:$0xff]  ;;  %v8622_v43 = vld [vmem:[#allocation48_spill] sm:$0xff] }
 0x910   : > { %3868 = vmatprep.subr.bf16.mxu0 %v7756_v45  ;;  %5179 = vmatprep.subr.bf16.mxu1 %v8413_v3  ;;  %v8623_v45 = vld [vmem:[#allocation49_spill] sm:$0xff] }
 0x913   : > { %3869 = vmatpush1.bf16.msra.mxu0 %v7760_v59  ;;  %5180 = vmatpush3.bf16.msra.mxu1 %v7763_v33 }
 0x914   : > { %3870 = vmatprep.subr.bf16.mxu0 %v7766_v34  ;;  %5181 = vmatprep.subr.bf16.mxu1 %v8413_v3 }
 0x917   : > { %3871 = vmatpush1.bf16.msra.mxu0 %v7770_v35  ;;  %5182 = vmatpush3.bf16.msra.mxu1 %v7773_v26 }
 0x918   : > { %3872 = vmatprep.subr.bf16.mxu0 %v7776_v36  ;;  %5183 = vmatprep.subr.bf16.mxu1 %v8413_v3 }
 0x91b   : > { %3873 = vmatpush1.bf16.msra.mxu0 %v7780_v38  ;;  %5184 = vmatpush3.bf16.msra.mxu1 %v7783_v24 }
 0x91c   : > { %3874 = vmatprep.subr.bf16.mxu0 %v7786_v2  ;;  %5185 = vmatprep.subr.bf16.mxu1 %v8413_v3 }
 0x91f   : > { %3875 = vmatpush1.bf16.msra.mxu0 %v7790_v16  ;;  %5186 = vmatpush3.bf16.msra.mxu1 %v7793_v39 }
 0x920   : > { %3942 = vmatprep.subr.bf16.mxu0 %v7796_v60  ;;  %5191 = vmatprep.subr.bf16.mxu1 %v8413_v3 }
 0x922   : > { %3893 = vmatmul.mubr.bf16.vlgmr.msra.gmra.mrb[28].mxu0 %v3756_v27  ;;  %5188 = vmatmul.mubr.bf16.vlgmr.msra.gmra.mrb[116].mxu1 %v3756_v27 }
 0x923   : > { %3943 = vmatpush1.bf16.msra.mxu0 %v7802_v37  ;;  %5192 = vmatpush3.bf16.msra.mxu1 %v7805_v21 }
 0x924   : > { %3944 = vmatprep.subr.bf16.mxu0 %v7808_v10  ;;  %5193 = vmatprep.subr.bf16.mxu1 %v8413_v3  ;;  %v8624_v10 = vld [vmem:[#allocation64_spill] sm:$0xff] }
 0x925   : > { %3974 = vmatprep.mubr.bf16.mxu0 %v8424_v18  ;;  %5207 = vmatprep.mubr.msk.bf16.mxu1 %vm6096_vm0, %v8413_v3 }
 0x927   : > { %3945 = vmatpush1.bf16.msra.mxu0 %v7815_v62  ;;  %5194 = vmatpush3.bf16.msra.mxu1 %v7818_v63 }
 0x928   : > { %3946 = vmatprep.subr.bf16.mxu0 %v7821_v40  ;;  %5195 = vmatprep.subr.bf16.mxu1 %v8413_v3 }
 0x92b   : > { %3947 = vmatpush1.bf16.msra.mxu0 %v7825_v8  ;;  %5196 = vmatpush3.bf16.msra.mxu1 %v7828_v23 }
 0x92c   : > { %3948 = vmatprep.subr.bf16.mxu0 %v7831_v25  ;;  %5197 = vmatprep.subr.bf16.mxu1 %v8413_v3  ;;  %v8073_v25 = vld [vmem:[%s8438_s22] ss:$0 sm:$0xff] }
 0x92f   : > { %3949 = vmatpush1.bf16.msra.mxu0 %v7835_v4  ;;  %5198 = vmatpush3.bf16.msra.mxu1 %v8610_v54 }
 0x930   : > { %3950 = vmatprep.subr.bf16.mxu0 %v8611_v53  ;;  %5199 = vmatprep.subr.bf16.mxu1 %v8413_v3 }
 0x933   : > { %3951 = vmatpush1.bf16.msra.mxu0 %v8612_v56  ;;  %5200 = vmatpush3.bf16.msra.mxu1 %v8613_v48 }
 0x934   : > { %3952 = vmatprep.subr.bf16.mxu0 %v8614_v1  ;;  %5201 = vmatprep.subr.bf16.mxu1 %v8413_v3 }
 0x937   : > { %3953 = vmatpush1.bf16.msra.mxu0 %v8615_v19  ;;  %5202 = vmatpush3.bf16.msra.mxu1 %v8616_v5 }
 0x938   : > { %3954 = vmatprep.subr.bf16.mxu0 %v8617_v7  ;;  %5203 = vmatprep.subr.bf16.mxu1 %v8413_v3 }
 0x93b   : > { %3955 = vmatpush1.bf16.msra.mxu0 %v8618_v17  ;;  %5204 = vmatpush3.bf16.msra.mxu1 %v8619_v61 }
 0x93c   : > { %3956 = vmatprep.subr.bf16.mxu0 %v8620_v42  ;;  %5205 = vmatprep.subr.bf16.mxu1 %v8413_v3 }
 0x93f   : > { %3957 = vmatpush1.bf16.msra.mxu0 %v8621_v41  ;;  %5206 = vmatpush3.bf16.msra.mxu1 %v8622_v43 }
 0x940   : > { %4057 = vmatprep.subr.bf16.mxu0 %v8623_v45  ;;  %5211 = vmatprep.subr.bf16.mxu1 %v8413_v3 }
 0x9b5   : > { %v3717_v59 = vpop.f32.mrb[108].mxu1 }
 0x9b6   : > { %v5149_v33 = vpop.f32.mrb[109].mxu1  ;;  %v3852_v4 = vadd.f32 %v8073_v25, %v3717_v59 }
 0x9b7   : > { %v3720_v34 = vpop.f32.mrb[110].mxu1 }
 0x9b8   : > { %v5150_v35 = vpop.f32.mrb[111].mxu1 }
 0x9d5   : > { %v3791_v26 = vpop.f32.mrb[56].mxu0  ;;  %v3832_v36 = vpop.f32.mrb[112].mxu1 }
 0x9d6   : > { %v3792_v38 = vadd.f32 %v3791_v26, %v8584_v9  ;;  %v3793_v24 = vpop.f32.mrb[57].mxu0  ;;  %v5169_v2 = vpop.f32.mrb[113].mxu1  ;;  %v3833_v58 = vadd.f32 %v3832_v36, %v8481_v0 }
 0x9d7   : > { %v3795_v16 = vpop.f32.mrb[58].mxu0  ;;  %v3835_v39 = vpop.f32.mrb[114].mxu1  ;;  %v3794_v62 = vadd.f32 %v3793_v24, %v8624_v10  ;;  %v8633_v2 = vld [vmem:[#allocation40_spill] sm:$0xff] }
 0x9d8   : > { %v4436_v60 = vmul.f32 -1.442695, %v3792_v38  ;;  %v3796_v37 = vpop.f32.mrb[59].mxu0  ;;  %v5170_v21 = vpop.f32.mrb[115].mxu1 }
 0x9d9   : > { %v4437_v63 = vmul.f32 -1.442695, %v3794_v62 }
 0x9da   : > { %5674 = vpow2.f32 %v4436_v60  ;;  %v4053_v60 = vpop.permute.xlu1 %4052 }
 0x9db   : > { %5676 = vpow2.f32 %v4437_v63 }
 0x9e4   : > { %v5675_v40 = vpop.eup %5674 }
 0x9e5   : > { %v3842_v8 = vadd.f32 1.0, %v5675_v40  ;;  %v5677_v23 = vpop.eup %5676 }
 0x9e6   : > { %v3849_v53 = vadd.f32 1.0, %v5677_v23 }
 0x9e7   : > { %5678 = vrcp.f32 %v3842_v8 }
 0x9f1   : > { %v5679_v47 = vpop.eup %5678 }
 0x9f2   : > { %v3853_v27 = vmul.f32 %v5679_v47, %v3852_v4 }
 0x9f4   : > { %v3854_v54 = vadd.f32 %v3853_v27, %v3833_v58 }
 0x9f5   : > { %v3894_v56 = vpop.f32.mrb[28].mxu0  ;;  %v3935_v48 = vpop.f32.mrb[116].mxu1 }
 0x9f6   : > { %5680 = vtanh.f32 %v3854_v54  ;;  %v5245_v1 = vadd.f32 %v3894_v56, %v6831_v13  ;;  %v3896_v19 = vpop.f32.mrb[29].mxu0  ;;  %v5189_v5 = vpop.f32.mrb[117].mxu1 }
 0x9f7   : > { %v3898_v7 = vpop.f32.mrb[30].mxu0  ;;  %v3938_v17 = vpop.f32.mrb[118].mxu1  ;;  %5682 = vrcp.f32 %v3849_v53  ;;  %v5246_v43 = vadd.f32 %v3896_v19, %v6837_v22 }
 0x9f8   : > { %v4438_v61 = vmul.f32 -1.442695, %v5245_v1  ;;  %v3899_v42 = vpop.f32.mrb[31].mxu0  ;;  %v5190_v41 = vpop.f32.mrb[119].mxu1 }
 0x9f9   : > { %v4439_v34 = vmul.f32 -1.442695, %v5246_v43 }
 0x9fa   : > { %5684 = vpow2.f32 %v4438_v61 }
 0x9fb   : > { %5686 = vpow2.f32 %v4439_v34 }
 0xa00   : > { %v5681_v45 = vpop.eup %5680 }
 0xa01   : > { %v3856_v59 = vsub.f32 %v7895_v50, %v5681_v45  ;;  %v5683_v33 = vpop.eup %5682 }
 0xa03   : > { %v3857_v35 = vmul.f32 %v5683_v33, %v3856_v59 }
 0xa04   : > { %v5685_v26 = vpop.eup %5684 }
 0xa05   : > { %v4033_v36 = vadd.f32 1.0, %v5685_v26  ;;  %v3858_v13 = vadd.f32 %v5681_v45, %v3857_v35  ;;  %v5687_v22 = vpop.eup %5686 }
 0xa06   : > { %v4040_v20 = vadd.f32 1.0, %v5687_v22 }
 0xa07   : > { %5688 = vrcp.f32 %v4033_v36  ;;  %v8083_v38 = vsel %vm3754_vm1, %v3858_v13, %v7895_v50  ;;  %v4043_v50 = vadd.f32 %v7921_v57, %v3935_v48  ;;  %v8628_v57 = vld [vmem:[#allocation35_spill] sm:$0xff] }
 0xa08   : > { %v3941_v24 = vpack.c.bf16 %v8083_v38, %v8083_v38 }
 0xa0a   : > { %3975 = vmatmul.mubr.bf16.vlgmr.msra.gmra.mrb[60].mxu0 %v3941_v24  ;;  %5208 = vmatmul.mubr.bf16.vlgmr.msra.gmra.mrb[120].mxu1 %v3941_v24 }
 0xa0b   : > { %4058 = vmatpush1.bf16.msra.mxu0 %v7899_v12  ;;  %5212 = vmatpush3.bf16.msra.mxu1 %v7902_v28 }
 0xa0c   : > { %4059 = vmatprep.subr.bf16.mxu0 %v7905_v30  ;;  %5213 = vmatprep.subr.bf16.mxu1 %v8413_v3 }
 0xa0d   : > { %4089 = vmatprep.mubr.bf16.mxu0 %v8424_v18  ;;  %5227 = vmatprep.mubr.msk.bf16.mxu1 %vm6096_vm0, %v8413_v3  ;;  %v8625_v18 = vld [vmem:[#allocation63_spill] sm:$0xff]  ;;  %vm4054_vm0 = vcmp.eq.s32.totalorder %v4053_v60, 1 }
 0xa0f   : > { %4060 = vmatpush1.bf16.msra.mxu0 %v7912_v29  ;;  %5214 = vmatpush3.bf16.msra.mxu1 %v7915_v51  ;;  %v8626_v29 = vld [vmem:[#allocation33_spill] sm:$0xff]  ;;  %v8627_v51 = vld [vmem:[#allocation34_spill] sm:$0xff] }
 0xa10   : > { %4061 = vmatprep.subr.bf16.mxu0 %v7924_v49  ;;  %5215 = vmatprep.subr.bf16.mxu1 %v8413_v3  ;;  %v8629_v49 = vld [vmem:[#allocation36_spill] sm:$0xff] }
 0xa11   : > { %v5689_v12 = vpop.eup %5688 }
 0xa12   : > { %v4044_v28 = vmul.f32 %v5689_v12, %v4043_v50 }
 0xa13   : > { %4062 = vmatpush1.bf16.msra.mxu0 %v7928_v6  ;;  %5216 = vmatpush3.bf16.msra.mxu1 %v7931_v55  ;;  %v8630_v6 = vld [vmem:[#allocation37_spill] sm:$0xff]  ;;  %v8631_v55 = vld [vmem:[#allocation38_spill] sm:$0xff] }
 0xa14   : > { %v4045_v30 = vadd.f32 %v4044_v28, %v8625_v18  ;;  %4063 = vmatprep.subr.bf16.mxu0 %v7935_v44  ;;  %5217 = vmatprep.subr.bf16.mxu1 %v8413_v3  ;;  %v8632_v44 = vld [vmem:[#allocation39_spill] sm:$0xff] }
 0xa16   : > { %5690 = vtanh.f32 %v4045_v30 }
 0xa17   : > { %4064 = vmatpush1.bf16.msra.mxu0 %v7939_v31  ;;  %5218 = vmatpush3.bf16.msra.mxu1 %v8626_v29  ;;  %5692 = vrcp.f32 %v4040_v20 }
 0xa18   : > { %4065 = vmatprep.subr.bf16.mxu0 %v8627_v51  ;;  %5219 = vmatprep.subr.bf16.mxu1 %v8413_v3 }
 0xa1b   : > { %4066 = vmatpush1.bf16.msra.mxu0 %v8628_v57  ;;  %5220 = vmatpush3.bf16.msra.mxu1 %v8629_v49 }
 0xa1c   : > { %4067 = vmatprep.subr.bf16.mxu0 %v8630_v6  ;;  %5221 = vmatprep.subr.bf16.mxu1 %v8413_v3 }
 0xa1f   : > { %4068 = vmatpush1.bf16.msra.mxu0 %v8631_v55  ;;  %5222 = vmatpush3.bf16.msra.mxu1 %v8632_v44 }
 0xa20   : > { %v5691_v31 = vpop.eup %5690  ;;  %4069 = vmatprep.subr.bf16.mxu0 %v8633_v2  ;;  %5223 = vmatprep.subr.bf16.mxu1 %v8413_v3 }
 0xa21   : > { %v4047_v16 = vsub.f32 %v7992_v52, %v5691_v31  ;;  %v5693_v39 = vpop.eup %5692 }
 0xa23   : > { %4070 = vmatpush1.bf16.msra.mxu0 %v7972_v15  ;;  %5224 = vmatpush3.bf16.msra.mxu1 %v7975_v11  ;;  %v4048_v37 = vmul.f32 %v5693_v39, %v4047_v16 }
 0xa24   : > { %4071 = vmatprep.subr.bf16.mxu0 %v7978_v46  ;;  %5225 = vmatprep.subr.bf16.mxu1 %v8413_v3 }
 0xa25   : > { %v4049_v21 = vadd.f32 %v5691_v31, %v4048_v37 }
 0xa27   : > { %4072 = vmatpush1.bf16.msra.mxu0 %v7983_v32  ;;  %5226 = vmatpush3.bf16.msra.mxu1 %v7986_v14  ;;  %v4055_v62 = vsel %vm4054_vm0, %v4049_v21, %v7992_v52 }
 0xa28   : > { %v4056_v63 = vpack.c.bf16 %v4055_v62, %v4055_v62  ;;  %4160 = vst [vmem:[#allocation2] sm:$0xff] %v4055_v62 }
 0xa2a   : > { %4090 = vmatmul.mubr.bf16.vlgmr.msra.gmra.mrb[60].mxu0 %v4056_v63  ;;  %5228 = vmatmul.mubr.bf16.vlgmr.msra.gmra.mrb[124].mxu1 %v4056_v63 }
 0xadd   : > { %v4017_v15 = vpop.f32.mrb[120].mxu1 }
 0xade   : > { %v5209_v11 = vpop.f32.mrb[121].mxu1  ;;  %v4152_v19 = vadd.f32 %v8073_v25, %v4017_v15 }
 0xadf   : > { %v4020_v40 = vpop.f32.mrb[122].mxu1 }
 0xae0   : > { %v5210_v8 = vpop.f32.mrb[123].mxu1 }
 0xafd   : > { %v4091_v46 = vpop.f32.mrb[60].mxu0  ;;  %v4132_v23 = vpop.f32.mrb[124].mxu1 }
 0xafe   : > { %v4092_v3 = vadd.f32 %v4091_v46, %v8584_v9  ;;  %v4093_v4 = vpop.f32.mrb[61].mxu0  ;;  %v5229_v47 = vpop.f32.mrb[125].mxu1  ;;  %v4133_v5 = vadd.f32 %v4132_v23, %v8481_v0 }
 0xaff   : > { %v4095_v32 = vpop.f32.mrb[62].mxu0  ;;  %v4135_v58 = vpop.f32.mrb[126].mxu1  ;;  %v4094_v52 = vadd.f32 %v4093_v4, %v8624_v10 }
 0xb00   : > { %v4440_v14 = vmul.f32 -1.442695, %v4092_v3  ;;  %v4096_v27 = vpop.f32.mrb[63].mxu0  ;;  %v5230_v54 = vpop.f32.mrb[127].mxu1 }
 0xb01   : > { %v4441_v53 = vmul.f32 -1.442695, %v4094_v52 }
 0xb02   : > { %5694 = vpow2.f32 %v4440_v14 }
 0xb03   : > { %5696 = vpow2.f32 %v4441_v53 }
 0xb0c   : > { %v5695_v56 = vpop.eup %5694 }
 0xb0d   : > { %v4142_v48 = vadd.f32 1.0, %v5695_v56  ;;  %v5697_v1 = vpop.eup %5696 }
 0xb0e   : > { %v4149_v61 = vadd.f32 1.0, %v5697_v1 }
 0xb0f   : > { %5698 = vrcp.f32 %v4142_v48 }
 0xb19   : > { %v5699_v9 = vpop.eup %5698 }
 0xb1a   : > { %v4153_v7 = vmul.f32 %v5699_v9, %v4152_v19 }
 0xb1c   : > { %v4154_v17 = vadd.f32 %v4153_v7, %v4133_v5 }
 0xb1e   : > { %5700 = vtanh.f32 %v4154_v17 }
 0xb1f   : > { %5702 = vrcp.f32 %v4149_v61 }
 0xb28   : > { %v5701_v42 = vpop.eup %5700 }
 0xb29   : > { %v4156_v10 = vsub.f32 %v8083_v38, %v5701_v42  ;;  %v5703_v41 = vpop.eup %5702 }
 0xb2b   : > { %v4157_v43 = vmul.f32 %v5703_v41, %v4156_v10 }
 0xb2d   : > { %v4158_v45 = vadd.f32 %v5701_v42, %v4157_v43 }
 0xb2f   : > { %v4159_v0 = vsel %vm4054_vm0, %v4158_v45, %v8083_v38 }
 0xb30   : > { %4161 = vst [vmem:[#allocation3] sm:$0xff] %v4159_v0  ;;  %4162 = vst [vmem:[#allocation14] sm:$0xff] %v4159_v0 }
 0xb31   : > { %6007 = shalt.err (!%p6004_p6)
}
 0xb32   : > { %s8636_s16 = sld [smem:[#allocation69_spill]] }
 0xb38   : > { %s8637_s12 = smov %s8636_s16  ;;  %s6008_s30 = scalar_lea.hbm %s8636_s16, 128 }
 0xb39   : > { %p6009_p10 = scmp.ne.s32.totalorder %s8637_s12, %s6008_s30  ;;  %p6014_p8 = scmp.lt.u32.totalorder %s6008_s30, %s8637_s12 }
 0xb3b   : > { %p6010_p1 = pnand %p6009_p10, %p8132_p9 }
 0xb3d   : > { %p6011_p3 = pneg %p6010_p1 }
 0xb3f   : > { %p6016_p11 = pnand %p6014_p8, %p6011_p3 }
 0xb41   : > { %6019 = shalt.err (!%p6016_p11)
}
 0xb42   : > { %5346 = dma.vmem_to_hbm [thread:$0]  (%p8132_p9), %s4173_s7, 128, %s8637_s12, [#allocation7]  }
 0xb43   : > { %6057 = dma.done.wait (%p8132_p9), [#allocation7], 128  }
 0xb44   : > { %6059 = vsyncadd (%p8132_p9), [#allocation7], 4294967168 }
 0xb45 PF: > { %s26_s18 = sadd.s32 1, %s6082_s18   ;;  %s8638_s13 = smov %s6066_s14 }
 0xb46   : > { %p23_p7 = scmp.ge.s32.totalorder %s26_s18, 4   ;;  %s8639_s14 = smov %s6070_s15 }
 0xb47   : > { %s8640_s15 = smov %s6329_s26  ;;  %s8641_s16 = smov %s6078_s17 }
 0xb48   : > { %s8642_s17 = smov %s8644_s19  ;;  %25 = sbr.rel (!%p23_p7) target bundleno = 12 (0xc), region = 135 }
 0xb4f   :  { %4185 = vsyncpa [#allocation6], 1 }
 0xb50   :  { %4187 = vsyncpa [#allocation6 + $0x1], 1 }
 0xb51   :  { %4188 = vsyncpa [#allocation9], 1 }
 0xb52   :  { %4189 = vsyncpa [#allocation12], 1 }
 0xb53   :  { %4190 = vsyncpa [#allocation7], 1 }
 0xb54   :  { %4192 = vsyncpa [#allocation7 + $0x1], 1 }

</bundles_post_ra>
